<compile_context>
chip_gen: v7x
topology: tpu7x:2x2x1
jax: 0.10.0
libtpu: 0.0.40
codegen_flags: <defaults>
</compile_context>

<pallas_src>
import math
import functools

import jax
import jax.numpy as jnp
from jax.experimental import pallas as pl
from jax.experimental.pallas import tpu as pltpu


# ----------------------------- configuration --------------------------------
class Configs:
    task_name = "long_term_forecast"
    pred_len = 4
    seq_len = 8
    enc_in = 4
    c_out = 4
    d_model = 32
    d_ff = 16          # used as Mamba d_state
    d_conv = 4
    expand = 2
    embed = "timeF"
    freq = "h"         # -> 4 time features for TimeFeatureEmbedding
    dropout = 0.1      # inference: identity


MARK_DIM = 4  # number of time-mark features for freq='h', embed='timeF'
_HIGH = jax.lax.Precision.HIGHEST


def _sigmoid(x):
    return 1.0 / (1.0 + jnp.exp(-x))


def _softplus(x):
    return jnp.maximum(x, 0.0) + jnp.log(1.0 + jnp.exp(-jnp.abs(x)))


def _mm(a, b):
    # full-f32 matmul (identical numerics for kernel and reference)
    return jnp.dot(a, b, precision=_HIGH, preferred_element_type=jnp.float32)


# ------------------------------- Pallas kernel -------------------------------
def _model_kernel(const_ref, rt_ref, out_ref, hbuf, ybuf, *,
                  B, L, d_inner, d_state, d_conv, pred_len, coffs, roffs):
    f32 = jnp.float32
    BL = B * L
    tail0 = L - pred_len

    def cst(key):
        o, r, c = coffs[key]
        return const_ref[o:o + r, 0:c]

    def rt(key):
        o, r, c = roffs[key]
        return rt_ref[o:o + r, 0:c]

    # ------------------- DataEmbedding: one fused matmul + PE -----------------
    emb = _mm(rt("emb_in"), cst("w_emb")) + cst("pe")            # (BL, d_model)

    # ------------------- Mamba in_proj (pre-split weights) --------------------
    x2 = _mm(emb, cst("w_in_x"))                                 # (BL, d_inner)
    z2 = _mm(emb, cst("w_in_z"))

    # --------- causal depthwise conv: ONE stacked shift matmul + taps ---------
    convw = cst("conv_w")                                        # (d_conv, D)
    acc = x2 * convw[d_conv - 1:d_conv, :]                       # shift-0 tap
    shifted = _mm(cst("shift_all"), x2)                          # ((d_conv-1)*BL, D)
    for k in range(d_conv - 1):
        acc = acc + shifted[k * BL:(k + 1) * BL, :] * convw[k:k + 1, :]
    acc = acc + cst("conv_b")
    xa = acc * _sigmoid(acc)                                     # SiLU

    # ------------------- input-dependent SSM parameters -----------------------
    dt = _softplus(_mm(xa, cst("w_dt")) + cst("b_dt"))           # (BL, d_inner)
    Bm = _mm(xa, cst("w_B"))                                     # (BL, d_state)
    Cm = _mm(xa, cst("w_C"))                                     # (BL, d_state)
    u = dt * xa

    at = cst("a_t")                                              # (d_state, D)
    eyeS = cst("eye_s")                                          # (S, S)
    dvec = cst("d_vec")                                          # (1, D)
    blkmask = cst("blk_mask")                                    # (pred, pred*S)
    # lane-replicated C (exact: 0/1 matrix at HIGHEST), shared by both batches
    cm_rep = _mm(Cm, cst("lane_rep"))                            # (BL, pred*S)

    # ------------- selective scan: MXU-free recurrence per batch --------------
    for b in range(B):
        r0 = b * L
        h = jnp.zeros((d_state, d_inner), f32)
        for t in range(L):
            r = r0 + t
            # exact broadcasts, no MXU on the recurrence:
            dA_t = jnp.exp(dt[r:r + 1, :] * at)                  # (S, D)
            b_col = jnp.sum(Bm[r:r + 1, :] * eyeS, axis=-1,
                            keepdims=True)                       # (S, 1)
            h = dA_t * h + b_col * u[r:r + 1, :]
            if t >= tail0:
                p = t - tail0
                hbuf[p * d_state:(p + 1) * d_state, :] = h

        # C contraction hoisted out of the recurrence: one block-diag dot
        cm_blk = cm_rep[r0 + tail0:r0 + L, :] * blkmask          # (pred, pred*S)
        y = _mm(cm_blk, hbuf[...])                               # (pred, D)
        xa_t = xa[r0 + tail0:r0 + L, :]
        z_t = z2[r0 + tail0:r0 + L, :]
        y = (y + xa_t * dvec) * (z_t * _sigmoid(z_t))            # +D skip, gate
        ybuf[b * pred_len:(b + 1) * pred_len, :] = y

    # ------------- output head + de-normalisation, single store ---------------
    o = _mm(ybuf[...], cst("w_head"))                            # (B*pred, c_out)
    out_ref[...] = (o * rt("std") + rt("mean")).astype(out_ref.dtype)


# --------------------------------- wrapper -----------------------------------
def _pack_slab(named, width):
    """Pad each 2-D array to (multiple-of-8 rows, width) and stack along rows."""
    parts, offs, row = [], {}, 0
    for name, a in named:
        a = jnp.asarray(a, jnp.float32)
        r, c = a.shape
        rp = ((r + 7) // 8) * 8
        buf = jnp.zeros((rp, width), jnp.float32).at[:r, :c].set(a)
        parts.append(buf)
        offs[name] = (row, r, c)
        row += rp
    return jnp.concatenate(parts, axis=0), offs


def mamba_forecast(params, x_enc, x_mark, cfg):
    B, L, enc_in = x_enc.shape
    mark = x_mark.shape[-1]
    d_model = cfg.d_model
    d_inner = d_model * cfg.expand
    d_state = cfg.d_ff
    d_conv = cfg.d_conv
    c_out = cfg.c_out
    pred_len = cfg.pred_len
    BL = B * L
    f32 = jnp.float32
    assert c_out == enc_in, "de-norm broadcast assumes c_out == enc_in"
    assert pred_len <= L

    # series normalization statistics (tiny XLA glue)
    mean = jnp.mean(x_enc, axis=1)                               # (B, enc_in)
    xc = x_enc - mean[:, None, :]
    std = jnp.sqrt(jnp.mean(xc * xc, axis=1) + 1e-5)             # (B, enc_in)
    xn = xc / std[:, None, :]                                    # (B, L, enc_in)

    # fused-embedding input: [x(t-1) | x(t) | x(t+1) | marks]  (circular rolls)
    emb_in = jnp.concatenate(
        [jnp.roll(xn, 1, axis=1), xn, jnp.roll(xn, -1, axis=1), x_mark],
        axis=-1).reshape(BL, 3 * enc_in + mark).astype(f32)
    std_rows = jnp.repeat(std, pred_len, axis=0).astype(f32)     # (B*pred, c_out)
    mean_rows = jnp.repeat(mean, pred_len, axis=0).astype(f32)

    # ----------------- constant / weight slab (single DMA) --------------------
    w_emb = jnp.concatenate([params["tok_w"][0], params["tok_w"][1],
                             params["tok_w"][2], params["time_w"]], axis=0)
    pe2 = jnp.tile(params["pe"], (B, 1))                         # (BL, d_model)
    eyeB = jnp.eye(B, dtype=f32)
    shift_all = jnp.concatenate(
        [jnp.kron(eyeB, jnp.eye(L, k=-(d_conv - 1 - k), dtype=f32))
         for k in range(d_conv - 1)], axis=0)                    # ((d_conv-1)*BL, BL)
    w_dt = jnp.matmul(params["x_w_dt"], params["dt_w"], precision=_HIGH)
    w_head = jnp.matmul(params["out_w"], params["lin_w"], precision=_HIGH)
    a_t = (-jnp.exp(params["a_log"])).T                          # (d_state, d_inner)
    eye_s = jnp.eye(d_state, dtype=f32)
    lane_rep = jnp.tile(eye_s, (1, pred_len))                    # (S, pred*S)
    blk_mask = jnp.kron(jnp.eye(pred_len, dtype=f32),
                        jnp.ones((1, d_state), f32))             # (pred, pred*S)

    consts = [
        ("w_emb", w_emb), ("pe", pe2),
        ("w_in_x", params["in_w_x"]), ("w_in_z", params["in_w_z"]),
        ("shift_all", shift_all), ("conv_w", params["conv_w"]),
        ("conv_b", params["conv_b"]), ("w_dt", w_dt), ("b_dt", params["dt_b"]),
        ("w_B", params["x_w_B"]), ("w_C", params["x_w_C"]),
        ("a_t", a_t), ("eye_s", eye_s), ("d_vec", params["d"]),
        ("lane_rep", lane_rep), ("blk_mask", blk_mask), ("w_head", w_head),
    ]
    cwidth = max(a.shape[1] for _, a in consts)
    const_slab, coffs = _pack_slab(consts, width=cwidth)

    rts = [("emb_in", emb_in), ("std", std_rows), ("mean", mean_rows)]
    rwidth = max(a.shape[1] for _, a in rts)
    rt_slab, roffs = _pack_slab(rts, width=rwidth)

    kernel = functools.partial(
        _model_kernel, B=B, L=L, d_inner=d_inner, d_state=d_state,
        d_conv=d_conv, pred_len=pred_len, coffs=coffs, roffs=roffs)

    out_flat = pl.pallas_call(
        kernel,
        out_shape=jax.ShapeDtypeStruct((B * pred_len, c_out), f32),
        grid=(1,),
        in_specs=[pl.BlockSpec(const_slab.shape, lambda i: (0, 0)),
                  pl.BlockSpec(rt_slab.shape, lambda i: (0, 0))],
        out_specs=pl.BlockSpec((B * pred_len, c_out), lambda i: (0, 0)),
        scratch_shapes=[pltpu.VMEM((pred_len * d_state, d_inner), f32),
                        pltpu.VMEM((B * pred_len, d_inner), f32)],
        compiler_params=pltpu.CompilerParams(
            dimension_semantics=("arbitrary",)),
    )(const_slab, rt_slab)
    return out_flat.reshape(B, pred_len, c_out)


# --------------------------- deterministic params ----------------------------
def init_params(key, cfg, L):
    d_model = cfg.d_model
    enc_in = cfg.enc_in
    d_inner = d_model * cfg.expand
    d_state = cfg.d_ff
    dt_rank = math.ceil(d_model / 16)
    d_conv = cfg.d_conv
    ks = jax.random.split(key, 12)

    def nrm(k, shape, scale):
        return (scale * jax.random.normal(k, shape)).astype(jnp.float32)

    # TokenEmbedding: Conv1d(enc_in, d_model, k=3, circular, bias=False)
    tok_w = nrm(ks[0], (3, enc_in, d_model), 1.0 / math.sqrt(3 * enc_in))
    # TimeFeatureEmbedding: Linear(MARK_DIM, d_model, bias=False)
    time_w = nrm(ks[1], (MARK_DIM, d_model), 1.0 / math.sqrt(MARK_DIM))
    # fixed sinusoidal positional embedding
    pos = jnp.arange(L, dtype=jnp.float32)[:, None]
    div = jnp.exp(jnp.arange(0, d_model, 2, dtype=jnp.float32)
                  * (-math.log(10000.0) / d_model))
    pe = jnp.zeros((L, d_model), jnp.float32)
    pe = pe.at[:, 0::2].set(jnp.sin(pos * div))
    pe = pe.at[:, 1::2].set(jnp.cos(pos * div))
    # Mamba parameters (in_proj / x_proj stored pre-split)
    in_w_x = nrm(ks[2], (d_model, d_inner), 1.0 / math.sqrt(d_model))
    in_w_z = nrm(ks[3], (d_model, d_inner), 1.0 / math.sqrt(d_model))
    conv_w = nrm(ks[4], (d_conv, d_inner), 1.0 / math.sqrt(d_conv))
    conv_b = nrm(ks[5], (1, d_inner), 0.02)
    x_w_dt = nrm(ks[6], (d_inner, dt_rank), 1.0 / math.sqrt(d_inner))
    x_w_B = nrm(ks[7], (d_inner, d_state), 1.0 / math.sqrt(d_inner))
    x_w_C = nrm(ks[8], (d_inner, d_state), 1.0 / math.sqrt(d_inner))
    dt_w = nrm(ks[9], (dt_rank, d_inner), 1.0 / math.sqrt(dt_rank))
    dt_b = jnp.full((1, d_inner), math.log(math.expm1(0.01)), jnp.float32)
    a_log = jnp.log(jnp.tile(
        jnp.arange(1, d_state + 1, dtype=jnp.float32)[None, :], (d_inner, 1)))
    dvec = jnp.ones((1, d_inner), jnp.float32)
    out_w = nrm(ks[10], (d_inner, d_model), 1.0 / math.sqrt(d_inner))
    lin_w = nrm(ks[11], (d_model, cfg.c_out), 1.0 / math.sqrt(d_model))
    return dict(tok_w=tok_w, time_w=time_w, pe=pe, in_w_x=in_w_x, in_w_z=in_w_z,
                conv_w=conv_w, conv_b=conv_b, x_w_dt=x_w_dt, x_w_B=x_w_B,
                x_w_C=x_w_C, dt_w=dt_w, dt_b=dt_b, a_log=a_log, d=dvec,
                out_w=out_w, lin_w=lin_w)


# ---------------------------- pure-JAX reference -----------------------------
def reference_forecast(params, x_enc, x_mark, cfg):
    B, L, _ = x_enc.shape
    d_inner = cfg.d_model * cfg.expand
    d_state = cfg.d_ff
    d_conv = cfg.d_conv

    bm = lambda a, w: jnp.matmul(a, w, precision=_HIGH)

    mean = x_enc.mean(axis=1, keepdims=True)
    xc = x_enc - mean
    std = jnp.sqrt(jnp.mean(xc * xc, axis=1, keepdims=True) + 1e-5)
    xn = xc / std
    tok = (bm(jnp.roll(xn, 1, axis=1), params["tok_w"][0])
           + bm(xn, params["tok_w"][1])
           + bm(jnp.roll(xn, -1, axis=1), params["tok_w"][2]))
    emb = tok + bm(x_mark, params["time_w"]) + params["pe"][None]
    x = bm(emb, params["in_w_x"])
    z = bm(emb, params["in_w_z"])
    conv = jnp.zeros_like(x)
    for k in range(d_conv):
        s = d_conv - 1 - k
        xs = jnp.pad(x, ((0, 0), (s, 0), (0, 0)))[:, :L, :]
        conv = conv + xs * params["conv_w"][k][None, None, :]
    conv = conv + params["conv_b"][None]
    xa = conv * _sigmoid(conv)
    dt = _softplus(bm(bm(xa, params["x_w_dt"]), params["dt_w"])
                   + params["dt_b"][None])
    Bm = bm(xa, params["x_w_B"])
    Cm = bm(xa, params["x_w_C"])
    A = -jnp.exp(params["a_log"])

    def step(h, inp):
        dt_t, b_t, c_t, x_t = inp
        h = jnp.exp(dt_t[:, None] * A) * h + (dt_t * x_t)[:, None] * b_t[None, :]
        return h, jnp.sum(h * c_t[None, :], axis=1)

    def per_batch(dt_b, B_b, C_b, x_b):
        h0 = jnp.zeros((d_inner, d_state), jnp.float32)
        _, ys = jax.lax.scan(step, h0, (dt_b, B_b, C_b, x_b))
        return ys

    y = jax.vmap(per_batch)(dt, Bm, Cm, xa)
    y = y + xa * params["d"][None]
    y = y * (z * _sigmoid(z))
    out = bm(bm(y, params["out_w"]), params["lin_w"])
    out = out * std + mean
    return out[:, -cfg.pred_len:, :]


if __name__ == "__main__":
    cfg = Configs()
    B, L = 2, cfg.seq_len
    key = jax.random.PRNGKey(0)
    kx, km, kp = jax.random.split(key, 3)
    x_enc = jax.random.normal(kx, (B, L, cfg.enc_in), jnp.float32)
    x_mark_enc = jax.random.normal(km, (B, L, MARK_DIM), jnp.float32)
    # x_dec / x_mark_dec are unused by the forecast path of the module.
    params = init_params(kp, cfg, L)

    out = jax.block_until_ready(mamba_forecast(params, x_enc, x_mark_enc, cfg))
    ref = jax.block_until_ready(reference_forecast(params, x_enc, x_mark_enc, cfg))

    assert out.shape == (B, cfg.pred_len, cfg.c_out), out.shape
    assert bool(jnp.all(jnp.isfinite(out)))
    err = float(jnp.max(jnp.abs(out - ref)))
    assert err < 2e-2, err
    print("KERNEL_OK")
</pallas_src>

<mosaic_0001>
module attributes {stable_mosaic.version = 11 : i64} {
  func.func @_model_kernel(%arg0: i32, %arg1: memref<488x64xf32, #tpu.memory_space<vmem>>, %arg2: memref<32x16xf32, #tpu.memory_space<vmem>>, %arg3: memref<8x4xf32, #tpu.memory_space<vmem>>, %arg4: memref<64x64xf32, #tpu.memory_space<vmem>>, %arg5: memref<8x64xf32, #tpu.memory_space<vmem>>) attributes {dimension_semantics = [#tpu.dimension_semantics<arbitrary>], iteration_bounds = array<i64: 1>, scalar_prefetch = 0 : i64, scratch_operands = 2 : i64, tpu.core_type = #tpu.core_type<tc>, window_params = [{pipeline_mode = #tpu.pipeline_mode<synchronous>, transform_indices = @transform_0, window_bounds = array<i64: 488, 64>}, {pipeline_mode = #tpu.pipeline_mode<synchronous>, transform_indices = @transform_1, window_bounds = array<i64: 32, 16>}, {pipeline_mode = #tpu.pipeline_mode<synchronous>, transform_indices = @transform_2, window_bounds = array<i64: 8, 4>}]} {
    %c0 = arith.constant 0 : index
    %c0_0 = arith.constant 0 : index
    %0 = vector.load %arg2[%c0, %c0_0] : memref<32x16xf32, #tpu.memory_space<vmem>>, vector<16x16xf32>
    %c0_1 = arith.constant 0 : index
    %c0_2 = arith.constant 0 : index
    %1 = vector.load %arg1[%c0_1, %c0_2] : memref<488x64xf32, #tpu.memory_space<vmem>>, vector<16x32xf32>
    %cst = arith.constant dense<0.000000e+00> : vector<16x32xf32>
    %2 = tpu.matmul %0, %1, %cst {dimension_numbers = #tpu.dot_dimension_numbers<[1], [0], [0], [1], [0, 0, 1, 1], [], []>, precision = #tpu.contract_precision<fp32>} : vector<16x16xf32>, vector<16x32xf32>, vector<16x32xf32> -> vector<16x32xf32>
    %c16 = arith.constant 16 : index
    %c0_3 = arith.constant 0 : index
    %3 = vector.load %arg1[%c16, %c0_3] : memref<488x64xf32, #tpu.memory_space<vmem>>, vector<16x32xf32>
    %4 = arith.addf %2, %3 : vector<16x32xf32>
    %c32 = arith.constant 32 : index
    %c0_4 = arith.constant 0 : index
    %5 = vector.load %arg1[%c32, %c0_4] : memref<488x64xf32, #tpu.memory_space<vmem>>, vector<32x64xf32>
    %cst_5 = arith.constant dense<0.000000e+00> : vector<16x64xf32>
    %6 = tpu.matmul %4, %5, %cst_5 {dimension_numbers = #tpu.dot_dimension_numbers<[1], [0], [0], [1], [0, 0, 1, 1], [], []>, precision = #tpu.contract_precision<fp32>} : vector<16x32xf32>, vector<32x64xf32>, vector<16x64xf32> -> vector<16x64xf32>
    %c64 = arith.constant 64 : index
    %c0_6 = arith.constant 0 : index
    %7 = vector.load %arg1[%c64, %c0_6] : memref<488x64xf32, #tpu.memory_space<vmem>>, vector<32x64xf32>
    %cst_7 = arith.constant dense<0.000000e+00> : vector<16x64xf32>
    %8 = tpu.matmul %4, %7, %cst_7 {dimension_numbers = #tpu.dot_dimension_numbers<[1], [0], [0], [1], [0, 0, 1, 1], [], []>, precision = #tpu.contract_precision<fp32>} : vector<16x32xf32>, vector<32x64xf32>, vector<16x64xf32> -> vector<16x64xf32>
    %c144 = arith.constant 144 : index
    %c0_8 = arith.constant 0 : index
    %9 = vector.load %arg1[%c144, %c0_8] : memref<488x64xf32, #tpu.memory_space<vmem>>, vector<4x64xf32>
    %10 = vector.extract_strided_slice %9 {offsets = [3, 0], sizes = [1, 64], strides = [1, 1]} : vector<4x64xf32> to vector<1x64xf32>
    %11 = vector.broadcast %10 : vector<1x64xf32> to vector<16x64xf32>
    %12 = arith.mulf %6, %11 : vector<16x64xf32>
    %c96 = arith.constant 96 : index
    %c0_9 = arith.constant 0 : index
    %13 = vector.load %arg1[%c96, %c0_9] : memref<488x64xf32, #tpu.memory_space<vmem>>, vector<48x16xf32>
    %cst_10 = arith.constant dense<0.000000e+00> : vector<48x64xf32>
    %14 = tpu.matmul %13, %6, %cst_10 {dimension_numbers = #tpu.dot_dimension_numbers<[1], [0], [0], [1], [0, 0, 1, 1], [], []>, precision = #tpu.contract_precision<fp32>} : vector<48x16xf32>, vector<16x64xf32>, vector<48x64xf32> -> vector<48x64xf32>
    %15 = vector.extract_strided_slice %14 {offsets = [0, 0], sizes = [16, 64], strides = [1, 1]} : vector<48x64xf32> to vector<16x64xf32>
    %16 = vector.extract_strided_slice %9 {offsets = [0, 0], sizes = [1, 64], strides = [1, 1]} : vector<4x64xf32> to vector<1x64xf32>
    %17 = vector.broadcast %16 : vector<1x64xf32> to vector<16x64xf32>
    %18 = arith.mulf %15, %17 : vector<16x64xf32>
    %19 = arith.addf %12, %18 : vector<16x64xf32>
    %20 = vector.extract_strided_slice %14 {offsets = [16, 0], sizes = [16, 64], strides = [1, 1]} : vector<48x64xf32> to vector<16x64xf32>
    %21 = vector.extract_strided_slice %9 {offsets = [1, 0], sizes = [1, 64], strides = [1, 1]} : vector<4x64xf32> to vector<1x64xf32>
    %22 = vector.broadcast %21 : vector<1x64xf32> to vector<16x64xf32>
    %23 = arith.mulf %20, %22 : vector<16x64xf32>
    %24 = arith.addf %19, %23 : vector<16x64xf32>
    %25 = vector.extract_strided_slice %14 {offsets = [32, 0], sizes = [16, 64], strides = [1, 1]} : vector<48x64xf32> to vector<16x64xf32>
    %26 = vector.extract_strided_slice %9 {offsets = [2, 0], sizes = [1, 64], strides = [1, 1]} : vector<4x64xf32> to vector<1x64xf32>
    %27 = vector.broadcast %26 : vector<1x64xf32> to vector<16x64xf32>
    %28 = arith.mulf %25, %27 : vector<16x64xf32>
    %29 = arith.addf %24, %28 : vector<16x64xf32>
    %c152 = arith.constant 152 : index
    %c0_11 = arith.constant 0 : index
    %30 = vector.load %arg1[%c152, %c0_11] : memref<488x64xf32, #tpu.memory_space<vmem>>, vector<1x64xf32>
    %31 = vector.broadcast %30 : vector<1x64xf32> to vector<16x64xf32>
    %32 = arith.addf %29, %31 : vector<16x64xf32>
    %cst_12 = arith.constant 0.000000e+00 : f32
    %33 = vector.broadcast %cst_12 : f32 to vector<16x64xf32>
    %34 = arith.subf %33, %32 : vector<16x64xf32>
    %35 = math.exp %34 : vector<16x64xf32>
    %cst_13 = arith.constant 1.000000e+00 : f32
    %36 = vector.broadcast %cst_13 : f32 to vector<16x64xf32>
    %37 = arith.addf %36, %35 : vector<16x64xf32>
    %cst_14 = arith.constant 1.000000e+00 : f32
    %38 = vector.broadcast %cst_14 : f32 to vector<16x64xf32>
    %39 = arith.divf %38, %37 : vector<16x64xf32>
    %40 = arith.mulf %32, %39 : vector<16x64xf32>
    %c160 = arith.constant 160 : index
    %c0_15 = arith.constant 0 : index
    %41 = vector.load %arg1[%c160, %c0_15] : memref<488x64xf32, #tpu.memory_space<vmem>>, vector<64x64xf32>
    %cst_16 = arith.constant dense<0.000000e+00> : vector<16x64xf32>
    %42 = tpu.matmul %40, %41, %cst_16 {dimension_numbers = #tpu.dot_dimension_numbers<[1], [0], [0], [1], [0, 0, 1, 1], [], []>, precision = #tpu.contract_precision<fp32>} : vector<16x64xf32>, vector<64x64xf32>, vector<16x64xf32> -> vector<16x64xf32>
    %c224 = arith.constant 224 : index
    %c0_17 = arith.constant 0 : index
    %43 = vector.load %arg1[%c224, %c0_17] : memref<488x64xf32, #tpu.memory_space<vmem>>, vector<1x64xf32>
    %44 = vector.broadcast %43 : vector<1x64xf32> to vector<16x64xf32>
    %45 = arith.addf %42, %44 : vector<16x64xf32>
    %cst_18 = arith.constant 0.000000e+00 : f32
    %46 = vector.broadcast %cst_18 : f32 to vector<16x64xf32>
    %47 = arith.maximumf %45, %46 : vector<16x64xf32>
    %48 = math.absf %45 : vector<16x64xf32>
    %cst_19 = arith.constant 0.000000e+00 : f32
    %49 = vector.broadcast %cst_19 : f32 to vector<16x64xf32>
    %50 = arith.subf %49, %48 : vector<16x64xf32>
    %51 = math.exp %50 : vector<16x64xf32>
    %cst_20 = arith.constant 1.000000e+00 : f32
    %52 = vector.broadcast %cst_20 : f32 to vector<16x64xf32>
    %53 = arith.addf %52, %51 : vector<16x64xf32>
    %54 = math.log %53 : vector<16x64xf32>
    %55 = arith.addf %47, %54 : vector<16x64xf32>
    %c232 = arith.constant 232 : index
    %c0_21 = arith.constant 0 : index
    %56 = vector.load %arg1[%c232, %c0_21] : memref<488x64xf32, #tpu.memory_space<vmem>>, vector<64x16xf32>
    %cst_22 = arith.constant dense<0.000000e+00> : vector<16x16xf32>
    %57 = tpu.matmul %40, %56, %cst_22 {dimension_numbers = #tpu.dot_dimension_numbers<[1], [0], [0], [1], [0, 0, 1, 1], [], []>, precision = #tpu.contract_precision<fp32>} : vector<16x64xf32>, vector<64x16xf32>, vector<16x16xf32> -> vector<16x16xf32>
    %c296 = arith.constant 296 : index
    %c0_23 = arith.constant 0 : index
    %58 = vector.load %arg1[%c296, %c0_23] : memref<488x64xf32, #tpu.memory_space<vmem>>, vector<64x16xf32>
    %cst_24 = arith.constant dense<0.000000e+00> : vector<16x16xf32>
    %59 = tpu.matmul %40, %58, %cst_24 {dimension_numbers = #tpu.dot_dimension_numbers<[1], [0], [0], [1], [0, 0, 1, 1], [], []>, precision = #tpu.contract_precision<fp32>} : vector<16x64xf32>, vector<64x16xf32>, vector<16x16xf32> -> vector<16x16xf32>
    %60 = arith.mulf %55, %40 : vector<16x64xf32>
    %c360 = arith.constant 360 : index
    %c0_25 = arith.constant 0 : index
    %61 = vector.load %arg1[%c360, %c0_25] : memref<488x64xf32, #tpu.memory_space<vmem>>, vector<16x64xf32>
    %c376 = arith.constant 376 : index
    %c0_26 = arith.constant 0 : index
    %62 = vector.load %arg1[%c376, %c0_26] : memref<488x64xf32, #tpu.memory_space<vmem>>, vector<16x16xf32>
    %c392 = arith.constant 392 : index
    %c0_27 = arith.constant 0 : index
    %63 = vector.load %arg1[%c392, %c0_27] : memref<488x64xf32, #tpu.memory_space<vmem>>, vector<1x64xf32>
    %c416 = arith.constant 416 : index
    %c0_28 = arith.constant 0 : index
    %64 = vector.load %arg1[%c416, %c0_28] : memref<488x64xf32, #tpu.memory_space<vmem>>, vector<4x64xf32>
    %c400 = arith.constant 400 : index
    %c0_29 = arith.constant 0 : index
    %65 = vector.load %arg1[%c400, %c0_29] : memref<488x64xf32, #tpu.memory_space<vmem>>, vector<16x64xf32>
    %cst_30 = arith.constant dense<0.000000e+00> : vector<16x64xf32>
    %66 = tpu.matmul %59, %65, %cst_30 {dimension_numbers = #tpu.dot_dimension_numbers<[1], [0], [0], [1], [0, 0, 1, 1], [], []>, precision = #tpu.contract_precision<fp32>} : vector<16x16xf32>, vector<16x64xf32>, vector<16x64xf32> -> vector<16x64xf32>
    %cst_31 = arith.constant 0.000000e+00 : f32
    %67 = vector.broadcast %cst_31 : f32 to vector<16x64xf32>
    %68 = vector.extract_strided_slice %55 {offsets = [0, 0], sizes = [1, 64], strides = [1, 1]} : vector<16x64xf32> to vector<1x64xf32>
    %69 = vector.broadcast %68 : vector<1x64xf32> to vector<16x64xf32>
    %70 = arith.mulf %69, %61 : vector<16x64xf32>
    %71 = math.exp %70 : vector<16x64xf32>
    %72 = vector.extract_strided_slice %57 {offsets = [0, 0], sizes = [1, 16], strides = [1, 1]} : vector<16x16xf32> to vector<1x16xf32>
    %73 = vector.broadcast %72 : vector<1x16xf32> to vector<16x16xf32>
    %74 = arith.mulf %73, %62 : vector<16x16xf32>
    %cst_32 = arith.constant dense<0.000000e+00> : vector<16xf32>
    %75 = vector.multi_reduction <add>, %74, %cst_32 [1] : vector<16x16xf32> to vector<16xf32>
    %76 = vector.shape_cast %75 : vector<16xf32> to vector<16x1xf32>
    %77 = arith.mulf %71, %67 : vector<16x64xf32>
    %78 = vector.extract_strided_slice %60 {offsets = [0, 0], sizes = [1, 64], strides = [1, 1]} : vector<16x64xf32> to vector<1x64xf32>
    %79 = vector.broadcast %76 : vector<16x1xf32> to vector<16x64xf32>
    %80 = vector.broadcast %78 : vector<1x64xf32> to vector<16x64xf32>
    %81 = arith.mulf %79, %80 : vector<16x64xf32>
    %82 = arith.addf %77, %81 : vector<16x64xf32>
    %83 = vector.extract_strided_slice %55 {offsets = [1, 0], sizes = [1, 64], strides = [1, 1]} : vector<16x64xf32> to vector<1x64xf32>
    %84 = vector.broadcast %83 : vector<1x64xf32> to vector<16x64xf32>
    %85 = arith.mulf %84, %61 : vector<16x64xf32>
    %86 = math.exp %85 : vector<16x64xf32>
    %87 = vector.extract_strided_slice %57 {offsets = [1, 0], sizes = [1, 16], strides = [1, 1]} : vector<16x16xf32> to vector<1x16xf32>
    %88 = vector.broadcast %87 : vector<1x16xf32> to vector<16x16xf32>
    %89 = arith.mulf %88, %62 : vector<16x16xf32>
    %cst_33 = arith.constant dense<0.000000e+00> : vector<16xf32>
    %90 = vector.multi_reduction <add>, %89, %cst_33 [1] : vector<16x16xf32> to vector<16xf32>
    %91 = vector.shape_cast %90 : vector<16xf32> to vector<16x1xf32>
    %92 = arith.mulf %86, %82 : vector<16x64xf32>
    %93 = vector.extract_strided_slice %60 {offsets = [1, 0], sizes = [1, 64], strides = [1, 1]} : vector<16x64xf32> to vector<1x64xf32>
    %94 = vector.broadcast %91 : vector<16x1xf32> to vector<16x64xf32>
    %95 = vector.broadcast %93 : vector<1x64xf32> to vector<16x64xf32>
    %96 = arith.mulf %94, %95 : vector<16x64xf32>
    %97 = arith.addf %92, %96 : vector<16x64xf32>
    %98 = vector.extract_strided_slice %55 {offsets = [2, 0], sizes = [1, 64], strides = [1, 1]} : vector<16x64xf32> to vector<1x64xf32>
    %99 = vector.broadcast %98 : vector<1x64xf32> to vector<16x64xf32>
    %100 = arith.mulf %99, %61 : vector<16x64xf32>
    %101 = math.exp %100 : vector<16x64xf32>
    %102 = vector.extract_strided_slice %57 {offsets = [2, 0], sizes = [1, 16], strides = [1, 1]} : vector<16x16xf32> to vector<1x16xf32>
    %103 = vector.broadcast %102 : vector<1x16xf32> to vector<16x16xf32>
    %104 = arith.mulf %103, %62 : vector<16x16xf32>
    %cst_34 = arith.constant dense<0.000000e+00> : vector<16xf32>
    %105 = vector.multi_reduction <add>, %104, %cst_34 [1] : vector<16x16xf32> to vector<16xf32>
    %106 = vector.shape_cast %105 : vector<16xf32> to vector<16x1xf32>
    %107 = arith.mulf %101, %97 : vector<16x64xf32>
    %108 = vector.extract_strided_slice %60 {offsets = [2, 0], sizes = [1, 64], strides = [1, 1]} : vector<16x64xf32> to vector<1x64xf32>
    %109 = vector.broadcast %106 : vector<16x1xf32> to vector<16x64xf32>
    %110 = vector.broadcast %108 : vector<1x64xf32> to vector<16x64xf32>
    %111 = arith.mulf %109, %110 : vector<16x64xf32>
    %112 = arith.addf %107, %111 : vector<16x64xf32>
    %113 = vector.extract_strided_slice %55 {offsets = [3, 0], sizes = [1, 64], strides = [1, 1]} : vector<16x64xf32> to vector<1x64xf32>
    %114 = vector.broadcast %113 : vector<1x64xf32> to vector<16x64xf32>
    %115 = arith.mulf %114, %61 : vector<16x64xf32>
    %116 = math.exp %115 : vector<16x64xf32>
    %117 = vector.extract_strided_slice %57 {offsets = [3, 0], sizes = [1, 16], strides = [1, 1]} : vector<16x16xf32> to vector<1x16xf32>
    %118 = vector.broadcast %117 : vector<1x16xf32> to vector<16x16xf32>
    %119 = arith.mulf %118, %62 : vector<16x16xf32>
    %cst_35 = arith.constant dense<0.000000e+00> : vector<16xf32>
    %120 = vector.multi_reduction <add>, %119, %cst_35 [1] : vector<16x16xf32> to vector<16xf32>
    %121 = vector.shape_cast %120 : vector<16xf32> to vector<16x1xf32>
    %122 = arith.mulf %116, %112 : vector<16x64xf32>
    %123 = vector.extract_strided_slice %60 {offsets = [3, 0], sizes = [1, 64], strides = [1, 1]} : vector<16x64xf32> to vector<1x64xf32>
    %124 = vector.broadcast %121 : vector<16x1xf32> to vector<16x64xf32>
    %125 = vector.broadcast %123 : vector<1x64xf32> to vector<16x64xf32>
    %126 = arith.mulf %124, %125 : vector<16x64xf32>
    %127 = arith.addf %122, %126 : vector<16x64xf32>
    %128 = vector.extract_strided_slice %55 {offsets = [4, 0], sizes = [1, 64], strides = [1, 1]} : vector<16x64xf32> to vector<1x64xf32>
    %129 = vector.broadcast %128 : vector<1x64xf32> to vector<16x64xf32>
    %130 = arith.mulf %129, %61 : vector<16x64xf32>
    %131 = math.exp %130 : vector<16x64xf32>
    %132 = vector.extract_strided_slice %57 {offsets = [4, 0], sizes = [1, 16], strides = [1, 1]} : vector<16x16xf32> to vector<1x16xf32>
    %133 = vector.broadcast %132 : vector<1x16xf32> to vector<16x16xf32>
    %134 = arith.mulf %133, %62 : vector<16x16xf32>
    %cst_36 = arith.constant dense<0.000000e+00> : vector<16xf32>
    %135 = vector.multi_reduction <add>, %134, %cst_36 [1] : vector<16x16xf32> to vector<16xf32>
    %136 = vector.shape_cast %135 : vector<16xf32> to vector<16x1xf32>
    %137 = arith.mulf %131, %127 : vector<16x64xf32>
    %138 = vector.extract_strided_slice %60 {offsets = [4, 0], sizes = [1, 64], strides = [1, 1]} : vector<16x64xf32> to vector<1x64xf32>
    %139 = vector.broadcast %136 : vector<16x1xf32> to vector<16x64xf32>
    %140 = vector.broadcast %138 : vector<1x64xf32> to vector<16x64xf32>
    %141 = arith.mulf %139, %140 : vector<16x64xf32>
    %142 = arith.addf %137, %141 : vector<16x64xf32>
    %c0_37 = arith.constant 0 : index
    %c0_38 = arith.constant 0 : index
    %143 = vector.load %arg4[%c0_37, %c0_38] : memref<64x64xf32, #tpu.memory_space<vmem>>, vector<16x64xf32>
    tpu.vector_store %arg4[%c0_37, %c0_38], %142 {strides = array<i32>} : memref<64x64xf32, #tpu.memory_space<vmem>>, vector<16x64xf32>,
    %144 = vector.extract_strided_slice %55 {offsets = [5, 0], sizes = [1, 64], strides = [1, 1]} : vector<16x64xf32> to vector<1x64xf32>
    %145 = vector.broadcast %144 : vector<1x64xf32> to vector<16x64xf32>
    %146 = arith.mulf %145, %61 : vector<16x64xf32>
    %147 = math.exp %146 : vector<16x64xf32>
    %148 = vector.extract_strided_slice %57 {offsets = [5, 0], sizes = [1, 16], strides = [1, 1]} : vector<16x16xf32> to vector<1x16xf32>
    %149 = vector.broadcast %148 : vector<1x16xf32> to vector<16x16xf32>
    %150 = arith.mulf %149, %62 : vector<16x16xf32>
    %cst_39 = arith.constant dense<0.000000e+00> : vector<16xf32>
    %151 = vector.multi_reduction <add>, %150, %cst_39 [1] : vector<16x16xf32> to vector<16xf32>
    %152 = vector.shape_cast %151 : vector<16xf32> to vector<16x1xf32>
    %153 = arith.mulf %147, %142 : vector<16x64xf32>
    %154 = vector.extract_strided_slice %60 {offsets = [5, 0], sizes = [1, 64], strides = [1, 1]} : vector<16x64xf32> to vector<1x64xf32>
    %155 = vector.broadcast %152 : vector<16x1xf32> to vector<16x64xf32>
    %156 = vector.broadcast %154 : vector<1x64xf32> to vector<16x64xf32>
    %157 = arith.mulf %155, %156 : vector<16x64xf32>
    %158 = arith.addf %153, %157 : vector<16x64xf32>
    %c16_40 = arith.constant 16 : index
    %c0_41 = arith.constant 0 : index
    %159 = vector.load %arg4[%c16_40, %c0_41] : memref<64x64xf32, #tpu.memory_space<vmem>>, vector<16x64xf32>
    tpu.vector_store %arg4[%c16_40, %c0_41], %158 {strides = array<i32>} : memref<64x64xf32, #tpu.memory_space<vmem>>, vector<16x64xf32>,
    %160 = vector.extract_strided_slice %55 {offsets = [6, 0], sizes = [1, 64], strides = [1, 1]} : vector<16x64xf32> to vector<1x64xf32>
    %161 = vector.broadcast %160 : vector<1x64xf32> to vector<16x64xf32>
    %162 = arith.mulf %161, %61 : vector<16x64xf32>
    %163 = math.exp %162 : vector<16x64xf32>
    %164 = vector.extract_strided_slice %57 {offsets = [6, 0], sizes = [1, 16], strides = [1, 1]} : vector<16x16xf32> to vector<1x16xf32>
    %165 = vector.broadcast %164 : vector<1x16xf32> to vector<16x16xf32>
    %166 = arith.mulf %165, %62 : vector<16x16xf32>
    %cst_42 = arith.constant dense<0.000000e+00> : vector<16xf32>
    %167 = vector.multi_reduction <add>, %166, %cst_42 [1] : vector<16x16xf32> to vector<16xf32>
    %168 = vector.shape_cast %167 : vector<16xf32> to vector<16x1xf32>
    %169 = arith.mulf %163, %158 : vector<16x64xf32>
    %170 = vector.extract_strided_slice %60 {offsets = [6, 0], sizes = [1, 64], strides = [1, 1]} : vector<16x64xf32> to vector<1x64xf32>
    %171 = vector.broadcast %168 : vector<16x1xf32> to vector<16x64xf32>
    %172 = vector.broadcast %170 : vector<1x64xf32> to vector<16x64xf32>
    %173 = arith.mulf %171, %172 : vector<16x64xf32>
    %174 = arith.addf %169, %173 : vector<16x64xf32>
    %c32_43 = arith.constant 32 : index
    %c0_44 = arith.constant 0 : index
    %175 = vector.load %arg4[%c32_43, %c0_44] : memref<64x64xf32, #tpu.memory_space<vmem>>, vector<16x64xf32>
    tpu.vector_store %arg4[%c32_43, %c0_44], %174 {strides = array<i32>} : memref<64x64xf32, #tpu.memory_space<vmem>>, vector<16x64xf32>,
    %176 = vector.extract_strided_slice %55 {offsets = [7, 0], sizes = [1, 64], strides = [1, 1]} : vector<16x64xf32> to vector<1x64xf32>
    %177 = vector.broadcast %176 : vector<1x64xf32> to vector<16x64xf32>
    %178 = arith.mulf %177, %61 : vector<16x64xf32>
    %179 = math.exp %178 : vector<16x64xf32>
    %180 = vector.extract_strided_slice %57 {offsets = [7, 0], sizes = [1, 16], strides = [1, 1]} : vector<16x16xf32> to vector<1x16xf32>
    %181 = vector.broadcast %180 : vector<1x16xf32> to vector<16x16xf32>
    %182 = arith.mulf %181, %62 : vector<16x16xf32>
    %cst_45 = arith.constant dense<0.000000e+00> : vector<16xf32>
    %183 = vector.multi_reduction <add>, %182, %cst_45 [1] : vector<16x16xf32> to vector<16xf32>
    %184 = vector.shape_cast %183 : vector<16xf32> to vector<16x1xf32>
    %185 = arith.mulf %179, %174 : vector<16x64xf32>
    %186 = vector.extract_strided_slice %60 {offsets = [7, 0], sizes = [1, 64], strides = [1, 1]} : vector<16x64xf32> to vector<1x64xf32>
    %187 = vector.broadcast %184 : vector<16x1xf32> to vector<16x64xf32>
    %188 = vector.broadcast %186 : vector<1x64xf32> to vector<16x64xf32>
    %189 = arith.mulf %187, %188 : vector<16x64xf32>
    %190 = arith.addf %185, %189 : vector<16x64xf32>
    %c48 = arith.constant 48 : index
    %c0_46 = arith.constant 0 : index
    %191 = vector.load %arg4[%c48, %c0_46] : memref<64x64xf32, #tpu.memory_space<vmem>>, vector<16x64xf32>
    tpu.vector_store %arg4[%c48, %c0_46], %190 {strides = array<i32>} : memref<64x64xf32, #tpu.memory_space<vmem>>, vector<16x64xf32>,
    %192 = vector.extract_strided_slice %66 {offsets = [4, 0], sizes = [4, 64], strides = [1, 1]} : vector<16x64xf32> to vector<4x64xf32>
    %193 = arith.mulf %192, %64 : vector<4x64xf32>
    %c0_47 = arith.constant 0 : index
    %c0_48 = arith.constant 0 : index
    %194 = vector.load %arg4[%c0_47, %c0_48] : memref<64x64xf32, #tpu.memory_space<vmem>>, vector<64x64xf32>
    %cst_49 = arith.constant dense<0.000000e+00> : vector<4x64xf32>
    %195 = tpu.matmul %193, %194, %cst_49 {dimension_numbers = #tpu.dot_dimension_numbers<[1], [0], [0], [1], [0, 0, 1, 1], [], []>, precision = #tpu.contract_precision<fp32>} : vector<4x64xf32>, vector<64x64xf32>, vector<4x64xf32> -> vector<4x64xf32>
    %196 = vector.extract_strided_slice %40 {offsets = [4, 0], sizes = [4, 64], strides = [1, 1]} : vector<16x64xf32> to vector<4x64xf32>
    %197 = vector.extract_strided_slice %8 {offsets = [4, 0], sizes = [4, 64], strides = [1, 1]} : vector<16x64xf32> to vector<4x64xf32>
    %198 = vector.broadcast %63 : vector<1x64xf32> to vector<4x64xf32>
    %199 = arith.mulf %196, %198 : vector<4x64xf32>
    %200 = arith.addf %195, %199 : vector<4x64xf32>
    %cst_50 = arith.constant 0.000000e+00 : f32
    %201 = vector.broadcast %cst_50 : f32 to vector<4x64xf32>
    %202 = arith.subf %201, %197 : vector<4x64xf32>
    %203 = math.exp %202 : vector<4x64xf32>
    %cst_51 = arith.constant 1.000000e+00 : f32
    %204 = vector.broadcast %cst_51 : f32 to vector<4x64xf32>
    %205 = arith.addf %204, %203 : vector<4x64xf32>
    %cst_52 = arith.constant 1.000000e+00 : f32
    %206 = vector.broadcast %cst_52 : f32 to vector<4x64xf32>
    %207 = arith.divf %206, %205 : vector<4x64xf32>
    %208 = arith.mulf %197, %207 : vector<4x64xf32>
    %209 = arith.mulf %200, %208 : vector<4x64xf32>
    %c0_53 = arith.constant 0 : index
    %c0_54 = arith.constant 0 : index
    %210 = vector.load %arg5[%c0_53, %c0_54] : memref<8x64xf32, #tpu.memory_space<vmem>>, vector<4x64xf32>
    tpu.vector_store %arg5[%c0_53, %c0_54], %209 {strides = array<i32>} : memref<8x64xf32, #tpu.memory_space<vmem>>, vector<4x64xf32>,
    %cst_55 = arith.constant 0.000000e+00 : f32
    %211 = vector.broadcast %cst_55 : f32 to vector<16x64xf32>
    %212 = vector.extract_strided_slice %55 {offsets = [8, 0], sizes = [1, 64], strides = [1, 1]} : vector<16x64xf32> to vector<1x64xf32>
    %213 = vector.broadcast %212 : vector<1x64xf32> to vector<16x64xf32>
    %214 = arith.mulf %213, %61 : vector<16x64xf32>
    %215 = math.exp %214 : vector<16x64xf32>
    %216 = vector.extract_strided_slice %57 {offsets = [8, 0], sizes = [1, 16], strides = [1, 1]} : vector<16x16xf32> to vector<1x16xf32>
    %217 = vector.broadcast %216 : vector<1x16xf32> to vector<16x16xf32>
    %218 = arith.mulf %217, %62 : vector<16x16xf32>
    %cst_56 = arith.constant dense<0.000000e+00> : vector<16xf32>
    %219 = vector.multi_reduction <add>, %218, %cst_56 [1] : vector<16x16xf32> to vector<16xf32>
    %220 = vector.shape_cast %219 : vector<16xf32> to vector<16x1xf32>
    %221 = arith.mulf %215, %211 : vector<16x64xf32>
    %222 = vector.extract_strided_slice %60 {offsets = [8, 0], sizes = [1, 64], strides = [1, 1]} : vector<16x64xf32> to vector<1x64xf32>
    %223 = vector.broadcast %220 : vector<16x1xf32> to vector<16x64xf32>
    %224 = vector.broadcast %222 : vector<1x64xf32> to vector<16x64xf32>
    %225 = arith.mulf %223, %224 : vector<16x64xf32>
    %226 = arith.addf %221, %225 : vector<16x64xf32>
    %227 = vector.extract_strided_slice %55 {offsets = [9, 0], sizes = [1, 64], strides = [1, 1]} : vector<16x64xf32> to vector<1x64xf32>
    %228 = vector.broadcast %227 : vector<1x64xf32> to vector<16x64xf32>
    %229 = arith.mulf %228, %61 : vector<16x64xf32>
    %230 = math.exp %229 : vector<16x64xf32>
    %231 = vector.extract_strided_slice %57 {offsets = [9, 0], sizes = [1, 16], strides = [1, 1]} : vector<16x16xf32> to vector<1x16xf32>
    %232 = vector.broadcast %231 : vector<1x16xf32> to vector<16x16xf32>
    %233 = arith.mulf %232, %62 : vector<16x16xf32>
    %cst_57 = arith.constant dense<0.000000e+00> : vector<16xf32>
    %234 = vector.multi_reduction <add>, %233, %cst_57 [1] : vector<16x16xf32> to vector<16xf32>
    %235 = vector.shape_cast %234 : vector<16xf32> to vector<16x1xf32>
    %236 = arith.mulf %230, %226 : vector<16x64xf32>
    %237 = vector.extract_strided_slice %60 {offsets = [9, 0], sizes = [1, 64], strides = [1, 1]} : vector<16x64xf32> to vector<1x64xf32>
    %238 = vector.broadcast %235 : vector<16x1xf32> to vector<16x64xf32>
    %239 = vector.broadcast %237 : vector<1x64xf32> to vector<16x64xf32>
    %240 = arith.mulf %238, %239 : vector<16x64xf32>
    %241 = arith.addf %236, %240 : vector<16x64xf32>
    %242 = vector.extract_strided_slice %55 {offsets = [10, 0], sizes = [1, 64], strides = [1, 1]} : vector<16x64xf32> to vector<1x64xf32>
    %243 = vector.broadcast %242 : vector<1x64xf32> to vector<16x64xf32>
    %244 = arith.mulf %243, %61 : vector<16x64xf32>
    %245 = math.exp %244 : vector<16x64xf32>
    %246 = vector.extract_strided_slice %57 {offsets = [10, 0], sizes = [1, 16], strides = [1, 1]} : vector<16x16xf32> to vector<1x16xf32>
    %247 = vector.broadcast %246 : vector<1x16xf32> to vector<16x16xf32>
    %248 = arith.mulf %247, %62 : vector<16x16xf32>
    %cst_58 = arith.constant dense<0.000000e+00> : vector<16xf32>
    %249 = vector.multi_reduction <add>, %248, %cst_58 [1] : vector<16x16xf32> to vector<16xf32>
    %250 = vector.shape_cast %249 : vector<16xf32> to vector<16x1xf32>
    %251 = arith.mulf %245, %241 : vector<16x64xf32>
    %252 = vector.extract_strided_slice %60 {offsets = [10, 0], sizes = [1, 64], strides = [1, 1]} : vector<16x64xf32> to vector<1x64xf32>
    %253 = vector.broadcast %250 : vector<16x1xf32> to vector<16x64xf32>
    %254 = vector.broadcast %252 : vector<1x64xf32> to vector<16x64xf32>
    %255 = arith.mulf %253, %254 : vector<16x64xf32>
    %256 = arith.addf %251, %255 : vector<16x64xf32>
    %257 = vector.extract_strided_slice %55 {offsets = [11, 0], sizes = [1, 64], strides = [1, 1]} : vector<16x64xf32> to vector<1x64xf32>
    %258 = vector.broadcast %257 : vector<1x64xf32> to vector<16x64xf32>
    %259 = arith.mulf %258, %61 : vector<16x64xf32>
    %260 = math.exp %259 : vector<16x64xf32>
    %261 = vector.extract_strided_slice %57 {offsets = [11, 0], sizes = [1, 16], strides = [1, 1]} : vector<16x16xf32> to vector<1x16xf32>
    %262 = vector.broadcast %261 : vector<1x16xf32> to vector<16x16xf32>
    %263 = arith.mulf %262, %62 : vector<16x16xf32>
    %cst_59 = arith.constant dense<0.000000e+00> : vector<16xf32>
    %264 = vector.multi_reduction <add>, %263, %cst_59 [1] : vector<16x16xf32> to vector<16xf32>
    %265 = vector.shape_cast %264 : vector<16xf32> to vector<16x1xf32>
    %266 = arith.mulf %260, %256 : vector<16x64xf32>
    %267 = vector.extract_strided_slice %60 {offsets = [11, 0], sizes = [1, 64], strides = [1, 1]} : vector<16x64xf32> to vector<1x64xf32>
    %268 = vector.broadcast %265 : vector<16x1xf32> to vector<16x64xf32>
    %269 = vector.broadcast %267 : vector<1x64xf32> to vector<16x64xf32>
    %270 = arith.mulf %268, %269 : vector<16x64xf32>
    %271 = arith.addf %266, %270 : vector<16x64xf32>
    %272 = vector.extract_strided_slice %55 {offsets = [12, 0], sizes = [1, 64], strides = [1, 1]} : vector<16x64xf32> to vector<1x64xf32>
    %273 = vector.broadcast %272 : vector<1x64xf32> to vector<16x64xf32>
    %274 = arith.mulf %273, %61 : vector<16x64xf32>
    %275 = math.exp %274 : vector<16x64xf32>
    %276 = vector.extract_strided_slice %57 {offsets = [12, 0], sizes = [1, 16], strides = [1, 1]} : vector<16x16xf32> to vector<1x16xf32>
    %277 = vector.broadcast %276 : vector<1x16xf32> to vector<16x16xf32>
    %278 = arith.mulf %277, %62 : vector<16x16xf32>
    %cst_60 = arith.constant dense<0.000000e+00> : vector<16xf32>
    %279 = vector.multi_reduction <add>, %278, %cst_60 [1] : vector<16x16xf32> to vector<16xf32>
    %280 = vector.shape_cast %279 : vector<16xf32> to vector<16x1xf32>
    %281 = arith.mulf %275, %271 : vector<16x64xf32>
    %282 = vector.extract_strided_slice %60 {offsets = [12, 0], sizes = [1, 64], strides = [1, 1]} : vector<16x64xf32> to vector<1x64xf32>
    %283 = vector.broadcast %280 : vector<16x1xf32> to vector<16x64xf32>
    %284 = vector.broadcast %282 : vector<1x64xf32> to vector<16x64xf32>
    %285 = arith.mulf %283, %284 : vector<16x64xf32>
    %286 = arith.addf %281, %285 : vector<16x64xf32>
    %c0_61 = arith.constant 0 : index
    %c0_62 = arith.constant 0 : index
    %287 = vector.load %arg4[%c0_61, %c0_62] : memref<64x64xf32, #tpu.memory_space<vmem>>, vector<16x64xf32>
    tpu.vector_store %arg4[%c0_61, %c0_62], %286 {strides = array<i32>} : memref<64x64xf32, #tpu.memory_space<vmem>>, vector<16x64xf32>,
    %288 = vector.extract_strided_slice %55 {offsets = [13, 0], sizes = [1, 64], strides = [1, 1]} : vector<16x64xf32> to vector<1x64xf32>
    %289 = vector.broadcast %288 : vector<1x64xf32> to vector<16x64xf32>
    %290 = arith.mulf %289, %61 : vector<16x64xf32>
    %291 = math.exp %290 : vector<16x64xf32>
    %292 = vector.extract_strided_slice %57 {offsets = [13, 0], sizes = [1, 16], strides = [1, 1]} : vector<16x16xf32> to vector<1x16xf32>
    %293 = vector.broadcast %292 : vector<1x16xf32> to vector<16x16xf32>
    %294 = arith.mulf %293, %62 : vector<16x16xf32>
    %cst_63 = arith.constant dense<0.000000e+00> : vector<16xf32>
    %295 = vector.multi_reduction <add>, %294, %cst_63 [1] : vector<16x16xf32> to vector<16xf32>
    %296 = vector.shape_cast %295 : vector<16xf32> to vector<16x1xf32>
    %297 = arith.mulf %291, %286 : vector<16x64xf32>
    %298 = vector.extract_strided_slice %60 {offsets = [13, 0], sizes = [1, 64], strides = [1, 1]} : vector<16x64xf32> to vector<1x64xf32>
    %299 = vector.broadcast %296 : vector<16x1xf32> to vector<16x64xf32>
    %300 = vector.broadcast %298 : vector<1x64xf32> to vector<16x64xf32>
    %301 = arith.mulf %299, %300 : vector<16x64xf32>
    %302 = arith.addf %297, %301 : vector<16x64xf32>
    %c16_64 = arith.constant 16 : index
    %c0_65 = arith.constant 0 : index
    %303 = vector.load %arg4[%c16_64, %c0_65] : memref<64x64xf32, #tpu.memory_space<vmem>>, vector<16x64xf32>
    tpu.vector_store %arg4[%c16_64, %c0_65], %302 {strides = array<i32>} : memref<64x64xf32, #tpu.memory_space<vmem>>, vector<16x64xf32>,
    %304 = vector.extract_strided_slice %55 {offsets = [14, 0], sizes = [1, 64], strides = [1, 1]} : vector<16x64xf32> to vector<1x64xf32>
    %305 = vector.broadcast %304 : vector<1x64xf32> to vector<16x64xf32>
    %306 = arith.mulf %305, %61 : vector<16x64xf32>
    %307 = math.exp %306 : vector<16x64xf32>
    %308 = vector.extract_strided_slice %57 {offsets = [14, 0], sizes = [1, 16], strides = [1, 1]} : vector<16x16xf32> to vector<1x16xf32>
    %309 = vector.broadcast %308 : vector<1x16xf32> to vector<16x16xf32>
    %310 = arith.mulf %309, %62 : vector<16x16xf32>
    %cst_66 = arith.constant dense<0.000000e+00> : vector<16xf32>
    %311 = vector.multi_reduction <add>, %310, %cst_66 [1] : vector<16x16xf32> to vector<16xf32>
    %312 = vector.shape_cast %311 : vector<16xf32> to vector<16x1xf32>
    %313 = arith.mulf %307, %302 : vector<16x64xf32>
    %314 = vector.extract_strided_slice %60 {offsets = [14, 0], sizes = [1, 64], strides = [1, 1]} : vector<16x64xf32> to vector<1x64xf32>
    %315 = vector.broadcast %312 : vector<16x1xf32> to vector<16x64xf32>
    %316 = vector.broadcast %314 : vector<1x64xf32> to vector<16x64xf32>
    %317 = arith.mulf %315, %316 : vector<16x64xf32>
    %318 = arith.addf %313, %317 : vector<16x64xf32>
    %c32_67 = arith.constant 32 : index
    %c0_68 = arith.constant 0 : index
    %319 = vector.load %arg4[%c32_67, %c0_68] : memref<64x64xf32, #tpu.memory_space<vmem>>, vector<16x64xf32>
    tpu.vector_store %arg4[%c32_67, %c0_68], %318 {strides = array<i32>} : memref<64x64xf32, #tpu.memory_space<vmem>>, vector<16x64xf32>,
    %320 = vector.extract_strided_slice %55 {offsets = [15, 0], sizes = [1, 64], strides = [1, 1]} : vector<16x64xf32> to vector<1x64xf32>
    %321 = vector.broadcast %320 : vector<1x64xf32> to vector<16x64xf32>
    %322 = arith.mulf %321, %61 : vector<16x64xf32>
    %323 = math.exp %322 : vector<16x64xf32>
    %324 = vector.extract_strided_slice %57 {offsets = [15, 0], sizes = [1, 16], strides = [1, 1]} : vector<16x16xf32> to vector<1x16xf32>
    %325 = vector.broadcast %324 : vector<1x16xf32> to vector<16x16xf32>
    %326 = arith.mulf %325, %62 : vector<16x16xf32>
    %cst_69 = arith.constant dense<0.000000e+00> : vector<16xf32>
    %327 = vector.multi_reduction <add>, %326, %cst_69 [1] : vector<16x16xf32> to vector<16xf32>
    %328 = vector.shape_cast %327 : vector<16xf32> to vector<16x1xf32>
    %329 = arith.mulf %323, %318 : vector<16x64xf32>
    %330 = vector.extract_strided_slice %60 {offsets = [15, 0], sizes = [1, 64], strides = [1, 1]} : vector<16x64xf32> to vector<1x64xf32>
    %331 = vector.broadcast %328 : vector<16x1xf32> to vector<16x64xf32>
    %332 = vector.broadcast %330 : vector<1x64xf32> to vector<16x64xf32>
    %333 = arith.mulf %331, %332 : vector<16x64xf32>
    %334 = arith.addf %329, %333 : vector<16x64xf32>
    %c48_70 = arith.constant 48 : index
    %c0_71 = arith.constant 0 : index
    %335 = vector.load %arg4[%c48_70, %c0_71] : memref<64x64xf32, #tpu.memory_space<vmem>>, vector<16x64xf32>
    tpu.vector_store %arg4[%c48_70, %c0_71], %334 {strides = array<i32>} : memref<64x64xf32, #tpu.memory_space<vmem>>, vector<16x64xf32>,
    %336 = vector.extract_strided_slice %66 {offsets = [12, 0], sizes = [4, 64], strides = [1, 1]} : vector<16x64xf32> to vector<4x64xf32>
    %337 = arith.mulf %336, %64 : vector<4x64xf32>
    %c0_72 = arith.constant 0 : index
    %c0_73 = arith.constant 0 : index
    %338 = vector.load %arg4[%c0_72, %c0_73] : memref<64x64xf32, #tpu.memory_space<vmem>>, vector<64x64xf32>
    %cst_74 = arith.constant dense<0.000000e+00> : vector<4x64xf32>
    %339 = tpu.matmul %337, %338, %cst_74 {dimension_numbers = #tpu.dot_dimension_numbers<[1], [0], [0], [1], [0, 0, 1, 1], [], []>, precision = #tpu.contract_precision<fp32>} : vector<4x64xf32>, vector<64x64xf32>, vector<4x64xf32> -> vector<4x64xf32>
    %340 = vector.extract_strided_slice %40 {offsets = [12, 0], sizes = [4, 64], strides = [1, 1]} : vector<16x64xf32> to vector<4x64xf32>
    %341 = vector.extract_strided_slice %8 {offsets = [12, 0], sizes = [4, 64], strides = [1, 1]} : vector<16x64xf32> to vector<4x64xf32>
    %342 = vector.broadcast %63 : vector<1x64xf32> to vector<4x64xf32>
    %343 = arith.mulf %340, %342 : vector<4x64xf32>
    %344 = arith.addf %339, %343 : vector<4x64xf32>
    %cst_75 = arith.constant 0.000000e+00 : f32
    %345 = vector.broadcast %cst_75 : f32 to vector<4x64xf32>
    %346 = arith.subf %345, %341 : vector<4x64xf32>
    %347 = math.exp %346 : vector<4x64xf32>
    %cst_76 = arith.constant 1.000000e+00 : f32
    %348 = vector.broadcast %cst_76 : f32 to vector<4x64xf32>
    %349 = arith.addf %348, %347 : vector<4x64xf32>
    %cst_77 = arith.constant 1.000000e+00 : f32
    %350 = vector.broadcast %cst_77 : f32 to vector<4x64xf32>
    %351 = arith.divf %350, %349 : vector<4x64xf32>
    %352 = arith.mulf %341, %351 : vector<4x64xf32>
    %353 = arith.mulf %344, %352 : vector<4x64xf32>
    %c4 = arith.constant 4 : index
    %c0_78 = arith.constant 0 : index
    %354 = vector.load %arg5[%c4, %c0_78] : memref<8x64xf32, #tpu.memory_space<vmem>>, vector<4x64xf32>
    tpu.vector_store %arg5[%c4, %c0_78], %353 {strides = array<i32>} : memref<8x64xf32, #tpu.memory_space<vmem>>, vector<4x64xf32>,
    %c0_79 = arith.constant 0 : index
    %c0_80 = arith.constant 0 : index
    %355 = vector.load %arg5[%c0_79, %c0_80] : memref<8x64xf32, #tpu.memory_space<vmem>>, vector<8x64xf32>
    %c424 = arith.constant 424 : index
    %c0_81 = arith.constant 0 : index
    %356 = vector.load %arg1[%c424, %c0_81] : memref<488x64xf32, #tpu.memory_space<vmem>>, vector<64x4xf32>
    %cst_82 = arith.constant dense<0.000000e+00> : vector<8x4xf32>
    %357 = tpu.matmul %355, %356, %cst_82 {dimension_numbers = #tpu.dot_dimension_numbers<[1], [0], [0], [1], [0, 0, 1, 1], [], []>, precision = #tpu.contract_precision<fp32>} : vector<8x64xf32>, vector<64x4xf32>, vector<8x4xf32> -> vector<8x4xf32>
    %c16_83 = arith.constant 16 : index
    %c0_84 = arith.constant 0 : index
    %358 = vector.load %arg2[%c16_83, %c0_84] : memref<32x16xf32, #tpu.memory_space<vmem>>, vector<8x4xf32>
    %359 = arith.mulf %357, %358 : vector<8x4xf32>
    %c24 = arith.constant 24 : index
    %c0_85 = arith.constant 0 : index
    %360 = vector.load %arg2[%c24, %c0_85] : memref<32x16xf32, #tpu.memory_space<vmem>>, vector<8x4xf32>
    %361 = arith.addf %359, %360 : vector<8x4xf32>
    %c0_86 = arith.constant 0 : index
    %c0_87 = arith.constant 0 : index
    %362 = vector.load %arg3[%c0_86, %c0_87] : memref<8x4xf32, #tpu.memory_space<vmem>>, vector<8x4xf32>
    tpu.vector_store %arg3[%c0_86, %c0_87], %361 {strides = array<i32>} : memref<8x4xf32, #tpu.memory_space<vmem>>, vector<8x4xf32>,
    return
  }
  func.func @transform_0(%arg0: i32) -> (i32, i32) {
    %c0_i32 = arith.constant 0 : i32
    %c0_i32_0 = arith.constant 0 : i32
    %c0_i32_1 = arith.constant 0 : i32
    return %c0_i32, %c0_i32_0 : i32, i32
  }
  func.func @transform_1(%arg0: i32) -> (i32, i32) {
    %c0_i32 = arith.constant 0 : i32
    %c0_i32_0 = arith.constant 0 : i32
    %c0_i32_1 = arith.constant 0 : i32
    return %c0_i32, %c0_i32_0 : i32, i32
  }
  func.func @transform_2(%arg0: i32) -> (i32, i32) {
    %c0_i32 = arith.constant 0 : i32
    %c0_i32_0 = arith.constant 0 : i32
    %c0_i32_1 = arith.constant 0 : i32
    return %c0_i32, %c0_i32_0 : i32, i32
  }
}

</mosaic_0001>

<bundles_post_ra>
// kernel: tpu_custom_call.1
= control target key start
LH: loop header
LB: loop body
LE: loop exit
PB: predicated region body
PF: predicated region fallthrough
CT: control target
= control target key end

     0   :  { %vm17_vm0 = vcmask 130048   ;;  %vm530_vm1 = vcmask 261120   ;;  %vm2360_vm2 = vcmask 523264   ;;  %vm9277_vm3 = vmmov 0   ;;  %s10811_s0 = inlined_call_operand.vmem [shape: f32[488,64], index: 0, kind: input, shape index: {}]   ;;  %s10812_s1 = inlined_call_operand.vmem [shape: f32[32,16], index: 1, kind: input, shape index: {}]   ;;  %s10813_s2 = inlined_call_operand.vmem [shape: f32[8,4], index: 2, kind: output, shape index: {}]  }
   0x1   :  { %v13_v0 = vld [vmem:[%s10811_s0] sm:$0xff]  ;;  %v14_v1 = vld [vmem:[%s10811_s0 + $0x8] sm:$0xff]  ;;  %v528_v43 = vld [vmem:[%s10811_s0 + $0x30] sm:$0xff]  ;;  %vm5495_vm4 = vcmask 519168   ;;  %vm6880_vm5 = vcmask 31744  }
   0x2   :  { %v11_v2 = vld [vmem:[%s10812_s1] sm:$0xff]  ;;  %v25_v3 = vand.u32 4294901760, %v13_v0  ;;  %v28_v4 = vand.u32 4294901760, %v14_v1  ;;  %v12_v6 = vld [vmem:[%s10812_s1 + $0x8] sm:$0xff]  ;;  %v529_v44 = vld [vmem:[%s10811_s0 + $0x38] sm:$0xff]  ;;  %v544_v47 = vand.u32 4294901760, %v528_v43 }
   0x3   :  { %v19_v5 = vsel %vm17_vm0, %v11_v2, 0  ;;  %v22_v8 = vsel %vm17_vm0, %v12_v6, 0  ;;  %v526_v30 = vld [vmem:[%s10811_s0 + $0x20] sm:$0xff]  ;;  %v527_v31 = vld [vmem:[%s10811_s0 + $0x28] sm:$0xff]  ;;  %v1067_v45 = vld [vmem:[%s10811_s0 + $0x50] sm:$0xff]  ;;  %v547_v48 = vand.u32 4294901760, %v529_v44 }
   0x4   :  { %v91_v7 = vand.u32 4294901760, %v19_v5  ;;  %v8377_v9 = vpack.c.bf16 %v28_v4, %v25_v3  ;;  %v101_v10 = vand.u32 4294901760, %v22_v8  ;;  %v113_v11 = vsub.f32 %v13_v0, %v25_v3  ;;  %v1065_v32 = vld [vmem:[%s10811_s0 + $0x40] sm:$0xff]  ;;  %v1066_v35 = vld [vmem:[%s10811_s0 + $0x48] sm:$0xff]  ;;  %v1068_v49 = vld [vmem:[%s10811_s0 + $0x58] sm:$0xff] }
   0x5   :  { %v120_v12 = vsub.f32 %v14_v1, %v28_v4  ;;  %v538_v33 = vand.u32 4294901760, %v526_v30  ;;  %v541_v34 = vand.u32 4294901760, %v527_v31  ;;  %v1070_v36 = vand.u32 4294901760, %v1065_v32 }
   0x6   :  { %v92_v13 = vsub.f32 %v19_v5, %v91_v7  ;;  %8378 = vmatprep.subr.bf16.mxu0 %v8377_v9  ;;  %v102_v14 = vsub.f32 %v22_v8, %v101_v10  ;;  %v114_v15 = vand.u32 4294901760, %v113_v11  ;;  %v1073_v37 = vand.u32 4294901760, %v1066_v35 }
   0x7   :  { %v121_v16 = vand.u32 4294901760, %v120_v12  ;;  %8380 = vmatpush3.bf16.msra.mxu0 %v8377_v9  ;;  %v8385_v28 = vpack.c.bf16 %v120_v12, %v113_v11  ;;  %v9320_v38 = vpack.c.bf16 %v541_v34, %v538_v33  ;;  %v628_v39 = vsub.f32 %v526_v30, %v538_v33  ;;  %v16_v30 = vld [vmem:[%s10811_s0 + $0x18] sm:$0xff] }
   0x8   :  { %v93_v17 = vand.u32 4294901760, %v92_v13  ;;  %v103_v18 = vand.u32 4294901760, %v102_v14  ;;  %v115_v19 = vsub.f32 %v113_v11, %v114_v15  ;;  %v635_v40 = vsub.f32 %v527_v31, %v541_v34  ;;  %v15_v31 = vld [vmem:[%s10811_s0 + $0x10] sm:$0xff] }
   0x9   :  { %v122_v20 = vsub.f32 %v120_v12, %v121_v16  ;;  %v8393_v29 = vpack.c.bf16 %v121_v16, %v114_v15  ;;  %v1160_v41 = vsub.f32 %v1065_v32, %v1070_v36  ;;  %v9322_v42 = vpack.c.bf16 %v1073_v37, %v1070_v36  ;;  %8402 = vmatprep.subr.bf16.mxu1 %v9320_v38 }
   0xa   :  { %v94_v21 = vsub.f32 %v92_v13, %v93_v17  ;;  %v104_v22 = vsub.f32 %v102_v14, %v103_v18  ;;  %v116_v23 = vand.u32 4294901760, %v115_v19  ;;  %v1167_v46 = vsub.f32 %v1066_v35, %v1073_v37  ;;  %8404 = vmatpush3.bf16.msra.mxu1 %v9320_v38 }
   0xb   :  { %v123_v24 = vand.u32 4294901760, %v122_v20  ;;  %v1076_v50 = vand.u32 4294901760, %v1067_v45  ;;  %v629_v51 = vand.u32 4294901760, %v628_v39  ;;  %v1079_v52 = vand.u32 4294901760, %v1068_v49 }
   0xc   :  { %v95_v25 = vand.u32 4294901760, %v94_v21  ;;  %v105_v26 = vand.u32 4294901760, %v104_v22  ;;  %v636_v53 = vand.u32 4294901760, %v635_v40  ;;  %v1161_v54 = vand.u32 4294901760, %v1160_v41 }
   0xd   :  { %v8381_v27 = vpack.c.bf16 %v123_v24, %v116_v23  ;;  %v1168_v55 = vand.u32 4294901760, %v1167_v46  ;;  %v9340_v56 = vpack.c.bf16 %v547_v48, %v544_v47  ;;  %v630_v57 = vsub.f32 %v628_v39, %v629_v51 }
   0xe   :  { %7403 = vmatprep.mubr.f32.mxu0 %v95_v25  ;;  %v9342_v58 = vpack.c.bf16 %v1079_v52, %v1076_v50  ;;  %v637_v59 = vsub.f32 %v635_v40, %v636_v53  ;;  %v1162_v60 = vsub.f32 %v1160_v41, %v1161_v54  ;;  %v642_v63 = vsub.f32 %v528_v43, %v544_v47 }
   0xf   :  { %7404 = vmatmul.mubr.f32.vlgmr.msra.gmra.mrb[0].mxu0 %v105_v26  ;;  %8382 = vmatprep.subr.bf16.mxu0 %v8381_v27  ;;  %v1169_v61 = vsub.f32 %v1167_v46, %v1168_v55  ;;  %v631_v62 = vand.u32 4294901760, %v630_v57  ;;  %v649_v0 = vsub.f32 %v529_v44, %v547_v48  ;;  %v1174_v1 = vsub.f32 %v1067_v45, %v1076_v50 }
  0x10   :  { %8384 = vmatpush3.bf16.msra.mxu0 %v8381_v27  ;;  %7410 = vmatprep.mubr.f32.mxu0 %v91_v7  ;;  %v638_v2 = vand.u32 4294901760, %v637_v59  ;;  %v1163_v3 = vand.u32 4294901760, %v1162_v60  ;;  %v1181_v5 = vsub.f32 %v1068_v49, %v1079_v52  ;;  %v643_v6 = vand.u32 4294901760, %v642_v63  ;;  %v1607_v59 = vld [vmem:[%s10811_s0 + $0x78] sm:$0xff] }
  0x11   :  { %8386 = vmatprep.subr.bf16.mxu0 %v8385_v28  ;;  %8406 = vmatprep.subr.bf16.mxu1 %v9340_v56  ;;  %v1170_v4 = vand.u32 4294901760, %v1169_v61  ;;  %v1175_v8 = vand.u32 4294901760, %v1174_v1  ;;  %v8417_v22 = vpack.c.bf16 %v635_v40, %v628_v39  ;;  %v8465_v23 = vpack.c.bf16 %v1167_v46, %v1160_v41  ;;  %v1608_v61 = vld [vmem:[%s10811_s0 + $0x80] sm:$0xff] }
  0x12   :  { %8408 = vmatpush3.bf16.msra.mxu1 %v9340_v56  ;;  %v1182_v11 = vand.u32 4294901760, %v1181_v5  ;;  %v644_v12 = vsub.f32 %v642_v63, %v643_v6  ;;  %v8421_v24 = vpack.c.bf16 %v649_v0, %v642_v63  ;;  %v8469_v25 = vpack.c.bf16 %v1181_v5, %v1174_v1 }
  0x13   :  { %v8433_v26 = vpack.c.bf16 %v636_v53, %v629_v51  ;;  %v9348_v27 = vpack.c.bf16 %v1168_v55, %v1161_v54  ;;  %v1605_v55 = vld [vmem:[%s10811_s0 + $0x68] sm:$0xff]  ;;  %v1620_v63 = vsel %vm17_vm0, %v1607_v59, 0 }
  0x14   :  { %v1183_v15 = vsub.f32 %v1181_v5, %v1182_v11  ;;  %v645_v16 = vand.u32 4294901760, %v644_v12  ;;  %v1614_v57 = vsel %vm17_vm0, %v1605_v55, 0  ;;  %v2969_v59 = vld [vmem:[%s10811_s0 + $0x108] sm:$0xff] }
  0x15   :  { %v9424_v60 = vand.u32 4294901760, %v1614_v57 }
  0x16   :  { %v1184_v19 = vand.u32 4294901760, %v1183_v15 }
  0x17   :  { %7411 = vmatmul.mubr.f32.vlgmr.msra.gmra.mrb[0].mxu0 %v101_v10 }
  0x18   :  { %8388 = vmatpush3.bf16.msra.mxu0 %v8385_v28  ;;  %7417 = vmatprep.mubr.f32.mxu0 %v92_v13 }
  0x19   :  { %8390 = vmatprep.subr.bf16.mxu0 %v8377_v9 }
  0x1f   :  { %7418 = vmatmul.mubr.f32.vlgmr.msra.gmra.mrb[0].mxu0 %v102_v14  ;;  %v1176_v14 = vsub.f32 %v1174_v1, %v1175_v8  ;;  %v1609_v1 = vld [vmem:[%s10811_s0 + $0x88] sm:$0xff] }
  0x20   :  { %8392 = vmatpush3.bf16.msra.mxu0 %v8377_v9  ;;  %7424 = vmatprep.mubr.f32.mxu0 %v93_v17 }
  0x21   :  { %8394 = vmatprep.subr.bf16.mxu0 %v8393_v29 }
  0x27   :  { %7425 = vmatmul.mubr.f32.vlgmr.msra.gmra.mrb[0].mxu0 %v103_v18  ;;  %v1177_v18 = vand.u32 4294901760, %v1176_v14 }
  0x28   :  { %8396 = vmatpush3.bf16.msra.mxu0 %v8393_v29  ;;  %7431 = vmatprep.mubr.f32.mxu0 %v91_v7  ;;  %v9352_v29 = vpack.c.bf16 %v1182_v11, %v1175_v8 }
  0x29   :  { %8398 = vmatprep.subr.bf16.mxu0 %v8377_v9  ;;  %v8461_v21 = vpack.c.bf16 %v1184_v19, %v1177_v18 }
  0x2f   :  { %7432 = vmatmul.mubr.f32.vlgmr.msra.gmra.mrb[0].mxu0 %v101_v10 }
  0x30   :  { %8400 = vmatpush3.bf16.msra.mxu0 %v8377_v9  ;;  %7438 = vmatprep.mubr.f32.mxu0 %v91_v7  ;;  %v650_v7 = vand.u32 4294901760, %v649_v0  ;;  %v8409_v9 = vpack.c.bf16 %v638_v2, %v631_v62  ;;  %v9437_v2 = vsub.f32 %v1614_v57, %v9424_v60  ;;  %v2347_v57 = vld [vmem:[%s10811_s0 + $0xa0] sm:$0xff] }
  0x31   :  { %8450 = vmatprep.subr.bf16.mxu0 %v9322_v42 }
  0x32   :  { %v651_v13 = vsub.f32 %v649_v0, %v650_v7  ;;  %8410 = vmatprep.subr.bf16.mxu1 %v8409_v9  ;;  %v9350_v28 = vpack.c.bf16 %v650_v7, %v643_v6  ;;  %v1623_v0 = vsel %vm17_vm0, %v1608_v61, 0  ;;  %v1626_v6 = vsel %vm17_vm0, %v1609_v1, 0 }
  0x33   :  { %v9444_v5 = vand.u32 4294901760, %v1623_v0  ;;  %v1707_v7 = vand.u32 4294901760, %v9437_v2  ;;  %v2368_v61 = vand.u32 4294901760, %v2347_v57 }
  0x34   :  { %v652_v17 = vand.u32 4294901760, %v651_v13 }
  0x35   :  { %v9455_v11 = vsub.f32 %v1623_v0, %v9444_v5  ;;  %v2986_v0 = vand.u32 4294901760, %v2969_v59 }
  0x36   :  { %v8413_v20 = vpack.c.bf16 %v652_v17, %v645_v16  ;;  %v1708_v16 = vsub.f32 %v9437_v2, %v1707_v7 }
  0x37   :  { %7439 = vmatmul.mubr.f32.vlgmr.msra.gmra.mrb[0].mxu0 %v101_v10  ;;  %v8457_v10 = vpack.c.bf16 %v1170_v4, %v1163_v3  ;;  %v9439_v3 = vand.u32 4294901760, %v1620_v63 }
  0x38   :  { %8452 = vmatpush3.bf16.msra.mxu0 %v9322_v42 }
  0x39   :  { %8454 = vmatprep.subr.bf16.mxu0 %v9342_v58  ;;  %v9449_v8 = vsub.f32 %v1620_v63, %v9439_v3  ;;  %v2970_v63 = vld [vmem:[%s10811_s0 + $0x110] sm:$0xff] }
  0x3a   :  { %v2989_v1 = vand.u32 4294901760, %v2970_v63 }
  0x3b   :  { %v1727_v19 = vand.u32 4294901760, %v9449_v8 }
  0x3c   :  { %8456 = vmatpush3.bf16.msra.mxu0 %v9342_v58 }
  0x3d   :  { %8458 = vmatprep.subr.bf16.mxu0 %v8457_v10 }
 0x10a   :  { %v7440_v32 = vpop.f32.mrb[0].mxu0 }
 0x10b   :  { %v9049_v33 = vadd.f32 %v7440_v32, %v16_v30  ;;  %v516_v34 = vpop.f32.mrb[1].mxu0 }
 0x10c   :  { %v9050_v35 = vadd.f32 %v516_v34, %v15_v31 }
 0x10d   :  { %v535_v36 = vsel %vm530_vm1, %v9049_v33, 0 }
 0x10e   :  { %v9360_v37 = vand.u32 4294901760, %v535_v36  ;;  %v532_v39 = vsel %vm530_vm1, %v9050_v35, 0 }
 0x10f   :  { %v9362_v40 = vand.u32 4294901760, %v532_v39 }
 0x110   :  { %v617_v41 = vsub.f32 %v535_v36, %v9360_v37 }
 0x111   :  { %v607_v43 = vsub.f32 %v532_v39, %v9362_v40 }
 0x112   :  { %v618_v44 = vand.u32 4294901760, %v617_v41 }
 0x113   :  { %v608_v45 = vand.u32 4294901760, %v607_v43 }
 0x114   :  { %v619_v46 = vsub.f32 %v617_v41, %v618_v44 }
 0x115   :  { %v609_v47 = vsub.f32 %v607_v43, %v608_v45 }
 0x116   :  { %v620_v49 = vand.u32 4294901760, %v619_v46  ;;  %v2965_v46 = vld [vmem:[%s10811_s0 + $0xe8] sm:$0xff] }
 0x117   :  { %v610_v48 = vand.u32 4294901760, %v609_v47  ;;  %v2966_v47 = vld [vmem:[%s10811_s0 + $0xf0] sm:$0xff] }
 0x119   :  { %7449 = vmatprep.mubr.f32.mxu1 %v610_v48  ;;  %7515 = vmatprep.mubr.f32.mxu0 %v610_v48  ;;  %v2974_v48 = vand.u32 4294901760, %v2965_v46 }
 0x11a   :  { %7450 = vmatmul.mubr.f32.vlgmr.msra.gmra.mrb[0].mxu1 %v620_v49  ;;  %7516 = vmatmul.mubr.f32.vlgmr.msra.gmra.mrb[2].mxu0 %v620_v49  ;;  %v2977_v49 = vand.u32 4294901760, %v2966_v47 }
 0x11b   :  { %8412 = vmatpush3.bf16.msra.mxu1 %v8409_v9  ;;  %7460 = vmatprep.mubr.f32.mxu1 %v9362_v40  ;;  %v9451_v9 = vand.u32 4294901760, %v1626_v6 }
 0x11c   :  { %8460 = vmatpush3.bf16.msra.mxu0 %v8457_v10  ;;  %7526 = vmatprep.mubr.f32.mxu0 %v9362_v40 }
 0x11d   :  { %8414 = vmatprep.subr.bf16.mxu1 %v8413_v20  ;;  %8462 = vmatprep.subr.bf16.mxu0 %v8461_v21 }
 0x11f   :  { %8416 = vmatpush3.bf16.msra.mxu1 %v8413_v20  ;;  %v1746_v20 = vsub.f32 %v1626_v6, %v9451_v9  ;;  %v2350_v6 = vld [vmem:[%s10811_s0 + $0xb8] sm:$0xff] }
 0x120   :  { %8464 = vmatpush3.bf16.msra.mxu0 %v8461_v21  ;;  %8418 = vmatprep.subr.bf16.mxu1 %v8417_v22 }
 0x121   :  { %8466 = vmatprep.subr.bf16.mxu0 %v8465_v23  ;;  %v1747_v31 = vand.u32 4294901760, %v1746_v20 }
 0x122   :  { %7461 = vmatmul.mubr.f32.vlgmr.msra.gmra.mrb[0].mxu1 %v9360_v37 }
 0x123   :  { %7527 = vmatmul.mubr.f32.vlgmr.msra.gmra.mrb[2].mxu0 %v9360_v37  ;;  %8420 = vmatpush3.bf16.msra.mxu1 %v8417_v22 }
 0x124   :  { %7471 = vmatprep.mubr.f32.mxu1 %v607_v43  ;;  %8468 = vmatpush3.bf16.msra.mxu0 %v8465_v23  ;;  %v1737_v23 = vand.u32 4294901760, %v9455_v11 }
 0x125   :  { %7537 = vmatprep.mubr.f32.mxu0 %v607_v43  ;;  %8422 = vmatprep.subr.bf16.mxu1 %v8421_v24 }
 0x126   :  { %8470 = vmatprep.subr.bf16.mxu0 %v8469_v25  ;;  %v1738_v34 = vsub.f32 %v9455_v11, %v1737_v23 }
 0x127   :  { %8424 = vmatpush3.bf16.msra.mxu1 %v8421_v24 }
 0x128   :  { %8472 = vmatpush3.bf16.msra.mxu0 %v8469_v25  ;;  %8426 = vmatprep.subr.bf16.mxu1 %v9320_v38  ;;  %v1739_v43 = vand.u32 4294901760, %v1738_v34  ;;  %v2354_v34 = vld [vmem:[%s10811_s0 + $0xd8] sm:$0xff] }
 0x129   :  { %8474 = vmatprep.subr.bf16.mxu0 %v9322_v42 }
 0x12a   :  { %7472 = vmatmul.mubr.f32.vlgmr.msra.gmra.mrb[0].mxu1 %v617_v41 }
 0x12b   :  { %7538 = vmatmul.mubr.f32.vlgmr.msra.gmra.mrb[2].mxu0 %v617_v41  ;;  %8428 = vmatpush3.bf16.msra.mxu1 %v9320_v38  ;;  %v1748_v41 = vsub.f32 %v1746_v20, %v1747_v31 }
 0x12c   :  { %7482 = vmatprep.mubr.f32.mxu1 %v608_v45  ;;  %8476 = vmatpush3.bf16.msra.mxu0 %v9322_v42 }
 0x12d   :  { %7548 = vmatprep.mubr.f32.mxu0 %v608_v45  ;;  %8430 = vmatprep.subr.bf16.mxu1 %v9340_v56  ;;  %v1749_v45 = vand.u32 4294901760, %v1748_v41 }
 0x12e   :  { %8478 = vmatprep.subr.bf16.mxu0 %v9342_v58 }
 0x12f   :  { %8432 = vmatpush3.bf16.msra.mxu1 %v9340_v56 }
 0x130   :  { %8480 = vmatpush3.bf16.msra.mxu0 %v9342_v58  ;;  %8434 = vmatprep.subr.bf16.mxu1 %v8433_v26 }
 0x131   :  { %8482 = vmatprep.subr.bf16.mxu0 %v9348_v27 }
 0x132   :  { %7483 = vmatmul.mubr.f32.vlgmr.msra.gmra.mrb[0].mxu1 %v618_v44 }
 0x133   :  { %7549 = vmatmul.mubr.f32.vlgmr.msra.gmra.mrb[2].mxu0 %v618_v44  ;;  %8436 = vmatpush3.bf16.msra.mxu1 %v8433_v26 }
 0x134   :  { %7493 = vmatprep.mubr.f32.mxu1 %v9362_v40  ;;  %8484 = vmatpush3.bf16.msra.mxu0 %v9348_v27  ;;  %v1709_v27 = vand.u32 4294901760, %v1708_v16 }
 0x135   :  { %7559 = vmatprep.mubr.f32.mxu0 %v9362_v40  ;;  %8438 = vmatprep.subr.bf16.mxu1 %v9350_v28 }
 0x136   :  { %8486 = vmatprep.subr.bf16.mxu0 %v9352_v29 }
 0x137   :  { %8440 = vmatpush3.bf16.msra.mxu1 %v9350_v28 }
 0x138   :  { %8488 = vmatpush3.bf16.msra.mxu0 %v9352_v29  ;;  %8442 = vmatprep.subr.bf16.mxu1 %v9320_v38  ;;  %v1728_v29 = vsub.f32 %v9449_v8, %v1727_v19 }
 0x139   :  { %8490 = vmatprep.subr.bf16.mxu0 %v9322_v42 }
 0x13a   :  { %7494 = vmatmul.mubr.f32.vlgmr.msra.gmra.mrb[0].mxu1 %v9360_v37  ;;  %v1729_v39 = vand.u32 4294901760, %v1728_v29 }
 0x13b   :  { %7560 = vmatmul.mubr.f32.vlgmr.msra.gmra.mrb[2].mxu0 %v9360_v37  ;;  %8444 = vmatpush3.bf16.msra.mxu1 %v9320_v38  ;;  %v1604_v38 = vld [vmem:[%s10811_s0 + $0x60] sm:$0xff] }
 0x13c   :  { %7504 = vmatprep.mubr.f32.mxu1 %v9362_v40  ;;  %8492 = vmatpush3.bf16.msra.mxu0 %v9322_v42  ;;  %v1611_v42 = vsel %vm17_vm0, %v1604_v38, 0  ;;  %v9511_v38 = vsub.f32 %v2965_v46, %v2974_v48 }
 0x13d   :  { %7570 = vmatprep.mubr.f32.mxu0 %v9362_v40  ;;  %8446 = vmatprep.subr.bf16.mxu1 %v9340_v56  ;;  %v9404_v50 = vand.u32 4294901760, %v1611_v42 }
 0x13e   :  { %8494 = vmatprep.subr.bf16.mxu0 %v9342_v58 }
 0x13f   :  { %8448 = vmatpush3.bf16.msra.mxu1 %v9340_v56  ;;  %v9407_v51 = vsub.f32 %v1611_v42, %v9404_v50  ;;  %v1606_v56 = vld [vmem:[%s10811_s0 + $0x70] sm:$0xff]  ;;  %v9513_v42 = vsub.f32 %v2966_v47, %v2977_v49 }
 0x140   :  { %8496 = vmatpush3.bf16.msra.mxu0 %v9342_v58  ;;  %v1617_v58 = vsel %vm17_vm0, %v1606_v56, 0 }
 0x141   :  { %v1697_v52 = vand.u32 4294901760, %v9407_v51  ;;  %v9429_v62 = vand.u32 4294901760, %v1617_v58 }
 0x142   :  { %7505 = vmatmul.mubr.f32.vlgmr.msra.gmra.mrb[0].mxu1 %v9360_v37 }
 0x143   :  { %7571 = vmatmul.mubr.f32.vlgmr.msra.gmra.mrb[2].mxu0 %v9360_v37  ;;  %v1698_v53 = vsub.f32 %v9407_v51, %v1697_v52  ;;  %v9442_v4 = vsub.f32 %v1617_v58, %v9429_v62  ;;  %v2348_v58 = vld [vmem:[%s10811_s0 + $0xa8] sm:$0xff] }
 0x145   :  { %v1699_v54 = vand.u32 4294901760, %v1698_v53  ;;  %v1717_v10 = vand.u32 4294901760, %v9442_v4 }
 0x147   :  { %7577 = vmatprep.mubr.f32.mxu1 %v1699_v54  ;;  %v1718_v22 = vsub.f32 %v9442_v4, %v1717_v10 }
 0x149   :  { %v1719_v32 = vand.u32 4294901760, %v1718_v22  ;;  %v2352_v22 = vld [vmem:[%s10811_s0 + $0xc8] sm:$0xff] }
 0x14a   :  { %v2383_v29 = vand.u32 4294901760, %v2352_v22 }
 0x215   :  { %v9457_v12 = vpop.f32.mrb[0].mxu1 }
 0x216   :  { %v1632_v13 = vand.u32 4294901760, %v9457_v12  ;;  %v9460_v14 = vpop.f32.mrb[2].mxu0  ;;  %v9462_v15 = vpop.f32.mrb[1].mxu1 }
 0x217   :  { %v1629_v17 = vand.u32 4294901760, %v9462_v15  ;;  %v9468_v18 = vpop.f32.mrb[3].mxu0 }
 0x218   :  { %v1764_v21 = vsub.f32 %v9457_v12, %v1632_v13 }
 0x219   :  { %v8497_v24 = vpack.c.bf16 %v1632_v13, %v1629_v17  ;;  %v1757_v25 = vsub.f32 %v9462_v15, %v1629_v17 }
 0x21a   :  { %v1765_v26 = vand.u32 4294901760, %v1764_v21 }
 0x21b   :  { %v1758_v28 = vand.u32 4294901760, %v1757_v25  ;;  %8498 = vmatprep.subr.bf16.mxu1 %v8497_v24  ;;  %v8505_v30 = vpack.c.bf16 %v1764_v21, %v1757_v25 }
 0x21c   :  { %8500 = vmatpush3.bf16.msra.mxu1 %v8497_v24  ;;  %v1766_v33 = vsub.f32 %v1764_v21, %v1765_v26  ;;  %v2351_v21 = vld [vmem:[%s10811_s0 + $0xc0] sm:$0xff] }
 0x21d   :  { %v1759_v35 = vsub.f32 %v1757_v25, %v1758_v28  ;;  %v8513_v36 = vpack.c.bf16 %v1765_v26, %v1758_v28  ;;  %v2380_v25 = vand.u32 4294901760, %v2351_v21  ;;  %v9580_v26 = vpack.c.bf16 %v2977_v49, %v2974_v48 }
 0x21e   :  { %v1767_v37 = vand.u32 4294901760, %v1766_v33  ;;  %v2353_v33 = vld [vmem:[%s10811_s0 + $0xd0] sm:$0xff] }
 0x21f   :  { %7578 = vmatmul.mubr.f32.vlgmr.msra.gmra.mrb[2].mxu1 %v1709_v27  ;;  %v1760_v40 = vand.u32 4294901760, %v1759_v35  ;;  %v2386_v35 = vand.u32 4294901760, %v2353_v33 }
 0x220   :  { %7580 = vmatprep.mubr.f32.mxu1 %v1719_v32  ;;  %v9587_v32 = vpack.c.bf16 %v2383_v29, %v2380_v25 }
 0x221   :  { %v8501_v44 = vpack.c.bf16 %v1767_v37, %v1760_v40 }
 0x223   :  { %7581 = vmatmul.mubr.f32.gmra.mrb[4].mxu1 %v1729_v39  ;;  %8502 = vmatprep.subr.bf16.mxu1 %v8501_v44 }
 0x224   :  { %8504 = vmatpush3.bf16.msra.mxu1 %v8501_v44  ;;  %7583 = vmatprep.mubr.f32.mxu1 %v1739_v43 }
 0x225   :  { %8506 = vmatprep.subr.bf16.mxu1 %v8505_v30 }
 0x227   :  { %7584 = vmatmul.mubr.f32.gmra.mrb[6].mxu1 %v1749_v45 }
 0x228   :  { %7590 = vmatprep.mubr.f32.mxu1 %v9404_v50 }
 0x22b   :  { %7591 = vmatmul.mubr.f32.vlgmr.msra.gmra.mrb[2].mxu1 %v9424_v60 }
 0x22c   :  { %8508 = vmatpush3.bf16.msra.mxu1 %v8505_v30  ;;  %7593 = vmatprep.mubr.f32.mxu1 %v9429_v62  ;;  %v2462_v30 = vsub.f32 %v2347_v57, %v2368_v61 }
 0x22d   :  { %8510 = vmatprep.subr.bf16.mxu1 %v8497_v24 }
 0x22e   :  { %v2463_v37 = vand.u32 4294901760, %v2462_v30 }
 0x22f   :  { %7594 = vmatmul.mubr.f32.gmra.mrb[4].mxu1 %v9439_v3 }
 0x230   :  { %7596 = vmatprep.mubr.f32.mxu1 %v9444_v5  ;;  %v2464_v41 = vsub.f32 %v2462_v30, %v2463_v37 }
 0x232   :  { %v2465_v46 = vand.u32 4294901760, %v2464_v41 }
 0x233   :  { %7597 = vmatmul.mubr.f32.gmra.mrb[6].mxu1 %v9451_v9 }
 0x234   :  { %7603 = vmatprep.mubr.f32.mxu1 %v9407_v51  ;;  %v2968_v51 = vld [vmem:[%s10811_s0 + $0x100] sm:$0xff] }
 0x235   :  { %v2983_v54 = vand.u32 4294901760, %v2968_v51 }
 0x237   :  { %7604 = vmatmul.mubr.f32.vlgmr.msra.gmra.mrb[2].mxu1 %v9437_v2  ;;  %v9525_v56 = vsub.f32 %v2968_v51, %v2983_v54 }
 0x238   :  { %8512 = vmatpush3.bf16.msra.mxu1 %v8497_v24  ;;  %7606 = vmatprep.mubr.f32.mxu1 %v9442_v4  ;;  %v9545_v4 = vsub.f32 %v2970_v63, %v2989_v1  ;;  %v2504_v63 = vsub.f32 %v2353_v33, %v2386_v35 }
 0x239   :  { %8514 = vmatprep.subr.bf16.mxu1 %v8513_v36 }
 0x23b   :  { %7607 = vmatmul.mubr.f32.gmra.mrb[4].mxu1 %v9449_v8 }
 0x23c   :  { %7609 = vmatprep.mubr.f32.mxu1 %v9455_v11 }
 0x23f   :  { %7610 = vmatmul.mubr.f32.gmra.mrb[6].mxu1 %v1746_v20 }
 0x240   :  { %7616 = vmatprep.mubr.f32.mxu1 %v1697_v52  ;;  %v8649_v52 = vpack.c.bf16 %v9513_v42, %v9511_v38 }
 0x243   :  { %7617 = vmatmul.mubr.f32.vlgmr.msra.gmra.mrb[2].mxu1 %v1707_v7  ;;  %v2971_v7 = vld [vmem:[%s10811_s0 + $0x118] sm:$0xff] }
 0x244   :  { %8516 = vmatpush3.bf16.msra.mxu1 %v8513_v36  ;;  %7619 = vmatprep.mubr.f32.mxu1 %v1717_v10  ;;  %v2972_v10 = vld [vmem:[%s10811_s0 + $0x120] sm:$0xff]  ;;  %v2992_v11 = vand.u32 4294901760, %v2971_v7  ;;  %v2389_v36 = vand.u32 4294901760, %v2354_v34 }
 0x245   :  { %8518 = vmatprep.subr.bf16.mxu1 %v8497_v24  ;;  %v2995_v16 = vand.u32 4294901760, %v2972_v10 }
 0x246   :  { %v9598_v40 = vpack.c.bf16 %v2389_v36, %v2386_v35 }
 0x247   :  { %7620 = vmatmul.mubr.f32.gmra.mrb[4].mxu1 %v1727_v19  ;;  %v9565_v19 = vsub.f32 %v2971_v7, %v2992_v11  ;;  %v9567_v20 = vsub.f32 %v2972_v10, %v2995_v16  ;;  %v9583_v27 = vpack.c.bf16 %v2995_v16, %v2992_v11  ;;  %v2505_v7 = vand.u32 4294901760, %v2504_v63 }
 0x248   :  { %7622 = vmatprep.mubr.f32.mxu1 %v1737_v23 }
 0x249   :  { %v8661_v28 = vpack.c.bf16 %v9567_v20, %v9565_v19  ;;  %v2506_v10 = vsub.f32 %v2504_v63, %v2505_v7 }
 0x24b   :  { %7623 = vmatmul.mubr.f32.gmra.mrb[6].mxu1 %v1747_v31 }
 0x24c   :  { %7629 = vmatprep.mubr.f32.mxu1 %v9404_v50 }
 0x24f   :  { %7630 = vmatmul.mubr.f32.vlgmr.msra.gmra.mrb[2].mxu1 %v9424_v60 }
 0x250   :  { %8520 = vmatpush3.bf16.msra.mxu1 %v8497_v24  ;;  %7632 = vmatprep.mubr.f32.mxu1 %v9429_v62  ;;  %v9577_v24 = vpack.c.bf16 %v2989_v1, %v2986_v0 }
 0x251   :  { %8650 = vmatprep.subr.bf16.mxu1 %v8649_v52 }
 0x253   :  { %7633 = vmatmul.mubr.f32.gmra.mrb[4].mxu1 %v9439_v3 }
 0x254   :  { %7635 = vmatprep.mubr.f32.mxu1 %v9444_v5 }
 0x257   :  { %7636 = vmatmul.mubr.f32.gmra.mrb[6].mxu1 %v9451_v9 }
 0x258   :  { %7642 = vmatprep.mubr.f32.mxu1 %v9404_v50  ;;  %v2967_v50 = vld [vmem:[%s10811_s0 + $0xf8] sm:$0xff] }
 0x259   :  { %v2980_v53 = vand.u32 4294901760, %v2967_v50 }
 0x25b   :  { %7643 = vmatmul.mubr.f32.vlgmr.msra.gmra.mrb[2].mxu1 %v9424_v60  ;;  %v9523_v55 = vsub.f32 %v2967_v50, %v2980_v53  ;;  %v9575_v23 = vpack.c.bf16 %v2983_v54, %v2980_v53  ;;  %v2497_v53 = vsub.f32 %v2352_v22, %v2383_v29 }
 0x25c   :  { %7645 = vmatprep.mubr.f32.mxu1 %v9429_v62  ;;  %8652 = vmatpush3.bf16.msra.mxu1 %v8649_v52  ;;  %v2371_v62 = vand.u32 4294901760, %v2348_v58  ;;  %v2490_v52 = vsub.f32 %v2351_v21, %v2380_v25 }
 0x25d   :  { %v8653_v60 = vpack.c.bf16 %v9525_v56, %v9523_v55 }
 0x25e   :  { %v9541_v2 = vpack.c.bf16 %v2371_v62, %v2368_v61  ;;  %v2469_v31 = vsub.f32 %v2348_v58, %v2371_v62  ;;  %v2491_v58 = vand.u32 4294901760, %v2490_v52 }
 0x25f   :  { %7646 = vmatmul.mubr.f32.gmra.mrb[4].mxu1 %v9439_v3  ;;  %8654 = vmatprep.subr.bf16.mxu1 %v8653_v60  ;;  %v9543_v3 = vsub.f32 %v2969_v59, %v2986_v0  ;;  %v2498_v59 = vand.u32 4294901760, %v2497_v53  ;;  %v2511_v0 = vsub.f32 %v2354_v34, %v2389_v36  ;;  %v1598_v36 = vlaneseq }
 0x260   :  { %7648 = vmatprep.mubr.f32.mxu1 %v9444_v5  ;;  %8656 = vmatpush3.bf16.msra.mxu1 %v8653_v60  ;;  %v2349_v5 = vld [vmem:[%s10811_s0 + $0xb0] sm:$0xff]  ;;  %v2470_v39 = vand.u32 4294901760, %v2469_v31  ;;  %v2492_v61 = vsub.f32 %v2490_v52, %v2491_v58  ;;  %v9611_v22 = vpack.c.bf16 %v2469_v31, %v2462_v30 }
 0x261   :  { %8522 = vmatprep.subr.bf16.mxu0 %v9541_v2  ;;  %v2374_v8 = vand.u32 4294901760, %v2349_v5  ;;  %v8657_v13 = vpack.c.bf16 %v9545_v4, %v9543_v3  ;;  %v2499_v62 = vsub.f32 %v2497_v53, %v2498_v59  ;;  %v9617_v29 = vpack.c.bf16 %v2511_v0, %v2504_v63 }
 0x262   :  { %8524 = vmatpush3.bf16.msra.mxu0 %v9541_v2  ;;  %v2471_v43 = vsub.f32 %v2469_v31, %v2470_v39  ;;  %v9619_v33 = vpack.c.bf16 %v2470_v39, %v2463_v37  ;;  %v9623_v35 = vpack.c.bf16 %v2498_v59, %v2491_v58  ;;  %v1597_v37 = vld [vmem:[%s10811_s0 + $0x90] sm:$0xf] }
 0x263   :  { %7649 = vmatmul.mubr.f32.gmra.mrb[6].mxu1 %v9451_v9  ;;  %v2377_v9 = vand.u32 4294901760, %v2350_v6  ;;  %8658 = vmatprep.subr.bf16.mxu1 %v8657_v13  ;;  %v2476_v44 = vsub.f32 %v2349_v5, %v2374_v8  ;;  %v2493_v5 = vand.u32 4294901760, %v2492_v61 }
 0x264   :  { %8660 = vmatpush3.bf16.msra.mxu1 %v8657_v13  ;;  %v2472_v47 = vand.u32 4294901760, %v2471_v43  ;;  %v2507_v13 = vand.u32 4294901760, %v2506_v10  ;;  %v9627_v43 = vshrl.u32 %v1598_v36, 7 }
 0x265   :  { %v9563_v17 = vpack.c.bf16 %v2377_v9, %v2374_v8  ;;  %8662 = vmatprep.subr.bf16.mxu1 %v8661_v28  ;;  %v2483_v45 = vsub.f32 %v2350_v6, %v2377_v9  ;;  %v2477_v48 = vand.u32 4294901760, %v2476_v44  ;;  %v2500_v6 = vand.u32 4294901760, %v2499_v62 }
 0x266   :  { %v9602_v50 = vpack.c.bf16 %v2472_v47, %v2465_v46  ;;  %v2512_v8 = vand.u32 4294901760, %v2511_v0  ;;  %v9630_v30 = vsub.s32 3, %v9627_v43  ;;  %v9633_v31 = vsub.s32 0, %v9627_v43 }
 0x267   :  { %8526 = vmatprep.subr.bf16.mxu0 %v9563_v17  ;;  %v2484_v49 = vand.u32 4294901760, %v2483_v45  ;;  %v2478_v51 = vsub.f32 %v2476_v44, %v2477_v48  ;;  %v9607_v9 = vpack.c.bf16 %v2500_v6, %v2493_v5  ;;  %v9613_v25 = vpack.c.bf16 %v2483_v45, %v2476_v44 }
 0x268   :  { %8528 = vmatpush3.bf16.msra.mxu0 %v9563_v17  ;;  %8664 = vmatpush3.bf16.msra.mxu1 %v8661_v28  ;;  %v2513_v11 = vsub.f32 %v2511_v0, %v2512_v8  ;;  %v9615_v28 = vpack.c.bf16 %v2497_v53, %v2490_v52  ;;  %v9625_v41 = vpack.c.bf16 %v2512_v8, %v2505_v7  ;;  %v9646_v52 = vsub.s32 2, %v9627_v43  ;;  %v6886_v8 = vld [vmem:[%s10811_s0 + $0x98] ss:$0 sm:$0xff] }
 0x269   :  { %8530 = vmatprep.subr.bf16.mxu0 %v9587_v32  ;;  %8666 = vmatprep.subr.bf16.mxu1 %v9580_v26  ;;  %v2485_v54 = vsub.f32 %v2483_v45, %v2484_v49  ;;  %v2479_v57 = vand.u32 4294901760, %v2478_v51  ;;  %v9621_v34 = vpack.c.bf16 %v2484_v49, %v2477_v48  ;;  %v1601_v39 = vrot.slane %v1597_v37, %v9630_v30 }
 0x26a   :  { %v2514_v16 = vand.u32 4294901760, %v2513_v11  ;;  %v2305_v44 = vrot.slane %v1597_v37, %v9633_v31  ;;  %v9641_v45 = vsub.s32 1, %v9627_v43  ;;  %v2321_v62 = vrot.slane %v1597_v37, %v9646_v52 }
 0x26b   :  { %v2486_v60 = vand.u32 4294901760, %v2485_v54  ;;  %v1603_v47 = vmul.f32 %v9457_v12, %v1601_v39  ;;  %v1602_v53 = vmul.f32 %v1601_v39, %v9462_v15 }
 0x26c   :  { %8532 = vmatpush3.bf16.msra.mxu0 %v9587_v32  ;;  %v9609_v21 = vpack.c.bf16 %v2514_v16, %v2507_v13  ;;  %v2313_v51 = vrot.slane %v1597_v37, %v9641_v45 }
 0x26d   :  { %8534 = vmatprep.subr.bf16.mxu0 %v9598_v40  ;;  %v9605_v1 = vpack.c.bf16 %v2486_v60, %v2479_v57 }
 0x270   :  { %8536 = vmatpush3.bf16.msra.mxu0 %v9598_v40 }
 0x271   :  { %8538 = vmatprep.subr.bf16.mxu0 %v9602_v50 }
 0x32e   :  { %v7644_v46 = vpop.f32.mrb[2].mxu1 }
 0x32f   :  { %v2307_v48 = vmul.f32 %v7644_v46, %v2305_v44  ;;  %v2268_v49 = vpop.f32.mrb[3].mxu1 }
 0x330   :  { %v2306_v54 = vmul.f32 %v2305_v44, %v2268_v49 }
 0x331   :  { %v2309_v57 = vadd.f32 %v2307_v48, %v1603_v47 }
 0x332   :  { %v2308_v58 = vadd.f32 %v2306_v54, %v1602_v53  ;;  %v7647_v59 = vpop.f32.mrb[4].mxu1 }
 0x333   :  { %v2315_v60 = vmul.f32 %v7647_v59, %v2313_v51  ;;  %v2280_v61 = vpop.f32.mrb[5].mxu1 }
 0x334   :  { %v2314_v63 = vmul.f32 %v2313_v51, %v2280_v61 }
 0x335   :  { %v2317_v0 = vadd.f32 %v2315_v60, %v2309_v57 }
 0x336   :  { %v2316_v12 = vadd.f32 %v2314_v63, %v2308_v58  ;;  %v7650_v5 = vpop.f32.mrb[6].mxu1 }
 0x337   :  { %v2323_v6 = vmul.f32 %v7650_v5, %v2321_v62  ;;  %v2292_v7 = vpop.f32.mrb[7].mxu1 }
 0x338   :  { %v2322_v10 = vmul.f32 %v2321_v62, %v2292_v7 }
 0x339   :  { %v2325_v15 = vadd.f32 %v2323_v6, %v2317_v0 }
 0x33a   :  { %v2324_v11 = vadd.f32 %v2322_v10, %v2316_v12  ;;  %v3069_v10 = vand.u32 4294901760, %v9511_v38 }
 0x33b   :  { %v2332_v13 = vadd.f32 %v6886_v8, %v2325_v15  ;;  %v3076_v15 = vand.u32 4294901760, %v9513_v42 }
 0x33c   :  { %v2331_v16 = vadd.f32 %v6886_v8, %v2324_v11 }
 0x33d   :  { %v2334_v36 = vsub.f32 0.0, %v2332_v13  ;;  %v8681_v11 = vpack.c.bf16 %v3076_v15, %v3069_v10 }
 0x33e   :  { %v2333_v39 = vsub.f32 0.0, %v2331_v16 }
 0x33f   :  { %v2337_v44 = vmul.f32 1.442695, %v2334_v36  ;;  %v3097_v36 = vand.u32 4294901760, %v9543_v3 }
 0x340   :  { %v2335_v46 = vmul.f32 1.442695, %v2333_v39  ;;  %v3104_v39 = vand.u32 4294901760, %v9545_v4 }
 0x341   :  { %9188 = vpow2.f32 %v2337_v44  ;;  %v3111_v44 = vand.u32 4294901760, %v9565_v19 }
 0x342   :  { %9190 = vpow2.f32 %v2335_v46  ;;  %v3118_v46 = vand.u32 4294901760, %v9567_v20 }
 0x34b   :  { %v9189_v37 = vpop.eup %9188 }
 0x34c   :  { %v9191_v47 = vpop.eup %9190  ;;  %v2340_v48 = vadd.f32 1.0, %v9189_v37  ;;  %v3556_v37 = vld [vmem:[%s10811_s0 + $0x140] sm:$0xff] }
 0x34d   :  { %v2339_v49 = vadd.f32 1.0, %v9191_v47 }
 0x34e   :  { %9192 = vrcp.f32 %v2340_v48 }
 0x34f   :  { %9194 = vrcp.f32 %v2339_v49 }
 0x358   :  { %v9193_v51 = vpop.eup %9192 }
 0x359   :  { %v9195_v53 = vpop.eup %9194  ;;  %v9653_v54 = vmul.f32 %v9193_v51, %v2332_v13  ;;  %v3083_v13 = vand.u32 4294901760, %v9523_v55 }
 0x35a   :  { %v9655_v57 = vmul.f32 %v9195_v53, %v2331_v16  ;;  %v3090_v16 = vand.u32 4294901760, %v9525_v56  ;;  %v3571_v53 = vand.u32 4294901760, %v3556_v37 }
 0x35b   :  { %v2365_v58 = vsel %vm2360_vm2, %v9653_v54, 0 }
 0x35c   :  { %v9659_v59 = vand.u32 4294901760, %v2365_v58  ;;  %v2362_v60 = vsel %vm2360_vm2, %v9655_v57, 0 }
 0x35d   :  { %v9663_v61 = vand.u32 4294901760, %v2362_v60 }
 0x35e   :  { %v9666_v62 = vsub.f32 %v2365_v58, %v9659_v59  ;;  %v3557_v58 = vld [vmem:[%s10811_s0 + $0x148] sm:$0xff] }
 0x35f   :  { %v9669_v63 = vsub.f32 %v2362_v60, %v9663_v61  ;;  %v3558_v60 = vld [vmem:[%s10811_s0 + $0x150] sm:$0xff] }
 0x360   :  { %v9672_v0 = vand.u32 4294901760, %v9666_v62 }
 0x361   :  { %7819 = vmatprep.mubr.f32.mxu1 %v9669_v63  ;;  %v9676_v12 = vand.u32 4294901760, %v9669_v63 }
 0x362   :  { %7820 = vmatmul.mubr.f32.vlgmr.msra.gmra.mrb[8].mxu1 %v9666_v62  ;;  %v2453_v5 = vsub.f32 %v9666_v62, %v9672_v0 }
 0x363   :  { %8668 = vmatpush3.bf16.msra.mxu1 %v9580_v26  ;;  %7838 = vmatprep.mubr.f32.mxu1 %v9676_v12  ;;  %v2443_v6 = vsub.f32 %v9669_v63, %v9676_v12 }
 0x364   :  { %8670 = vmatprep.subr.bf16.mxu1 %v9575_v23  ;;  %v9688_v8 = vand.u32 4294901760, %v2453_v5  ;;  %v3559_v5 = vld [vmem:[%s10811_s0 + $0x158] sm:$0xff] }
 0x365   :  { %v9686_v7 = vand.u32 4294901760, %v2443_v6  ;;  %v3560_v6 = vld [vmem:[%s10811_s0 + $0x160] sm:$0xff] }
 0x367   :  { %8672 = vmatpush3.bf16.msra.mxu1 %v9575_v23  ;;  %7667 = vmatprep.mubr.f32.mxu0 %v9686_v7 }
 0x368   :  { %7668 = vmatmul.mubr.f32.vlgmr.msra.gmra.mrb[4].mxu0 %v9688_v8  ;;  %8674 = vmatprep.subr.bf16.mxu1 %v9577_v24 }
 0x369   :  { %8540 = vmatpush3.bf16.msra.mxu0 %v9602_v50  ;;  %7686 = vmatprep.mubr.f32.mxu0 %v9663_v61  ;;  %v8685_v50 = vpack.c.bf16 %v3090_v16, %v3083_v13 }
 0x36a   :  { %8542 = vmatprep.subr.bf16.mxu0 %v9605_v1 }
 0x36b   :  { %8676 = vmatpush3.bf16.msra.mxu1 %v9577_v24 }
 0x36c   :  { %8678 = vmatprep.subr.bf16.mxu1 %v9583_v27 }
 0x36d   :  { %8544 = vmatpush3.bf16.msra.mxu0 %v9605_v1  ;;  %v8689_v1 = vpack.c.bf16 %v3104_v39, %v3097_v36 }
 0x36e   :  { %8546 = vmatprep.subr.bf16.mxu0 %v9607_v9 }
 0x36f   :  { %8680 = vmatpush3.bf16.msra.mxu1 %v9583_v27 }
 0x370   :  { %8682 = vmatprep.subr.bf16.mxu1 %v8681_v11 }
 0x371   :  { %8548 = vmatpush3.bf16.msra.mxu0 %v9607_v9  ;;  %v8693_v9 = vpack.c.bf16 %v3118_v46, %v3111_v44 }
 0x372   :  { %7839 = vmatmul.mubr.f32.vlgmr.msra.gmra.mrb[8].mxu1 %v9672_v0  ;;  %8550 = vmatprep.subr.bf16.mxu0 %v9609_v21 }
 0x373   :  { %8684 = vmatpush3.bf16.msra.mxu1 %v8681_v11  ;;  %7857 = vmatprep.mubr.f32.mxu1 %v9663_v61 }
 0x374   :  { %8686 = vmatprep.subr.bf16.mxu1 %v8685_v50 }
 0x375   :  { %8552 = vmatpush3.bf16.msra.mxu0 %v9609_v21 }
 0x376   :  { %8554 = vmatprep.subr.bf16.mxu0 %v9611_v22 }
 0x377   :  { %8688 = vmatpush3.bf16.msra.mxu1 %v8685_v50  ;;  %v3574_v50 = vand.u32 4294901760, %v3557_v58 }
 0x378   :  { %7687 = vmatmul.mubr.f32.vlgmr.msra.gmra.mrb[4].mxu0 %v9659_v59  ;;  %8690 = vmatprep.subr.bf16.mxu1 %v8689_v1 }
 0x379   :  { %8556 = vmatpush3.bf16.msra.mxu0 %v9611_v22  ;;  %7705 = vmatprep.mubr.f32.mxu0 %v9669_v63 }
 0x37a   :  { %8558 = vmatprep.subr.bf16.mxu0 %v9613_v25 }
 0x37b   :  { %8692 = vmatpush3.bf16.msra.mxu1 %v8689_v1  ;;  %v3583_v1 = vand.u32 4294901760, %v3560_v6 }
 0x37c   :  { %8694 = vmatprep.subr.bf16.mxu1 %v8693_v9 }
 0x37d   :  { %8560 = vmatpush3.bf16.msra.mxu0 %v9613_v25 }
 0x37e   :  { %8562 = vmatprep.subr.bf16.mxu0 %v9615_v28 }
 0x37f   :  { %8696 = vmatpush3.bf16.msra.mxu1 %v8693_v9 }
 0x380   :  { %8698 = vmatprep.subr.bf16.mxu1 %v9580_v26 }
 0x381   :  { %8564 = vmatpush3.bf16.msra.mxu0 %v9615_v28 }
 0x382   :  { %7858 = vmatmul.mubr.f32.vlgmr.msra.gmra.mrb[8].mxu1 %v9659_v59  ;;  %8566 = vmatprep.subr.bf16.mxu0 %v9617_v29 }
 0x383   :  { %8700 = vmatpush3.bf16.msra.mxu1 %v9580_v26  ;;  %7876 = vmatprep.mubr.f32.mxu1 %v9663_v61 }
 0x384   :  { %8702 = vmatprep.subr.bf16.mxu1 %v9575_v23 }
 0x385   :  { %8568 = vmatpush3.bf16.msra.mxu0 %v9617_v29  ;;  %v3119_v29 = vsub.f32 %v9567_v20, %v3118_v46 }
 0x386   :  { %8570 = vmatprep.subr.bf16.mxu0 %v9541_v2 }
 0x387   :  { %8704 = vmatpush3.bf16.msra.mxu1 %v9575_v23 }
 0x388   :  { %7706 = vmatmul.mubr.f32.vlgmr.msra.gmra.mrb[4].mxu0 %v9666_v62  ;;  %8706 = vmatprep.subr.bf16.mxu1 %v9577_v24 }
 0x389   :  { %8572 = vmatpush3.bf16.msra.mxu0 %v9541_v2  ;;  %7724 = vmatprep.mubr.f32.mxu0 %v9676_v12 }
 0x38a   :  { %8574 = vmatprep.subr.bf16.mxu0 %v9563_v17 }
 0x38b   :  { %8708 = vmatpush3.bf16.msra.mxu1 %v9577_v24 }
 0x38c   :  { %8710 = vmatprep.subr.bf16.mxu1 %v9583_v27 }
 0x38d   :  { %8576 = vmatpush3.bf16.msra.mxu0 %v9563_v17 }
 0x38e   :  { %8578 = vmatprep.subr.bf16.mxu0 %v9587_v32 }
 0x38f   :  { %8712 = vmatpush3.bf16.msra.mxu1 %v9583_v27 }
 0x391   :  { %8580 = vmatpush3.bf16.msra.mxu0 %v9587_v32 }
 0x392   :  { %7877 = vmatmul.mubr.f32.vlgmr.msra.gmra.mrb[8].mxu1 %v9659_v59  ;;  %8582 = vmatprep.subr.bf16.mxu0 %v9598_v40 }
 0x395   :  { %8584 = vmatpush3.bf16.msra.mxu0 %v9598_v40 }
 0x396   :  { %8586 = vmatprep.subr.bf16.mxu0 %v9619_v33 }
 0x398   :  { %7725 = vmatmul.mubr.f32.vlgmr.msra.gmra.mrb[4].mxu0 %v9672_v0 }
 0x399   :  { %8588 = vmatpush3.bf16.msra.mxu0 %v9619_v33  ;;  %7743 = vmatprep.mubr.f32.mxu0 %v9663_v61  ;;  %v3553_v33 = vld [vmem:[%s10811_s0 + $0x128] sm:$0xff] }
 0x39a   :  { %8590 = vmatprep.subr.bf16.mxu0 %v9621_v34 }
 0x39d   :  { %8592 = vmatpush3.bf16.msra.mxu0 %v9621_v34  ;;  %v3562_v34 = vand.u32 4294901760, %v3553_v33 }
 0x39e   :  { %8594 = vmatprep.subr.bf16.mxu0 %v9623_v35 }
 0x39f   :  { %v9830_v47 = vsub.f32 %v3553_v33, %v3562_v34 }
 0x3a1   :  { %8596 = vmatpush3.bf16.msra.mxu0 %v9623_v35 }
 0x3a2   :  { %8598 = vmatprep.subr.bf16.mxu0 %v9625_v41 }
 0x3a5   :  { %8600 = vmatpush3.bf16.msra.mxu0 %v9625_v41  ;;  %v3555_v41 = vld [vmem:[%s10811_s0 + $0x138] sm:$0xff] }
 0x3a6   :  { %8602 = vmatprep.subr.bf16.mxu0 %v9541_v2  ;;  %v3568_v51 = vand.u32 4294901760, %v3555_v41 }
 0x3a8   :  { %7744 = vmatmul.mubr.f32.vlgmr.msra.gmra.mrb[4].mxu0 %v9659_v59  ;;  %v9850_v11 = vsub.f32 %v3555_v41, %v3568_v51 }
 0x3a9   :  { %8604 = vmatpush3.bf16.msra.mxu0 %v9541_v2  ;;  %7762 = vmatprep.mubr.f32.mxu0 %v9663_v61  ;;  %v3070_v2 = vsub.f32 %v9511_v38, %v3069_v10  ;;  %v3657_v10 = vand.u32 4294901760, %v9830_v47 }
 0x3aa   :  { %8606 = vmatprep.subr.bf16.mxu0 %v9563_v17  ;;  %v3671_v9 = vand.u32 4294901760, %v9850_v11 }
 0x3ad   :  { %8608 = vmatpush3.bf16.msra.mxu0 %v9563_v17  ;;  %v3077_v17 = vsub.f32 %v9513_v42, %v3076_v15 }
 0x3ae   :  { %8610 = vmatprep.subr.bf16.mxu0 %v9587_v32 }
 0x3af   :  { %v3078_v21 = vand.u32 4294901760, %v3077_v17 }
 0x3b1   :  { %8612 = vmatpush3.bf16.msra.mxu0 %v9587_v32  ;;  %v3084_v32 = vsub.f32 %v9523_v55, %v3083_v13  ;;  %v3105_v55 = vsub.f32 %v9545_v4, %v3104_v39  ;;  %v9852_v13 = vsub.f32 %v3556_v37, %v3571_v53  ;;  %v3580_v39 = vand.u32 4294901760, %v3559_v5 }
 0x3b2   :  { %8614 = vmatprep.subr.bf16.mxu0 %v9598_v40 }
 0x3b3   :  { %v3085_v38 = vand.u32 4294901760, %v3084_v32  ;;  %v3106_v28 = vand.u32 4294901760, %v3105_v55  ;;  %v9871_v32 = vsub.f32 %v3557_v58, %v3574_v50  ;;  %v9887_v55 = vsub.f32 %v3559_v5, %v3580_v39 }
 0x3b5   :  { %8616 = vmatpush3.bf16.msra.mxu0 %v9598_v40  ;;  %v3071_v40 = vand.u32 4294901760, %v3070_v2  ;;  %v3678_v2 = vand.u32 4294901760, %v9852_v13 }
 0x3b6   :  { %8618 = vmatprep.subr.bf16.mxu0 %v9580_v26 }
 0x3b7   :  { %v8633_v42 = vpack.c.bf16 %v3078_v21, %v3071_v40 }
 0x3b8   :  { %7763 = vmatmul.mubr.f32.vlgmr.msra.gmra.mrb[4].mxu0 %v9659_v59 }
 0x3b9   :  { %8620 = vmatpush3.bf16.msra.mxu0 %v9580_v26  ;;  %7781 = vmatprep.mubr.f32.mxu0 %v9686_v7  ;;  %v3091_v26 = vsub.f32 %v9525_v56, %v3090_v16  ;;  %v9855_v16 = vpack.c.bf16 %v3571_v53, %v3568_v51 }
 0x3ba   :  { %8622 = vmatprep.subr.bf16.mxu0 %v9575_v23 }
 0x3bb   :  { %v3092_v22 = vand.u32 4294901760, %v3091_v26 }
 0x3bd   :  { %8624 = vmatpush3.bf16.msra.mxu0 %v9575_v23  ;;  %v3098_v23 = vsub.f32 %v9543_v3, %v3097_v36  ;;  %v8637_v56 = vpack.c.bf16 %v3092_v22, %v3085_v38  ;;  %v3577_v36 = vand.u32 4294901760, %v3558_v60  ;;  %v3672_v38 = vsub.f32 %v9850_v11, %v3671_v9 }
 0x3be   :  { %8626 = vmatprep.subr.bf16.mxu0 %v9577_v24  ;;  %v3679_v22 = vsub.f32 %v9852_v13, %v3678_v2 }
 0x3bf   :  { %v3099_v25 = vand.u32 4294901760, %v3098_v23  ;;  %v9869_v17 = vpack.c.bf16 %v3577_v36, %v3574_v50  ;;  %v9873_v26 = vsub.f32 %v3558_v60, %v3577_v36 }
 0x3c1   :  { %8628 = vmatpush3.bf16.msra.mxu0 %v9577_v24  ;;  %v3112_v24 = vsub.f32 %v9565_v19, %v3111_v44  ;;  %v8641_v3 = vpack.c.bf16 %v3106_v28, %v3099_v25  ;;  %v3554_v19 = vld [vmem:[%s10811_s0 + $0x130] sm:$0xff]  ;;  %v3658_v44 = vsub.f32 %v9830_v47, %v3657_v10  ;;  %v3692_v23 = vand.u32 4294901760, %v9873_v26 }
 0x3c2   :  { %8630 = vmatprep.subr.bf16.mxu0 %v9583_v27  ;;  %v3565_v35 = vand.u32 4294901760, %v3554_v19  ;;  %v3673_v28 = vand.u32 4294901760, %v3672_v38  ;;  %v8753_v60 = vpack.c.bf16 %v9873_v26, %v9871_v32 }
 0x3c3   :  { %v3113_v4 = vand.u32 4294901760, %v3112_v24  ;;  %v3659_v40 = vand.u32 4294901760, %v3658_v44  ;;  %v3680_v24 = vand.u32 4294901760, %v3679_v22 }
 0x3c4   :  { %v9832_v48 = vsub.f32 %v3554_v19, %v3565_v35  ;;  %v9834_v49 = vpack.c.bf16 %v3565_v35, %v3562_v34 }
 0x3c5   :  { %8632 = vmatpush3.bf16.msra.mxu0 %v9583_v27  ;;  %v3120_v27 = vand.u32 4294901760, %v3119_v29  ;;  %v8733_v33 = vpack.c.bf16 %v3680_v24, %v3673_v28 }
 0x3c6   :  { %8634 = vmatprep.subr.bf16.mxu0 %v8633_v42  ;;  %v3664_v15 = vand.u32 4294901760, %v9832_v48  ;;  %v8745_v58 = vpack.c.bf16 %v9832_v48, %v9830_v47 }
 0x3c7   :  { %v8645_v20 = vpack.c.bf16 %v3120_v27, %v3113_v4  ;;  %v3699_v4 = vand.u32 4294901760, %v9887_v55 }
 0x3c8   :  { %7782 = vmatmul.mubr.f32.vlgmr.msra.gmra.mrb[6].mxu0 %v9688_v8  ;;  %v3665_v46 = vsub.f32 %v9832_v48, %v3664_v15 }
 0x3c9   :  { %8636 = vmatpush3.bf16.msra.mxu0 %v8633_v42  ;;  %7800 = vmatprep.mubr.f32.mxu0 %v9663_v61  ;;  %v3685_v42 = vand.u32 4294901760, %v9871_v32  ;;  %v3700_v34 = vsub.f32 %v9887_v55, %v3699_v4 }
 0x3ca   :  { %8638 = vmatprep.subr.bf16.mxu0 %v8637_v56  ;;  %v3666_v21 = vand.u32 4294901760, %v3665_v46 }
 0x3cb   :  { %v3686_v29 = vsub.f32 %v9871_v32, %v3685_v42  ;;  %v3701_v37 = vand.u32 4294901760, %v3700_v34 }
 0x3cc   :  { %v8729_v25 = vpack.c.bf16 %v3666_v21, %v3659_v40 }
 0x3cd   :  { %8640 = vmatpush3.bf16.msra.mxu0 %v8637_v56  ;;  %v9889_v56 = vsub.f32 %v3560_v6, %v3583_v1  ;;  %v3687_v19 = vand.u32 4294901760, %v3686_v29  ;;  %v9996_v29 = vld [vmem:[%s10811_s0 + $0x180] sm:$0xff] }
 0x3ce   :  { %8642 = vmatprep.subr.bf16.mxu0 %v8641_v3 }
 0x3cf   :  { %v3706_v27 = vand.u32 4294901760, %v9889_v56  ;;  %v8757_v5 = vpack.c.bf16 %v9889_v56, %v9887_v55 }
 0x3d1   :  { %8644 = vmatpush3.bf16.msra.mxu0 %v8641_v3  ;;  %v3693_v3 = vsub.f32 %v9873_v26, %v3692_v23  ;;  %v3707_v35 = vsub.f32 %v9889_v56, %v3706_v27  ;;  %v8789_v47 = vpack.c.bf16 %v3706_v27, %v3699_v4 }
 0x3d2   :  { %8646 = vmatprep.subr.bf16.mxu0 %v8645_v20 }
 0x3d3   :  { %v3708_v51 = vand.u32 4294901760, %v3707_v35 }
 0x3d5   :  { %8648 = vmatpush3.bf16.msra.mxu0 %v8645_v20  ;;  %v3694_v20 = vand.u32 4294901760, %v3693_v3  ;;  %v8741_v53 = vpack.c.bf16 %v3708_v51, %v3701_v37  ;;  %v10001_v3 = vld [vmem:[%s10811_s0 + $0x178] sm:$0xff] }
 0x3d6   :  { %8714 = vmatprep.subr.bf16.mxu0 %v9834_v49 }
 0x3d7   :  { %v8737_v41 = vpack.c.bf16 %v3694_v20, %v3687_v19 }
 0x3d8   :  { %7801 = vmatmul.mubr.f32.vlgmr.msra.gmra.mrb[6].mxu0 %v9659_v59 }
 0x3d9   :  { %8716 = vmatpush3.bf16.msra.mxu0 %v9834_v49  ;;  %7895 = vmatprep.mubr.f32.mxu0 %v9686_v7  ;;  %v9875_v7 = vpack.c.bf16 %v3583_v1, %v3580_v39 }
 0x3da   :  { %8718 = vmatprep.subr.bf16.mxu0 %v9855_v16 }
 0x3dd   :  { %8720 = vmatpush3.bf16.msra.mxu0 %v9855_v16 }
 0x3de   :  { %8722 = vmatprep.subr.bf16.mxu0 %v9869_v17 }
 0x3e1   :  { %8724 = vmatpush3.bf16.msra.mxu0 %v9869_v17 }
 0x3e2   :  { %8726 = vmatprep.subr.bf16.mxu0 %v9875_v7 }
 0x3e5   :  { %8728 = vmatpush3.bf16.msra.mxu0 %v9875_v7 }
 0x3e6   :  { %8730 = vmatprep.subr.bf16.mxu0 %v8729_v25 }
 0x3e8   :  { %7896 = vmatmul.mubr.f32.vlgmr.msra.gmra.mrb[8].mxu0 %v9688_v8  ;;  %v8749_v8 = vpack.c.bf16 %v9852_v13, %v9850_v11  ;;  %v4149_v11 = vld [vmem:[%s10811_s0 + $0x190] sm:$0xff] }
 0x3e9   :  { %8732 = vmatpush3.bf16.msra.mxu0 %v8729_v25  ;;  %7914 = vmatprep.mubr.f32.mxu0 %v9663_v61 }
 0x3ea   :  { %8734 = vmatprep.subr.bf16.mxu0 %v8733_v33 }
 0x3ed   :  { %8736 = vmatpush3.bf16.msra.mxu0 %v8733_v33 }
 0x3ee   :  { %8738 = vmatprep.subr.bf16.mxu0 %v8737_v41 }
 0x3f1   :  { %8740 = vmatpush3.bf16.msra.mxu0 %v8737_v41 }
 0x3f2   :  { %8742 = vmatprep.subr.bf16.mxu0 %v8741_v53 }
 0x3f5   :  { %8744 = vmatpush3.bf16.msra.mxu0 %v8741_v53 }
 0x3f6   :  { %8746 = vmatprep.subr.bf16.mxu0 %v8745_v58 }
 0x3f8   :  { %7915 = vmatmul.mubr.f32.vlgmr.msra.gmra.mrb[8].mxu0 %v9659_v59 }
 0x3f9   :  { %8748 = vmatpush3.bf16.msra.mxu0 %v8745_v58  ;;  %7933 = vmatprep.mubr.f32.mxu0 %v9669_v63  ;;  %v8777_v63 = vpack.c.bf16 %v3664_v15, %v3657_v10  ;;  %v10018_v58 = vsub.s32 4, %v9627_v43 }
 0x3fa   :  { %8750 = vmatprep.subr.bf16.mxu0 %v8749_v8 }
 0x3fd   :  { %8752 = vmatpush3.bf16.msra.mxu0 %v8749_v8 }
 0x3fe   :  { %8754 = vmatprep.subr.bf16.mxu0 %v8753_v60 }
 0x401   :  { %8756 = vmatpush3.bf16.msra.mxu0 %v8753_v60 }
 0x402   :  { %8758 = vmatprep.subr.bf16.mxu0 %v8757_v5 }
 0x405   :  { %8760 = vmatpush3.bf16.msra.mxu0 %v8757_v5 }
 0x406   :  { %8762 = vmatprep.subr.bf16.mxu0 %v9834_v49 }
 0x408   :  { %7934 = vmatmul.mubr.f32.vlgmr.msra.gmra.mrb[8].mxu0 %v9666_v62  ;;  %v8781_v62 = vpack.c.bf16 %v3678_v2, %v3671_v9 }
 0x409   :  { %8764 = vmatpush3.bf16.msra.mxu0 %v9834_v49  ;;  %7952 = vmatprep.mubr.f32.mxu0 %v9676_v12  ;;  %v8785_v12 = vpack.c.bf16 %v3692_v23, %v3685_v42 }
 0x40a   :  { %8766 = vmatprep.subr.bf16.mxu0 %v9855_v16 }
 0x40d   :  { %8768 = vmatpush3.bf16.msra.mxu0 %v9855_v16 }
 0x40e   :  { %8770 = vmatprep.subr.bf16.mxu0 %v9869_v17 }
 0x411   :  { %8772 = vmatpush3.bf16.msra.mxu0 %v9869_v17 }
 0x412   :  { %8774 = vmatprep.subr.bf16.mxu0 %v9875_v7 }
 0x415   :  { %8776 = vmatpush3.bf16.msra.mxu0 %v9875_v7 }
 0x416   :  { %8778 = vmatprep.subr.bf16.mxu0 %v8777_v63 }
 0x418   :  { %7953 = vmatmul.mubr.f32.vlgmr.msra.gmra.mrb[8].mxu0 %v9672_v0 }
 0x419   :  { %8780 = vmatpush3.bf16.msra.mxu0 %v8777_v63  ;;  %7971 = vmatprep.mubr.f32.mxu0 %v9663_v61 }
 0x41a   :  { %8782 = vmatprep.subr.bf16.mxu0 %v8781_v62 }
 0x41d   :  { %8784 = vmatpush3.bf16.msra.mxu0 %v8781_v62 }
 0x41e   :  { %8786 = vmatprep.subr.bf16.mxu0 %v8785_v12 }
 0x421   :  { %8788 = vmatpush3.bf16.msra.mxu0 %v8785_v12 }
 0x422   :  { %8790 = vmatprep.subr.bf16.mxu0 %v8789_v47 }
 0x425   :  { %8792 = vmatpush3.bf16.msra.mxu0 %v8789_v47 }
 0x426   :  { %8794 = vmatprep.subr.bf16.mxu0 %v9834_v49 }
 0x428   :  { %7972 = vmatmul.mubr.f32.vlgmr.msra.gmra.mrb[8].mxu0 %v9659_v59 }
 0x429   :  { %8796 = vmatpush3.bf16.msra.mxu0 %v9834_v49  ;;  %7990 = vmatprep.mubr.f32.mxu0 %v9663_v61  ;;  %v6887_v61 = vld [vmem:[%s10811_s0 + $0xe0] ss:$0 sm:$0xff] }
 0x42a   :  { %8798 = vmatprep.subr.bf16.mxu0 %v9855_v16 }
 0x42d   :  { %8800 = vmatpush3.bf16.msra.mxu0 %v9855_v16  ;;  %v4158_v16 = vand.u32 4294901760, %v4149_v11 }
 0x42e   :  { %8802 = vmatprep.subr.bf16.mxu0 %v9869_v17 }
 0x42f   :  { %v9966_v1 = vsub.f32 %v4149_v11, %v4158_v16 }
 0x431   :  { %8804 = vmatpush3.bf16.msra.mxu0 %v9869_v17  ;;  %v4247_v9 = vand.u32 4294901760, %v9966_v1 }
 0x432   :  { %8806 = vmatprep.subr.bf16.mxu0 %v9875_v7 }
 0x433   :  { %v4248_v17 = vsub.f32 %v9966_v1, %v4247_v9 }
 0x435   :  { %8808 = vmatpush3.bf16.msra.mxu0 %v9875_v7  ;;  %v4249_v7 = vand.u32 4294901760, %v4248_v17 }
 0x438   :  { %7991 = vmatmul.mubr.f32.vlgmr.msra.gmra.mrb[8].mxu0 %v9659_v59  ;;  %v4150_v59 = vld [vmem:[%s10811_s0 + $0x198] sm:$0xff] }
 0x439   :  { %v4161_v50 = vand.u32 4294901760, %v4150_v59 }
 0x43b   :  { %v9963_v36 = vpack.c.bf16 %v4161_v50, %v4158_v16  ;;  %v9968_v44 = vsub.f32 %v4150_v59, %v4161_v50 }
 0x43d   :  { %8810 = vmatprep.subr.bf16.mxu1 %v9963_v36  ;;  %v4254_v2 = vand.u32 4294901760, %v9968_v44  ;;  %v9986_v38 = vpack.c.bf16 %v9968_v44, %v9966_v1 }
 0x43e   :  { %8812 = vmatpush3.bf16.msra.mxu1 %v9963_v36 }
 0x43f   :  { %v4255_v32 = vsub.f32 %v9968_v44, %v4254_v2 }
 0x441   :  { %v4256_v40 = vand.u32 4294901760, %v4255_v32 }
 0x443   :  { %v9982_v21 = vpack.c.bf16 %v4256_v40, %v4249_v7 }
 0x445   :  { %8814 = vmatprep.subr.bf16.mxu1 %v9982_v21 }
 0x465   :  { %v7878_v0 = vpop.f32.mrb[8].mxu1 }
 0x466   :  { %v3543_v48 = vpop.f32.mrb[9].mxu1 }
 0x48b   :  { %v7764_v49 = vpop.f32.mrb[4].mxu0 }
 0x48c   :  { %v2937_v6 = vpop.f32.mrb[5].mxu0  ;;  %v9954_v10 = vadd.f32 %v7764_v49, %v6887_v61 }
 0x48d   :  { %v9970_v46 = vadd.f32 %v6887_v61, %v2937_v6 }
 0x48e   :  { %v2950_v15 = vand.u32 2147483647, %v9954_v10  ;;  %v2948_v11 = vmax.f32 %v9954_v10, 0.0 }
 0x48f   :  { %v2949_v26 = vand.u32 2147483647, %v9970_v46 }
 0x490   :  { %v2952_v13 = vsub.f32 0.0, %v2950_v15 }
 0x491   :  { %v2951_v22 = vsub.f32 0.0, %v2949_v26  ;;  %v10049_v26 = vpack.c.bf16 %v4254_v2, %v4247_v9 }
 0x492   :  { %v2955_v39 = vmul.f32 1.442695, %v2952_v13 }
 0x493   :  { %v2953_v42 = vmul.f32 1.442695, %v2951_v22 }
 0x494   :  { %9196 = vpow2.f32 %v2955_v39 }
 0x495   :  { %9198 = vpow2.f32 %v2953_v42 }
 0x49e   :  { %v9197_v23 = vpop.eup %9196 }
 0x49f   :  { %v2958_v55 = vadd.f32 1.0, %v9197_v23  ;;  %v9199_v51 = vpop.eup %9198 }
 0x4a0   :  { %v2957_v62 = vadd.f32 1.0, %v9199_v51 }
 0x4a1   :  { %9200 = vlog2.f32 %v2958_v55 }
 0x4a2   :  { %9202 = vlog2.f32 %v2957_v62 }
 0x4ab   :  { %v7802_v56 = vpop.f32.mrb[6].mxu0  ;;  %v9201_v12 = vpop.eup %9200 }
 0x4ac   :  { %v9989_v25 = vadd.f32 %v7878_v0, %v7802_v56  ;;  %v3173_v28 = vpop.f32.mrb[7].mxu0  ;;  %v10026_v0 = vsub.s32 5, %v9627_v43  ;;  %v2962_v15 = vmul.f32 0.6931472, %v9201_v12  ;;  %v9203_v44 = vpop.eup %9202 }
 0x4ad   :  { %v9991_v24 = vadd.f32 %v3543_v48, %v3173_v28 }
 0x4ae   :  { %v5510_v4 = vrot.slane %v9989_v25, %v9633_v31  ;;  %v5542_v27 = vrot.slane %v9989_v25, %v9641_v45  ;;  %v5574_v20 = vrot.slane %v9989_v25, %v9646_v52  ;;  %v5606_v53 = vrot.slane %v9989_v25, %v9630_v30 }
 0x4af   :  { %v5638_v6 = vrot.slane %v9989_v25, %v10018_v58  ;;  %v5672_v13 = vrot.slane %v9989_v25, %v10026_v0  ;;  %v4672_v17 = vrot.slane %v9991_v24, %v9633_v31  ;;  %v10042_v32 = vadd.f32 %v2962_v15, %v2948_v11 }
 0x4b0   :  { %v5512_v33 = vmul.f32 %v5510_v4, %v9996_v29  ;;  %v5511_v19 = vmul.f32 %v5510_v4, %v10001_v3  ;;  %v5544_v41 = vmul.f32 %v5542_v27, %v9996_v29  ;;  %v5543_v37 = vmul.f32 %v5542_v27, %v10001_v3 }
 0x4b1   :  { %v5576_v5 = vmul.f32 %v5574_v20, %v9996_v29  ;;  %v5575_v63 = vmul.f32 %v5574_v20, %v10001_v3  ;;  %v5608_v47 = vmul.f32 %v5606_v53, %v9996_v29  ;;  %v5607_v49 = vmul.f32 %v5606_v53, %v10001_v3 }
 0x4b2   :  { %v5516_v34 = vsel %vm17_vm0, %v5512_v33, 0.0  ;;  %v5513_v35 = vsel %vm17_vm0, %v5511_v19, 0.0  ;;  %v5548_v8 = vsel %vm17_vm0, %v5544_v41, 0.0  ;;  %v5545_v60 = vsel %vm17_vm0, %v5543_v37, 0.0 }
 0x4b3   :  { %5517 = vadd.xlane.f32.xlu1 %v5516_v34  ;;  %5514 = vadd.xlane.f32.xlu0 %v5513_v35  ;;  %v5580_v48 = vsel %vm17_vm0, %v5576_v5, 0.0  ;;  %v5577_v61 = vsel %vm17_vm0, %v5575_v63, 0.0  ;;  %v5612_v59 = vsel %vm17_vm0, %v5608_v47, 0.0  ;;  %v5609_v16 = vsel %vm17_vm0, %v5607_v49, 0.0 }
 0x4b4   :  { %v5640_v50 = vmul.f32 %v5638_v6, %v9996_v29  ;;  %v5639_v39 = vmul.f32 %v5638_v6, %v10001_v3  ;;  %v5674_v10 = vmul.f32 %v5672_v13, %v9996_v29  ;;  %v4673_v22 = vmul.f32 %v4672_v17, %v10001_v3 }
 0x4b5   :  { %v4704_v42 = vrot.slane %v9991_v24, %v9641_v45  ;;  %v10058_v23 = vmul.f32 %v10042_v32, %v9653_v54  ;;  %v4674_v55 = vmul.f32 %v4672_v17, %v9996_v29  ;;  %v10066_v56 = vrot.slane %v10042_v32, %v10018_v58 }
 0x4b6   :  { %v5644_v7 = vsel %vm17_vm0, %v5640_v50, 0.0  ;;  %v5641_v40 = vsel %vm17_vm0, %v5639_v39, 0.0  ;;  %v5678_v1 = vsel %vm17_vm0, %v5674_v10, 0.0  ;;  %v4675_v9 = vsel %vm17_vm0, %v4673_v22, 0.0 }
 0x4b7   :  { %5549 = vadd.xlane.f32.xlu1 %v5548_v8  ;;  %5546 = vadd.xlane.f32.xlu0 %v5545_v60  ;;  %v4705_v2 = vmul.f32 %v4704_v42, %v10001_v3  ;;  %v10070_v28 = vrot.slane %v10058_v23, %v10018_v58  ;;  %v2960_v4 = vmul.f32 0.6931472, %v9203_v44  ;;  %v5673_v27 = vmul.f32 %v5672_v13, %v10001_v3 }
 0x4b8   :  { %v4678_v19 = vsel %vm17_vm0, %v4674_v55, 0.0  ;;  %v4706_v20 = vmul.f32 %v4704_v42, %v9996_v29  ;;  %v4736_v34 = vrot.slane %v9991_v24, %v9646_v52  ;;  %v2947_v35 = vmax.f32 %v9970_v46, 0.0 }
 0x4b9   :  { %v4707_v33 = vsel %vm17_vm0, %v4705_v2, 0.0  ;;  %v10081_v41 = vrot.slane %v10042_v32, %v10026_v0  ;;  %v10085_v37 = vrot.slane %v10058_v23, %v10026_v0  ;;  %v4768_v53 = vrot.slane %v9991_v24, %v9630_v30 }
 0x4ba   :  { %v10087_v51 = vadd.f32 %v2960_v4, %v2947_v35  ;;  %v4710_v8 = vsel %vm17_vm0, %v4706_v20, 0.0  ;;  %v5675_v60 = vsel %vm17_vm0, %v5673_v27, 0.0  ;;  %v4738_v46 = vmul.f32 %v4736_v34, %v9996_v29 }
 0x4bb   :  { %5581 = vadd.xlane.f32.xlu1 %v5580_v48  ;;  %5578 = vadd.xlane.f32.xlu0 %v5577_v61  ;;  %v4737_v5 = vmul.f32 %v4736_v34, %v10001_v3  ;;  %v4770_v63 = vmul.f32 %v4768_v53, %v9996_v29  ;;  %v4769_v62 = vmul.f32 %v4768_v53, %v10001_v3  ;;  %v4857_v15 = vsub.s32 6, %v9627_v43 }
 0x4bc   :  { %v4742_v12 = vsel %vm17_vm0, %v4738_v46, 0.0  ;;  %v4800_v48 = vrot.slane %v9991_v24, %v10018_v58  ;;  %v10103_v61 = vmul.f32 %v10087_v51, %v9655_v57  ;;  %v10110_v11 = vrot.slane %v10087_v51, %v10018_v58 }
 0x4bd   :  { %v4739_v47 = vsel %vm17_vm0, %v4737_v5, 0.0  ;;  %v4774_v49 = vsel %vm17_vm0, %v4770_v63, 0.0  ;;  %v4771_v6 = vsel %vm17_vm0, %v4769_v62, 0.0  ;;  %v10122_v39 = vrot.slane %v10087_v51, %v10026_v0 }
 0x4be   :  { %v4801_v13 = vmul.f32 %v4800_v48, %v10001_v3  ;;  %v10118_v50 = vrot.slane %v10103_v61, %v10018_v58  ;;  %v10126_v17 = vrot.slane %v10103_v61, %v10026_v0  ;;  %v10129_v10 = vrot.slane %v10087_v51, %v4857_v15 }
 0x4bf   :  { %5613 = vadd.xlane.f32.xlu1 %v5612_v59  ;;  %5610 = vadd.xlane.f32.xlu0 %v5609_v16  ;;  %v4802_v59 = vmul.f32 %v4800_v48, %v9996_v29  ;;  %v4834_v16 = vrot.slane %v9991_v24, %v10026_v0  ;;  %v4891_v58 = vsub.s32 7, %v9627_v43  ;;  %v10150_v4 = vrot.slane %v10042_v32, %v4857_v15 }
 0x4c0   :  { %v4803_v42 = vsel %vm17_vm0, %v4801_v13, 0.0  ;;  %v5706_v34 = vrot.slane %v9989_v25, %v4857_v15 }
 0x4c1   :  { %v4806_v22 = vsel %vm17_vm0, %v4802_v59, 0.0  ;;  %v4835_v44 = vmul.f32 %v4834_v16, %v10001_v3  ;;  %v10141_v0 = vrot.slane %v10087_v51, %v4891_v58  ;;  %v4902_v55 = vrot.slane %v9991_v24, %v4891_v58 }
 0x4c2   :  { %v10158_v20 = vrot.slane %v10042_v32, %v4891_v58  ;;  %v10162_v35 = vrot.slane %v10058_v23, %v4891_v58  ;;  %v5740_v46 = vrot.slane %v9989_v25, %v4891_v58  ;;  %v5708_v62 = vmul.f32 %v5706_v34, %v9996_v29 }
 0x4c3   :  { %5645 = vadd.xlane.f32.xlu1 %v5644_v7  ;;  %5642 = vadd.xlane.f32.xlu0 %v5641_v40  ;;  %v10132_v7 = vrot.slane %v10103_v61, %v4857_v15  ;;  %v4868_v40 = vrot.slane %v9991_v24, %v4857_v15  ;;  %v10814_v59 = vmov 0.0|0.0  }
 0x4c4   :  { %8905 = vmatprep.subr.bf16.mxu0 %v10814_v59 }
 0x4c5   :  { %v4870_v2 = vmul.f32 %v4868_v40, %v9996_v29  ;;  %v4869_v43 = vmul.f32 %v4868_v40, %v10001_v3 }
 0x4c7   :  { %5679 = vadd.xlane.f32.xlu1 %v5678_v1  ;;  %4676 = vadd.xlane.f32.xlu0 %v4675_v9  ;;  %v4836_v1 = vmul.f32 %v4834_v16, %v9996_v29  ;;  %v10144_v9 = vrot.slane %v10103_v61, %v4891_v58  ;;  %v4874_v24 = vsel %vm17_vm0, %v4870_v2, 0.0  ;;  %v4871_v53 = vsel %vm17_vm0, %v4869_v43, 0.0 }
 0x4c9   :  { %v4840_v27 = vsel %vm17_vm0, %v4836_v1, 0.0 }
 0x4cb   :  { %4708 = vadd.xlane.f32.xlu1 %v4707_v33  ;;  %4679 = vadd.xlane.f32.xlu0 %v4678_v19  ;;  %v4837_v33 = vsel %vm17_vm0, %v4835_v44, 0.0  ;;  %v10155_v19 = vrot.slane %v10058_v23, %v4857_v15 }
 0x4cf   :  { %4711 = vadd.xlane.f32.xlu1 %v4710_v8  ;;  %5676 = vadd.xlane.f32.xlu0 %v5675_v60  ;;  %v4904_v8 = vmul.f32 %v4902_v55, %v9996_v29  ;;  %v4903_v60 = vmul.f32 %v4902_v55, %v10001_v3 }
 0x4d1   :  { %v4908_v5 = vsel %vm17_vm0, %v4904_v8, 0.0  ;;  %v4905_v63 = vsel %vm17_vm0, %v4903_v60, 0.0 }
 0x4d3   :  { %4743 = vadd.xlane.f32.xlu1 %v4742_v12  ;;  %4740 = vadd.xlane.f32.xlu0 %v4739_v47  ;;  %v5707_v12 = vmul.f32 %v5706_v34, %v10001_v3  ;;  %v5712_v47 = vsel %vm17_vm0, %v5708_v62, 0.0  ;;  %v10195_v34 = vld [vmem:[%s10811_s0 + $0x170] sm:$0xff]  ;;  %v5596_v62 = vrot.slane %v10042_v32, %v9630_v30 }
 0x4d5   :  { %v5709_v48 = vsel %vm17_vm0, %v5707_v12, 0.0 }
 0x4d7   :  { %4775 = vadd.xlane.f32.xlu1 %v4774_v49  ;;  %4772 = vadd.xlane.f32.xlu0 %v4771_v6  ;;  %v5742_v49 = vmul.f32 %v5740_v46, %v9996_v29  ;;  %v5741_v6 = vmul.f32 %v5740_v46, %v10001_v3 }
 0x4d9   :  { %v5746_v25 = vsel %vm17_vm0, %v5742_v49, 0.0  ;;  %v5743_v15 = vsel %vm17_vm0, %v5741_v6, 0.0  ;;  %v5598_v6 = vmul.f32 %v5596_v62, %v10195_v34 }
 0x4db   :  { %4807 = vadd.xlane.f32.xlu1 %v4806_v22  ;;  %4804 = vadd.xlane.f32.xlu0 %v4803_v42 }
 0x4df   :  { %4841 = vadd.xlane.f32.xlu1 %v4840_v27  ;;  %4838 = vadd.xlane.f32.xlu0 %v4837_v33  ;;  %v5500_v33 = vrot.slane %v10042_v32, %v9633_v31 }
 0x4e3   :  { %4875 = vadd.xlane.f32.xlu1 %v4874_v24  ;;  %4872 = vadd.xlane.f32.xlu0 %v4871_v53  ;;  %v5532_v53 = vrot.slane %v10042_v32, %v9641_v45 }
 0x4e5   :  { %v5534_v46 = vmul.f32 %v5532_v53, %v10195_v34 }
 0x4e7   :  { %4909 = vadd.xlane.f32.xlu1 %v4908_v5  ;;  %4906 = vadd.xlane.f32.xlu0 %v4905_v63  ;;  %v5564_v5 = vrot.slane %v10042_v32, %v9646_v52  ;;  %v5537_v12 = vmul.f32 1.442695, %v5534_v46  ;;  %v4662_v32 = vrot.slane %v10087_v51, %v9633_v31 }
 0x4eb   :  { %5713 = vadd.xlane.f32.xlu1 %v5712_v47  ;;  %5710 = vadd.xlane.f32.xlu0 %v5709_v48  ;;  %v5566_v47 = vmul.f32 %v5564_v5, %v10195_v34 }
 0x4ef   :  { %5747 = vadd.xlane.f32.xlu1 %v5746_v25  ;;  %5744 = vadd.xlane.f32.xlu0 %v5743_v15 }
 0x50b   :  { %v7992_v13 = vpop.f32.mrb[8].mxu0 }
 0x50c   :  { %v4155_v16 = vsel %vm17_vm0, %v7992_v13, 0  ;;  %v4131_v40 = vpop.f32.mrb[9].mxu0  ;;  %v5601_v13 = vmul.f32 1.442695, %v5598_v6 }
 0x50d   :  { %v10181_v58 = vand.u32 4294901760, %v4155_v16  ;;  %v4152_v29 = vsel %vm17_vm0, %v4131_v40, 0 }
 0x50e   :  { %v4224_v3 = vand.u32 4294901760, %v4152_v29 }
 0x50f   :  { %v4235_v22 = vsub.f32 %v4155_v16, %v10181_v58  ;;  %v5630_v16 = vmul.f32 %v10066_v56, %v10195_v34 }
 0x510   :  { %v4225_v42 = vsub.f32 %v4152_v29, %v4224_v3 }
 0x511   :  { %v4236_v1 = vand.u32 4294901760, %v4235_v22 }
 0x512   :  { %v4226_v44 = vand.u32 4294901760, %v4225_v42 }
 0x513   :  { %v4237_v2 = vsub.f32 %v4235_v22, %v4236_v1 }
 0x514   :  { %v4227_v43 = vsub.f32 %v4225_v42, %v4226_v44 }
 0x515   :  { %v4238_v27 = vand.u32 4294901760, %v4237_v2  ;;  %v5633_v2 = vmul.f32 1.442695, %v5630_v16  ;;  %v5698_v16 = vmul.f32 %v10150_v4, %v10195_v34 }
 0x516   :  { %v4228_v55 = vand.u32 4294901760, %v4227_v43  ;;  %v5664_v43 = vmul.f32 %v10081_v41, %v10195_v34 }
 0x518   :  { %7997 = vmatprep.mubr.f32.mxu1 %v4228_v55  ;;  %v4694_v55 = vrot.slane %v10087_v51, %v9641_v45 }
 0x519   :  { %7998 = vmatmul.mubr.f32.vlgmr.msra.gmra.mrb[10].mxu1 %v4238_v27 }
 0x51a   :  { %8004 = vmatprep.mubr.f32.mxu1 %v4224_v3  ;;  %8816 = vmatpush3.bf16.msra.mxu1 %v9982_v21  ;;  %v10200_v21 = vld [vmem:[%s10811_s0 + $0x168] sm:$0xff] }
 0x51b   :  { %8818 = vmatprep.subr.bf16.mxu1 %v9986_v38  ;;  %v5501_v24 = vmul.f32 %v5500_v33, %v10200_v21  ;;  %v5533_v63 = vmul.f32 %v5532_v53, %v10200_v21  ;;  %v5565_v49 = vmul.f32 %v5564_v5, %v10200_v21  ;;  %v5597_v15 = vmul.f32 %v5596_v62, %v10200_v21 }
 0x51c   :  { %v4664_v53 = vmul.f32 %v4662_v32, %v10195_v34  ;;  %v4695_v6 = vmul.f32 %v4694_v55, %v10200_v21 }
 0x51d   :  { %v5503_v60 = vmul.f32 1.442695, %v5501_v24  ;;  %v5535_v48 = vmul.f32 1.442695, %v5533_v63  ;;  %v5567_v25 = vmul.f32 1.442695, %v5565_v49  ;;  %v5556_v63 = vrot.slane %v10058_v23, %v9641_v45 }
 0x51e   :  { %v5667_v49 = vmul.f32 1.442695, %v5664_v43 }
 0x521   :  { %8005 = vmatmul.mubr.f32.vlgmr.msra.gmra.mrb[10].mxu1 %v10181_v58 }
 0x522   :  { %8011 = vmatprep.mubr.f32.mxu1 %v4225_v42  ;;  %8820 = vmatpush3.bf16.msra.mxu1 %v9986_v38  ;;  %v5502_v38 = vmul.f32 %v5500_v33, %v10195_v34  ;;  %v4663_v42 = vmul.f32 %v4662_v32, %v10200_v21  ;;  %v4667_v32 = vmul.f32 1.442695, %v4664_v53  ;;  %v5701_v53 = vmul.f32 1.442695, %v5698_v16 }
 0x523   :  { %8822 = vmatprep.subr.bf16.mxu1 %v9963_v36 }
 0x524   :  { %v5505_v8 = vmul.f32 1.442695, %v5502_v38  ;;  %v4665_v62 = vmul.f32 1.442695, %v4663_v42 }
 0x526   :  { %9204 = vpow2.f32 %v5505_v8  ;;  %v5663_v8 = vmul.f32 %v10081_v41, %v10200_v21 }
 0x527   :  { %9206 = vpow2.f32 %v5503_v60 }
 0x528   :  { %9208 = vpow2.f32 %v5537_v12 }
 0x529   :  { %8012 = vmatmul.mubr.f32.vlgmr.msra.gmra.mrb[10].mxu1 %v4235_v22  ;;  %9210 = vpow2.f32 %v5535_v48  ;;  %v5524_v22 = vrot.slane %v10058_v23, %v9633_v31 }
 0x52a   :  { %8018 = vmatprep.mubr.f32.mxu1 %v4226_v44  ;;  %8824 = vmatpush3.bf16.msra.mxu1 %v9963_v36 }
 0x52b   :  { %8826 = vmatprep.subr.bf16.mxu1 %v10049_v26 }
 0x530   :  { %v9205_v40 = vpop.eup %9204 }
 0x531   :  { %8019 = vmatmul.mubr.f32.vlgmr.msra.gmra.mrb[10].mxu1 %v4236_v1  ;;  %v9207_v29 = vpop.eup %9206  ;;  %v5520_v27 = vmul.f32 0.0, %v9205_v40 }
 0x532   :  { %8025 = vmatprep.mubr.f32.mxu1 %v4224_v3  ;;  %8828 = vmatpush3.bf16.msra.mxu1 %v10049_v26  ;;  %v5569_v26 = vmul.f32 1.442695, %v5566_v47  ;;  %v5519_v38 = vmul.f32 0.0, %v9207_v29  ;;  %v9209_v60 = vpop.eup %9208 }
 0x533   :  { %8830 = vmatprep.subr.bf16.mxu1 %v9963_v36  ;;  %v9211_v12 = vpop.eup %9210 }
 0x534   :  { %9212 = vpow2.f32 %v5569_v26 }
 0x535   :  { %9214 = vpow2.f32 %v5567_v25 }
 0x536   :  { %9216 = vpow2.f32 %v5601_v13  ;;  %v5665_v13 = vmul.f32 1.442695, %v5663_v8 }
 0x539   :  { %8026 = vmatmul.mubr.f32.vlgmr.msra.gmra.mrb[10].mxu1 %v10181_v58 }
 0x53a   :  { %8032 = vmatprep.mubr.f32.mxu1 %v4224_v3  ;;  %8832 = vmatpush3.bf16.msra.mxu1 %v9963_v36  ;;  %v5599_v3 = vmul.f32 1.442695, %v5597_v15  ;;  %v5629_v36 = vmul.f32 %v10066_v56, %v10200_v21 }
 0x53b   :  { %8833 = vmatprep.subr.bf16.mxu1 %v10814_v59 }
 0x53c   :  { %9218 = vpow2.f32 %v5599_v3  ;;  %v5631_v56 = vmul.f32 1.442695, %v5629_v36  ;;  %v4726_v36 = vrot.slane %v10087_v51, %v9646_v52 }
 0x53d   :  { %9220 = vpow2.f32 %v5633_v2 }
 0x53e   :  { %9222 = vpow2.f32 %v5631_v56  ;;  %v9213_v40 = vpop.eup %9212  ;;  %v4696_v56 = vmul.f32 %v4694_v55, %v10195_v34 }
 0x53f   :  { %9224 = vpow2.f32 %v4665_v62 }
 0x540   :  { %v5518_v1 = vpop.xlane.xlu1 %5517  ;;  %v5515_v44 = vpop.xlane.xlu0 %5514  ;;  %9226 = vpow2.f32 %v5667_v49 }
 0x541   :  { %v5526_v33 = vmul.f32 %v5524_v22, %v5518_v1  ;;  %v5525_v24 = vmul.f32 %v5524_v22, %v5515_v44  ;;  %8033 = vmatmul.mubr.f32.vlgmr.msra.gmra.mrb[10].mxu1 %v10181_v58  ;;  %v5588_v58 = vrot.slane %v10058_v23, %v9646_v52  ;;  %v9215_v22 = vpop.eup %9214  ;;  %v4697_v44 = vmul.f32 1.442695, %v4695_v6 }
 0x542   :  { %9228 = vpow2.f32 %v5665_v13  ;;  %v4699_v6 = vmul.f32 1.442695, %v4696_v56 }
 0x543   :  { %v5528_v46 = vadd.f32 %v5526_v33, %v5520_v27  ;;  %v5527_v5 = vadd.f32 %v5525_v24, %v5519_v38  ;;  %v9217_v38 = vpop.eup %9216  ;;  %v5620_v24 = vrot.slane %v10058_v23, %v9630_v30  ;;  %9230 = vpow2.f32 %v4667_v32 }
 0x544   :  { %v5550_v47 = vpop.xlane.xlu1 %5549  ;;  %v5547_v48 = vpop.xlane.xlu0 %5546  ;;  %9232 = vpow2.f32 %v4697_v44 }
 0x545   :  { %v5552_v26 = vmul.f32 %v9209_v60, %v5528_v46  ;;  %v5558_v25 = vmul.f32 %v5556_v63, %v5550_v47  ;;  %v5551_v41 = vmul.f32 %v9211_v12, %v5527_v5  ;;  %v5557_v15 = vmul.f32 %v5556_v63, %v5547_v48 }
 0x546   :  { %v4728_v46 = vmul.f32 %v4726_v36, %v10195_v34  ;;  %v9219_v5 = vpop.eup %9218  ;;  %v4727_v12 = vmul.f32 %v4726_v36, %v10200_v21  ;;  %v4758_v47 = vrot.slane %v10087_v51, %v9630_v30  ;;  %9234 = vpow2.f32 %v5701_v53 }
 0x547   :  { %v5560_v29 = vadd.f32 %v5558_v25, %v5552_v26  ;;  %v5559_v3 = vadd.f32 %v5557_v15, %v5551_v41  ;;  %v9221_v49 = vpop.eup %9220  ;;  %v5697_v26 = vmul.f32 %v10150_v4, %v10200_v21  ;;  %9236 = vpow2.f32 %v4699_v6 }
 0x548   :  { %v5582_v42 = vpop.xlane.xlu1 %5581  ;;  %v5579_v1 = vpop.xlane.xlu0 %5578  ;;  %v4731_v15 = vmul.f32 1.442695, %v4728_v46  ;;  %v4759_v4 = vmul.f32 %v4758_v47, %v10200_v21 }
 0x549   :  { %v5584_v2 = vmul.f32 %v9213_v40, %v5560_v29  ;;  %v5590_v43 = vmul.f32 %v5588_v58, %v5582_v42  ;;  %v5583_v27 = vmul.f32 %v9215_v22, %v5559_v3  ;;  %v5589_v33 = vmul.f32 %v5588_v58, %v5579_v1  ;;  %v9223_v32 = vpop.eup %9222 }
 0x54a   :  { %v4729_v40 = vmul.f32 1.442695, %v4727_v12  ;;  %v4760_v29 = vmul.f32 %v4758_v47, %v10195_v34  ;;  %v9225_v51 = vpop.eup %9224  ;;  %v5699_v44 = vmul.f32 1.442695, %v5697_v26  ;;  %9238 = vpow2.f32 %v4731_v15 }
 0x54b   :  { %v5592_v8 = vadd.f32 %v5590_v43, %v5584_v2  ;;  %v5591_v60 = vadd.f32 %v5589_v33, %v5583_v27  ;;  %v9227_v1 = vpop.eup %9226  ;;  %v4686_v27 = vrot.slane %v10103_v61, %v9633_v31  ;;  %v4681_v56 = vmul.f32 0.0, %v9225_v51 }
 0x54c   :  { %v5614_v63 = vpop.xlane.xlu1 %5613  ;;  %v5611_v62 = vpop.xlane.xlu0 %5610  ;;  %9240 = vpow2.f32 %v4729_v40  ;;  %v4763_v53 = vmul.f32 1.442695, %v4760_v29  ;;  %v4761_v31 = vmul.f32 1.442695, %v4759_v4  ;;  %v4791_v12 = vmul.f32 %v10110_v11, %v10200_v21 }
 0x54d   :  { %v5616_v48 = vmul.f32 %v9217_v38, %v5592_v8  ;;  %v5622_v23 = vmul.f32 %v5620_v24, %v5614_v63  ;;  %v5615_v58 = vmul.f32 %v9219_v5, %v5591_v60  ;;  %v5621_v55 = vmul.f32 %v5620_v24, %v5611_v62  ;;  %v9229_v33 = vpop.eup %9228 }
 0x54e   :  { %v9231_v8 = vpop.eup %9230  ;;  %9242 = vpow2.f32 %v5699_v44 }
 0x54f   :  { %v5624_v25 = vadd.f32 %v5622_v23, %v5616_v48  ;;  %v5623_v41 = vadd.f32 %v5621_v55, %v5615_v58  ;;  %v9233_v62 = vpop.eup %9232  ;;  %v4718_v23 = vrot.slane %v10103_v61, %v9641_v45  ;;  %v4682_v6 = vmul.f32 0.0, %v9231_v8 }
 0x550   :  { %v5646_v13 = vpop.xlane.xlu1 %5645  ;;  %v5643_v16 = vpop.xlane.xlu0 %5642  ;;  %9244 = vpow2.f32 %v4763_v53  ;;  %v4825_v45 = vmul.f32 %v10122_v39, %v10200_v21 }
 0x551   :  { %v5648_v3 = vmul.f32 %v9221_v49, %v5624_v25  ;;  %v5654_v36 = vmul.f32 %v10070_v28, %v5646_v13  ;;  %v5647_v22 = vmul.f32 %v9223_v32, %v5623_v41  ;;  %v5653_v42 = vmul.f32 %v10070_v28, %v5643_v16  ;;  %v9235_v58 = vpop.eup %9234 }
 0x552   :  { %v4792_v28 = vmul.f32 %v10110_v11, %v10195_v34  ;;  %v4826_v25 = vmul.f32 %v10122_v39, %v10195_v34  ;;  %9246 = vpow2.f32 %v4761_v31  ;;  %v4793_v13 = vmul.f32 1.442695, %v4791_v12  ;;  %v9237_v40 = vpop.eup %9236 }
 0x553   :  { %v10262_v2 = vadd.f32 %v5654_v36, %v5648_v3  ;;  %v10264_v43 = vadd.f32 %v5653_v42, %v5647_v22  ;;  %v4860_v22 = vmul.f32 %v10129_v10, %v10195_v34  ;;  %v4859_v39 = vmul.f32 %v10129_v10, %v10200_v21 }
 0x554   :  { %v5680_v38 = vpop.xlane.xlu1 %5679  ;;  %v4677_v24 = vpop.xlane.xlu0 %4676  ;;  %v4795_v26 = vmul.f32 1.442695, %v4792_v28  ;;  %v4829_v36 = vmul.f32 1.442695, %v4826_v25 }
 0x555   :  { %v5682_v60 = vmul.f32 %v9227_v1, %v10262_v2  ;;  %v5688_v46 = vmul.f32 %v10085_v37, %v5680_v38  ;;  %v4687_v5 = vmul.f32 %v4686_v27, %v4677_v24  ;;  %v5681_v63 = vmul.f32 %v9229_v33, %v10264_v43  ;;  %v9239_v42 = vpop.eup %9238 }
 0x556   :  { %9248 = vpow2.f32 %v4795_v26  ;;  %v4827_v33 = vmul.f32 1.442695, %v4825_v45  ;;  %v4861_v12 = vmul.f32 1.442695, %v4859_v39 }
 0x557   :  { %v10275_v47 = vadd.f32 %v5688_v46, %v5682_v60  ;;  %v4689_v48 = vadd.f32 %v4687_v5, %v4681_v56  ;;  %9250 = vpow2.f32 %v4793_v13  ;;  %v4750_v56 = vrot.slane %v10103_v61, %v9646_v52 }
 0x558   :  { %v4709_v55 = vpop.xlane.xlu1 %4708  ;;  %v4680_v49 = vpop.xlane.xlu0 %4679  ;;  %9252 = vpow2.f32 %v4829_v36  ;;  %v4863_v46 = vmul.f32 1.442695, %v4860_v22  ;;  %v4893_v52 = vmul.f32 %v10141_v0, %v10200_v21 }
 0x559   :  { %v4713_v41 = vmul.f32 %v9233_v62, %v4689_v48  ;;  %v4719_v15 = vmul.f32 %v4718_v23, %v4709_v55  ;;  %v4688_v32 = vmul.f32 %v4686_v27, %v4680_v49  ;;  %v10282_v11 = vmul.f32 %v9235_v58, %v10275_v47  ;;  %v9241_v27 = vpop.eup %9240 }
 0x55a   :  { %v9243_v53 = vpop.eup %9242  ;;  %9254 = vpow2.f32 %v4827_v33  ;;  %v4782_v58 = vrot.slane %v10103_v61, %v9630_v30  ;;  %v4895_v13 = vmul.f32 1.442695, %v4893_v52  ;;  %v5732_v30 = vmul.f32 %v10158_v20, %v10195_v34 }
 0x55b   :  { %v4690_v16 = vadd.f32 %v4688_v32, %v4682_v6  ;;  %v4721_v29 = vadd.f32 %v4719_v15, %v4713_v41  ;;  %9256 = vpow2.f32 %v4863_v46 }
 0x55c   :  { %v4712_v51 = vpop.xlane.xlu1 %4711  ;;  %v5677_v3 = vpop.xlane.xlu0 %5676  ;;  %9258 = vpow2.f32 %v4861_v12 }
 0x55d   :  { %v4714_v1 = vmul.f32 %v9237_v40, %v4690_v16  ;;  %v4720_v4 = vmul.f32 %v4718_v23, %v4712_v51  ;;  %v5687_v44 = vmul.f32 %v10085_v37, %v5677_v3  ;;  %v4745_v60 = vmul.f32 %v9241_v27, %v4721_v29 }
 0x55e   :  { %v4894_v37 = vmul.f32 %v10141_v0, %v10195_v34 }
 0x55f   :  { %v4722_v38 = vadd.f32 %v4720_v4, %v4714_v1  ;;  %v10291_v24 = vadd.f32 %v5687_v44, %v5681_v63  ;;  %v9245_v63 = vpop.eup %9244  ;;  %v5731_v1 = vmul.f32 %v10158_v20, %v10200_v21 }
 0x560   :  { %v4744_v28 = vpop.xlane.xlu1 %4743  ;;  %v4741_v8 = vpop.xlane.xlu0 %4740  ;;  %v4897_v26 = vmul.f32 1.442695, %v4894_v37 }
 0x561   :  { %v4746_v5 = vmul.f32 %v9239_v42, %v4722_v38  ;;  %v4752_v62 = vmul.f32 %v4750_v56, %v4744_v28  ;;  %v4751_v31 = vmul.f32 %v4750_v56, %v4741_v8  ;;  %v10298_v10 = vmul.f32 %v9243_v53, %v10291_v24  ;;  %v9247_v55 = vpop.eup %9246 }
 0x562   :  { %v9249_v45 = vpop.eup %9248  ;;  %9260 = vpow2.f32 %v4897_v26  ;;  %v5735_v38 = vmul.f32 1.442695, %v5732_v30  ;;  %v5733_v8 = vmul.f32 1.442695, %v5731_v1 }
 0x563   :  { %v4754_v48 = vadd.f32 %v4752_v62, %v4746_v5  ;;  %v4753_v23 = vadd.f32 %v4751_v31, %v4745_v60  ;;  %v9251_v0 = vpop.eup %9250  ;;  %9262 = vpow2.f32 %v4895_v13 }
 0x564   :  { %v4776_v49 = vpop.xlane.xlu1 %4775  ;;  %v4773_v6 = vpop.xlane.xlu0 %4772  ;;  %9264 = vpow2.f32 %v5735_v38 }
 0x565   :  { %v4778_v25 = vmul.f32 %v9245_v63, %v4754_v48  ;;  %v4784_v41 = vmul.f32 %v4782_v58, %v4776_v49  ;;  %v4777_v15 = vmul.f32 %v9247_v55, %v4753_v23  ;;  %v4783_v32 = vmul.f32 %v4782_v58, %v4773_v6  ;;  %v9253_v42 = vpop.eup %9252 }
 0x566   :  { %v9255_v27 = vpop.eup %9254  ;;  %9266 = vpow2.f32 %v5733_v8 }
 0x567   :  { %v4786_v16 = vadd.f32 %v4784_v41, %v4778_v25  ;;  %v4785_v40 = vadd.f32 %v4783_v32, %v4777_v15  ;;  %v9257_v28 = vpop.eup %9256 }
 0x568   :  { %v4808_v29 = vpop.xlane.xlu1 %4807  ;;  %v4805_v51 = vpop.xlane.xlu0 %4804 }
 0x569   :  { %v4810_v61 = vmul.f32 %v9249_v45, %v4786_v16  ;;  %v4816_v3 = vmul.f32 %v10118_v50, %v4808_v29  ;;  %v4809_v36 = vmul.f32 %v9251_v0, %v4785_v40  ;;  %v4815_v22 = vmul.f32 %v10118_v50, %v4805_v51  ;;  %v9259_v21 = vpop.eup %9258 }
 0x56b   :  { %v4818_v4 = vadd.f32 %v4816_v3, %v4810_v61  ;;  %v4817_v44 = vadd.f32 %v4815_v22, %v4809_v36 }
 0x56c   :  { %v4842_v33 = vpop.xlane.xlu1 %4841  ;;  %v4839_v39 = vpop.xlane.xlu0 %4838 }
 0x56d   :  { %4820 = vst.msk [vmem:[#allocation2 + $0x8] sm:$0xff] %vm2360_vm2, %v4818_v4  ;;  %4819 = vst.msk [vmem:[#allocation2] sm:$0xff] %vm2360_vm2, %v4817_v44  ;;  %v4844_v34 = vmul.f32 %v9253_v42, %v4818_v4  ;;  %v4850_v56 = vmul.f32 %v10126_v17, %v4842_v33  ;;  %v4843_v53 = vmul.f32 %v9255_v27, %v4817_v44  ;;  %v9261_v12 = vpop.eup %9260 }
 0x56e   :  { %v4849_v50 = vmul.f32 %v10126_v17, %v4839_v39  ;;  %v9263_v48 = vpop.eup %9262 }
 0x56f   :  { %v4852_v60 = vadd.f32 %v4850_v56, %v4844_v34  ;;  %v9265_v3 = vpop.eup %9264 }
 0x570   :  { %v4851_v20 = vadd.f32 %v4849_v50, %v4843_v53  ;;  %v4876_v46 = vpop.xlane.xlu1 %4875  ;;  %v4873_v37 = vpop.xlane.xlu0 %4872 }
 0x571   :  { %4854 = vst.msk [vmem:[#allocation2 + $0x18] sm:$0xff] %vm2360_vm2, %v4852_v60  ;;  %v4878_v5 = vmul.f32 %v9257_v28, %v4852_v60  ;;  %v4884_v62 = vmul.f32 %v10132_v7, %v4876_v46  ;;  %v4883_v63 = vmul.f32 %v10132_v7, %v4873_v37  ;;  %v9267_v4 = vpop.eup %9266 }
 0x572   :  { %4853 = vst.msk [vmem:[#allocation2 + $0x10] sm:$0xff] %vm2360_vm2, %v4851_v20  ;;  %v4877_v31 = vmul.f32 %v9259_v21, %v4851_v20 }
 0x573   :  { %v4886_v17 = vadd.f32 %v4884_v62, %v4878_v5 }
 0x574   :  { %v4885_v52 = vadd.f32 %v4883_v63, %v4877_v31  ;;  %v4928_v23 = vld [vmem:[#allocation2 + $0x8] sm:$0xff]  ;;  %v4927_v58 = vld [vmem:[#allocation2] sm:$0xff]  ;;  %v4910_v55 = vpop.xlane.xlu1 %4909  ;;  %v4907_v49 = vpop.xlane.xlu0 %4906 }
 0x575   :  { %5658 = vst.msk [vmem:[#allocation2 + $0x8] sm:$0xff] %vm2360_vm2, %v10262_v2  ;;  %5657 = vst.msk [vmem:[#allocation2] sm:$0xff] %vm2360_vm2, %v10264_v43  ;;  %v4912_v7 = vmul.f32 %v9261_v12, %v4886_v17  ;;  %v4918_v6 = vmul.f32 %v10144_v9, %v4910_v55  ;;  %v4917_v25 = vmul.f32 %v10144_v9, %v4907_v49  ;;  %v4948_v41 = vand.u32 4294901760, %v4927_v58 }
 0x576   :  { %4888 = vst.msk [vmem:[#allocation2 + $0x28] sm:$0xff] %vm2360_vm2, %v4886_v17  ;;  %4887 = vst.msk [vmem:[#allocation2 + $0x20] sm:$0xff] %vm2360_vm2, %v4885_v52  ;;  %v4911_v26 = vmul.f32 %v9263_v48, %v4885_v52  ;;  %v4951_v15 = vand.u32 4294901760, %v4928_v23 }
 0x577   :  { %v4920_v32 = vadd.f32 %v4918_v6, %v4912_v7  ;;  %v10328_v43 = vsub.f32 %v4927_v58, %v4948_v41 }
 0x578   :  { %v4919_v13 = vadd.f32 %v4917_v25, %v4911_v26  ;;  %v4930_v45 = vld [vmem:[#allocation2 + $0x18] sm:$0xff]  ;;  %v5714_v2 = vpop.xlane.xlu1 %5713  ;;  %v5711_v40 = vpop.xlane.xlu0 %5710  ;;  %v10326_v0 = vpack.c.bf16 %v4951_v15, %v4948_v41  ;;  %v10330_v29 = vsub.f32 %v4928_v23, %v4951_v15 }
 0x579   :  { %v4929_v16 = vld [vmem:[#allocation2 + $0x10] sm:$0xff]  ;;  %5692 = vst.msk [vmem:[#allocation2 + $0x18] sm:$0xff] %vm2360_vm2, %v10275_v47  ;;  %4922 = vst.msk [vmem:[#allocation2 + $0x38] sm:$0xff] %vm2360_vm2, %v4920_v32  ;;  %v5722_v9 = vmul.f32 %v10155_v19, %v5714_v2  ;;  %v5721_v51 = vmul.f32 %v10155_v19, %v5711_v40  ;;  %v4957_v61 = vand.u32 4294901760, %v4930_v45  ;;  %v5033_v36 = vand.u32 4294901760, %v10328_v43 }
 0x57a   :  { %5691 = vst.msk [vmem:[#allocation2 + $0x10] sm:$0xff] %vm2360_vm2, %v10291_v24  ;;  %4921 = vst.msk [vmem:[#allocation2 + $0x30] sm:$0xff] %vm2360_vm2, %v4919_v13  ;;  %v4954_v30 = vand.u32 4294901760, %v4929_v16  ;;  %8835 = vmatpush3.bf16.msra.mxu1 %v10326_v0  ;;  %v5040_v47 = vand.u32 4294901760, %v10330_v29 }
 0x57b   :  { %v5724_v22 = vadd.f32 %v5722_v9, %v10282_v11  ;;  %v5723_v42 = vadd.f32 %v5721_v51, %v10298_v10  ;;  %8836 = vmatprep.subr.bf16.mxu1 %v10814_v59  ;;  %v10352_v38 = vsub.f32 %v4930_v45, %v4957_v61  ;;  %v5034_v56 = vsub.f32 %v10328_v43, %v5033_v36 }
 0x57c   :  { %v10348_v1 = vpack.c.bf16 %v4957_v61, %v4954_v30  ;;  %v10350_v19 = vsub.f32 %v4929_v16, %v4954_v30  ;;  %v5748_v33 = vpop.xlane.xlu1 %5747  ;;  %v5745_v39 = vpop.xlane.xlu0 %5744  ;;  %v5762_v34 = vld [vmem:[#allocation2] sm:$0xff]  ;;  %v5041_v11 = vsub.f32 %v10330_v29, %v5040_v47  ;;  %v10356_v53 = vpack.c.bf16 %v5040_v47, %v5033_v36  ;;  %v5763_v60 = vld [vmem:[#allocation2 + $0x8] sm:$0xff] }
 0x57d   :  { %v4932_v44 = vld [vmem:[#allocation2 + $0x28] sm:$0xff]  ;;  %v4931_v27 = vld [vmem:[#allocation2 + $0x20] sm:$0xff]  ;;  %v5750_v10 = vmul.f32 %v9265_v3, %v5724_v22  ;;  %v5756_v50 = vmul.f32 %v10162_v35, %v5748_v33  ;;  %v5749_v28 = vmul.f32 %v9267_v4, %v5723_v42  ;;  %v5755_v8 = vmul.f32 %v10162_v35, %v5745_v39 }
 0x57e   :  { %5726 = vst.msk [vmem:[#allocation2 + $0x28] sm:$0xff] %vm2360_vm2, %v5724_v22  ;;  %5725 = vst.msk [vmem:[#allocation2 + $0x20] sm:$0xff] %vm2360_vm2, %v5723_v42  ;;  %8838 = vmatpush3.bf16.msra.mxu1 %v10348_v1  ;;  %v4960_v20 = vand.u32 4294901760, %v4931_v27  ;;  %v4963_v21 = vand.u32 4294901760, %v4932_v44  ;;  %v5779_v46 = vand.u32 4294901760, %v5762_v34  ;;  %v5782_v37 = vand.u32 4294901760, %v5763_v60 }
 0x57f   :  { %v5758_v5 = vadd.f32 %v5756_v50, %v5750_v10  ;;  %v5757_v62 = vadd.f32 %v5755_v8, %v5749_v28  ;;  %8839 = vmatprep.subr.bf16.mxu1 %v10814_v59  ;;  %v5035_v31 = vand.u32 4294901760, %v5034_v56  ;;  %v5042_v63 = vand.u32 4294901760, %v5041_v11 }
 0x580   :  { %v4934_v12 = vld [vmem:[#allocation2 + $0x38] sm:$0xff]  ;;  %v10364_v52 = vpack.c.bf16 %v4963_v21, %v4960_v20  ;;  %v10366_v48 = vsub.f32 %v4931_v27, %v4960_v20  ;;  %v10368_v35 = vsub.f32 %v4932_v44, %v4963_v21  ;;  %v10370_v23 = vpack.c.bf16 %v5782_v37, %v5779_v46 }
 0x581   :  { %v4933_v17 = vld [vmem:[#allocation2 + $0x30] sm:$0xff]  ;;  %5760 = vst.msk [vmem:[#allocation2 + $0x38] sm:$0xff] %vm2360_vm2, %v5758_v5  ;;  %v10374_v55 = vsub.f32 %v5762_v34, %v5779_v46  ;;  %v10376_v49 = vsub.f32 %v5763_v60, %v5782_v37  ;;  %v4969_v6 = vand.u32 4294901760, %v4934_v12  ;;  %v5765_v26 = vld [vmem:[#allocation2 + $0x18] sm:$0xff]  ;;  %v10380_v15 = vpack.c.bf16 %v5042_v63, %v5035_v31 }
 0x582   :  { %v5764_v58 = vld [vmem:[#allocation2 + $0x10] sm:$0xff]  ;;  %5759 = vst.msk [vmem:[#allocation2 + $0x30] sm:$0xff] %vm2360_vm2, %v5757_v62  ;;  %v4966_v7 = vand.u32 4294901760, %v4933_v17  ;;  %8841 = vmatpush3.bf16.msra.mxu1 %v10364_v52  ;;  %8907 = vmatpush3.bf16.msra.mxu0 %v10370_v23  ;;  %v5788_v41 = vand.u32 4294901760, %v5765_v26  ;;  %v5047_v32 = vand.u32 4294901760, %v10350_v19  ;;  %v10816_v33 = vand.u32 4294901760, %v10352_v38 }
 0x583   :  { %v5785_v25 = vand.u32 4294901760, %v5764_v58  ;;  %8842 = vmatprep.subr.bf16.mxu1 %v10814_v59  ;;  %8908 = vmatprep.subr.bf16.mxu0 %v10814_v59  ;;  %v10389_v16 = vsub.f32 %v4934_v12, %v4969_v6  ;;  %v5864_v2 = vand.u32 4294901760, %v10374_v55  ;;  %v5871_v3 = vand.u32 4294901760, %v10376_v49 }
 0x584   :  { %v10385_v13 = vpack.c.bf16 %v4969_v6, %v4966_v7  ;;  %v10387_v45 = vsub.f32 %v4933_v17, %v4966_v7  ;;  %v10396_v51 = vsub.f32 %v5765_v26, %v5788_v41  ;;  %v5048_v42 = vsub.f32 %v10350_v19, %v5047_v32 }
 0x585   :  { %v10392_v40 = vpack.c.bf16 %v5788_v41, %v5785_v25  ;;  %v10394_v9 = vsub.f32 %v5764_v58, %v5785_v25  ;;  %v5766_v30 = vld [vmem:[#allocation2 + $0x20] sm:$0xff]  ;;  %v5767_v61 = vld [vmem:[#allocation2 + $0x28] sm:$0xff]  ;;  %v5865_v22 = vsub.f32 %v10374_v55, %v5864_v2  ;;  %v5872_v4 = vsub.f32 %v10376_v49, %v5871_v3 }
 0x586   :  { %v5791_v36 = vand.u32 4294901760, %v5766_v30  ;;  %v5794_v47 = vand.u32 4294901760, %v5767_v61  ;;  %8844 = vmatpush3.bf16.msra.mxu1 %v10385_v13  ;;  %v5885_v27 = vand.u32 4294901760, %v10396_v51  ;;  %v5049_v20 = vand.u32 4294901760, %v5048_v42 }
 0x587   :  { %8910 = vmatpush3.bf16.msra.mxu0 %v10392_v40  ;;  %v5878_v44 = vand.u32 4294901760, %v10394_v9  ;;  %8845 = vmatprep.subr.bf16.mxu1 %v10814_v59  ;;  %v5866_v11 = vand.u32 4294901760, %v5865_v22  ;;  %v5873_v28 = vand.u32 4294901760, %v5872_v4  ;;  %v5055_v37 = vsub.f32 %v10352_v38, %v10816_v33 }
 0x588   :  { %8911 = vmatprep.subr.bf16.mxu0 %v10814_v59  ;;  %v10414_v39 = vpack.c.bf16 %v5794_v47, %v5791_v36  ;;  %v10416_v34 = vsub.f32 %v5766_v30, %v5791_v36  ;;  %v10418_v56 = vsub.f32 %v5767_v61, %v5794_v47  ;;  %v5769_v50 = vld [vmem:[#allocation2 + $0x38] sm:$0xff]  ;;  %v5886_v60 = vsub.f32 %v10396_v51, %v5885_v27 }
 0x589   :  { %v5768_v10 = vld [vmem:[#allocation2 + $0x30] sm:$0xff]  ;;  %v5879_v8 = vsub.f32 %v10394_v9, %v5878_v44  ;;  %v5800_v46 = vand.u32 4294901760, %v5769_v50  ;;  %v10432_v62 = vpack.c.bf16 %v5873_v28, %v5866_v11  ;;  %v5056_v6 = vand.u32 4294901760, %v5055_v37 }
 0x58a   :  { %v5797_v21 = vand.u32 4294901760, %v5768_v10  ;;  %v5892_v5 = vand.u32 4294901760, %v10416_v34  ;;  %v5887_v63 = vand.u32 4294901760, %v5886_v60  ;;  %v5899_v12 = vand.u32 4294901760, %v10418_v56 }
 0x58b   :  { %8913 = vmatpush3.bf16.msra.mxu0 %v10414_v39  ;;  %v5880_v31 = vand.u32 4294901760, %v5879_v8  ;;  %v10440_v7 = vsub.f32 %v5769_v50, %v5800_v46  ;;  %v5061_v30 = vand.u32 4294901760, %v10366_v48  ;;  %v10447_v61 = vpack.c.bf16 %v5056_v6, %v5049_v20 }
 0x58c   :  { %8914 = vmatprep.subr.bf16.mxu0 %v10814_v59  ;;  %v10436_v17 = vpack.c.bf16 %v5800_v46, %v5797_v21  ;;  %v10438_v58 = vsub.f32 %v5768_v10, %v5797_v21  ;;  %v5893_v25 = vsub.f32 %v10416_v34, %v5892_v5  ;;  %v5900_v41 = vsub.f32 %v10418_v56, %v5899_v12 }
 0x58d   :  { %v10442_v26 = vpack.c.bf16 %v5887_v63, %v5880_v31  ;;  %v5068_v36 = vand.u32 4294901760, %v10368_v35  ;;  %v5913_v22 = vand.u32 4294901760, %v10440_v7  ;;  %v5062_v11 = vsub.f32 %v10366_v48, %v5061_v30 }
 0x58e   :  { %v5906_v47 = vand.u32 4294901760, %v10438_v58  ;;  %v5894_v42 = vand.u32 4294901760, %v5893_v25  ;;  %v5901_v4 = vand.u32 4294901760, %v5900_v41  ;;  %v5075_v10 = vand.u32 4294901760, %v10387_v45 }
 0x58f   :  { %8916 = vmatpush3.bf16.msra.mxu0 %v10436_v17  ;;  %v5069_v50 = vsub.f32 %v10368_v35, %v5068_v36  ;;  %v5914_v8 = vsub.f32 %v10440_v7, %v5913_v22  ;;  %v5082_v60 = vand.u32 4294901760, %v10389_v16  ;;  %v5063_v21 = vand.u32 4294901760, %v5062_v11 }
 0x590   :  { %8917 = vmatprep.subr.bf16.mxu0 %v10814_v59  ;;  %v5907_v28 = vsub.f32 %v10438_v58, %v5906_v47  ;;  %v8924_v20 = vpack.c.bf16 %v5901_v4, %v5894_v42  ;;  %v5076_v46 = vsub.f32 %v10387_v45, %v5075_v10  ;;  %v8930_v37 = vpack.c.bf16 %v10376_v49, %v10374_v55  ;;  %v6334_v49 = vld [vmem:[%s10811_s0 + $0x1d8] sm:$0xff] }
 0x591   :  { %v5070_v31 = vand.u32 4294901760, %v5069_v50  ;;  %v5915_v6 = vand.u32 4294901760, %v5914_v8  ;;  %v5083_v25 = vsub.f32 %v10389_v16, %v5082_v60  ;;  %v8933_v24 = vpack.c.bf16 %v10396_v51, %v10394_v9 }
 0x592   :  { %v5908_v63 = vand.u32 4294901760, %v5907_v28  ;;  %v5077_v41 = vand.u32 4294901760, %v5076_v46  ;;  %v8936_v42 = vpack.c.bf16 %v10418_v56, %v10416_v34  ;;  %v8864_v50 = vpack.c.bf16 %v10368_v35, %v10366_v48  ;;  %v6333_v48 = vld [vmem:[%s10811_s0 + $0x1d0] sm:$0xff] }
 0x593   :  { %v8852_v4 = vpack.c.bf16 %v5070_v31, %v5063_v21  ;;  %v5084_v33 = vand.u32 4294901760, %v5083_v25  ;;  %v8939_v28 = vpack.c.bf16 %v10440_v7, %v10438_v58  ;;  %v10480_v46 = vpack.c.bf16 %v5871_v3, %v5864_v2 }
 0x594   :  { %v8927_v11 = vpack.c.bf16 %v5915_v6, %v5908_v63  ;;  %v10486_v21 = vpack.c.bf16 %v5885_v27, %v5878_v44  ;;  %v10817_v31 = vand.u32 4294901760, %v10352_v38  ;;  %v10494_v6 = vpack.c.bf16 %v5899_v12, %v5892_v5 }
 0x595   :  { %v8855_v59 = vpack.c.bf16 %v5084_v33, %v5077_v41  ;;  %v10496_v25 = vpack.c.bf16 %v5068_v36, %v5061_v30  ;;  %v10498_v8 = vpack.c.bf16 %v5913_v22, %v5906_v47  ;;  %v10500_v2 = vpack.c.bf16 %v5082_v60, %v5075_v10 }
 0x596   :  { %v10492_v63 = vpack.c.bf16 %v10817_v31, %v5047_v32  ;;  %v9278_v3 = vmov 0.0   ;;  %v4148_v32 = vld [vmem:[%s10811_s0 + $0x1a0] sm:$0xf]  ;;  %v6355_v55 = vand.u32 4294901760, %v6333_v48 }
 0x597   :  { %8165 = vmatprep.mubr.msk.f32.mxu0 %vm9277_vm3, %v9278_v3  ;;  %8051 = vmatprep.mubr.msk.f32.mxu1 %vm9277_vm3, %v9278_v3  ;;  %v4924_v44 = vrot.slane %v4148_v32, 4 }
 0x598   :  { %v10693_v56 = vsub.f32 %v6333_v48, %v6355_v55 }
 0x614   :  { %v8034_v27 = vpop.f32.mrb[10].mxu1 }
 0x615   :  { %v5761_v33 = vmul.f32 %v8034_v27, %v4924_v44  ;;  %v4649_v5 = vpop.f32.mrb[11].mxu1 }
 0x616   :  { %v4926_v12 = vmul.f32 %v4924_v44, %v4649_v5 }
 0x617   :  { %v5772_v30 = vrot.slane %v5761_v33, 4 }
 0x618   :  { %v4941_v36 = vrot.slane %v4926_v12, 4 }
 0x619   :  { %v5776_v47 = vsel %vm2360_vm2, %v5772_v30, 0  ;;  %v10818_v30 = vmov 0.0|0.0  }
 0x61a   :  { %v10510_v22 = vand.u32 4294901760, %v5776_v47  ;;  %v4945_v10 = vsel %vm2360_vm2, %v4941_v36, 0  ;;  %v6460_v36 = vand.u32 4294901760, %v10693_v56 }
 0x61b   :  { %v10513_v60 = vand.u32 4294901760, %v4945_v10 }
 0x61c   :  { %v10516_v41 = vsub.f32 %v5776_v47, %v10510_v22 }
 0x61d   :  { %v10519_v31 = vsub.f32 %v4945_v10, %v10513_v60  ;;  %v6461_v10 = vsub.f32 %v10693_v56, %v6460_v36 }
 0x61e   :  { %v5853_v32 = vand.u32 4294901760, %v10516_v41 }
 0x61f   :  { %v5022_v44 = vand.u32 4294901760, %v10519_v31 }
 0x620   :  { %v5854_v27 = vsub.f32 %v10516_v41, %v5853_v32 }
 0x621   :  { %v5023_v33 = vsub.f32 %v10519_v31, %v5022_v44 }
 0x622   :  { %v5855_v5 = vand.u32 4294901760, %v5854_v27 }
 0x623   :  { %v5024_v12 = vand.u32 4294901760, %v5023_v33 }
 0x624   :  { %8166 = vmatmul.mubr.f32.vlgmr.msra.gmra.mrb[10].mxu0 %v5855_v5 }
 0x625   :  { %8919 = vmatpush3.bf16.msra.mxu0 %v10432_v62  ;;  %8052 = vmatmul.mubr.f32.vlgmr.msra.gmra.mrb[12].mxu1 %v5024_v12  ;;  %v6358_v62 = vand.u32 4294901760, %v6334_v49 }
 0x626   :  { %8847 = vmatpush3.bf16.msra.mxu1 %v10380_v15  ;;  %8920 = vmatprep.subr.bf16.mxu0 %v10818_v30  ;;  %v10819_v15 = vpack.c.bf16 %v10330_v29, %v10328_v43  ;;  %v10821_v43 = vpack.c.bf16 %v10389_v16, %v10387_v45  ;;  %v6329_v29 = vld [vmem:[%s10811_s0 + $0x1b0] sm:$0xff] }
 0x627   :  { %8848 = vmatprep.subr.bf16.mxu1 %v10818_v30  ;;  %8184 = vmatprep.mubr.msk.f32.mxu0 %vm9277_vm3, %v9278_v3  ;;  %v10696_v58 = vsub.f32 %v6334_v49, %v6358_v62 }
 0x628   :  { %8070 = vmatprep.mubr.msk.f32.mxu1 %vm9277_vm3, %v9278_v3 }
 0x629   :  { %8922 = vmatpush3.bf16.msra.mxu0 %v10442_v26 }
 0x62a   :  { %8850 = vmatpush3.bf16.msra.mxu1 %v10447_v61  ;;  %8923 = vmatprep.subr.bf16.mxu0 %v10818_v30 }
 0x62b   :  { %8851 = vmatprep.subr.bf16.mxu1 %v10818_v30 }
 0x62d   :  { %8925 = vmatpush3.bf16.msra.mxu0 %v8924_v20 }
 0x62e   :  { %8853 = vmatpush3.bf16.msra.mxu1 %v8852_v4  ;;  %8926 = vmatprep.subr.bf16.mxu0 %v10818_v30 }
 0x62f   :  { %8854 = vmatprep.subr.bf16.mxu1 %v10818_v30 }
 0x631   :  { %8928 = vmatpush3.bf16.msra.mxu0 %v8927_v11 }
 0x632   :  { %8856 = vmatpush3.bf16.msra.mxu1 %v8855_v59  ;;  %8929 = vmatprep.subr.bf16.mxu0 %v10818_v30  ;;  %v10820_v59 = vpack.c.bf16 %v10352_v38, %v10350_v19  ;;  %v6343_v19 = vand.u32 4294901760, %v6329_v29  ;;  %v6331_v38 = vld [vmem:[%s10811_s0 + $0x1c0] sm:$0xff] }
 0x633   :  { %8857 = vmatprep.subr.bf16.mxu1 %v10818_v30  ;;  %v6349_v35 = vand.u32 4294901760, %v6331_v38 }
 0x634   :  { %8185 = vmatmul.mubr.f32.vlgmr.msra.gmra.mrb[10].mxu0 %v10510_v22 }
 0x635   :  { %8071 = vmatmul.mubr.f32.vlgmr.msra.gmra.mrb[12].mxu1 %v10513_v60  ;;  %8931 = vmatpush3.bf16.msra.mxu0 %v8930_v37  ;;  %v10686_v51 = vsub.f32 %v6331_v38, %v6349_v35 }
 0x636   :  { %8859 = vmatpush3.bf16.msra.mxu1 %v10819_v15  ;;  %8932 = vmatprep.subr.bf16.mxu0 %v10818_v30 }
 0x637   :  { %8860 = vmatprep.subr.bf16.mxu1 %v10818_v30  ;;  %8203 = vmatprep.mubr.msk.f32.mxu0 %vm9277_vm3, %v9278_v3 }
 0x638   :  { %8089 = vmatprep.mubr.msk.f32.mxu1 %vm9277_vm3, %v9278_v3 }
 0x639   :  { %8934 = vmatpush3.bf16.msra.mxu0 %v8933_v24  ;;  %v6330_v24 = vld [vmem:[%s10811_s0 + $0x1b8] sm:$0xff] }
 0x63a   :  { %8862 = vmatpush3.bf16.msra.mxu1 %v10820_v59  ;;  %8935 = vmatprep.subr.bf16.mxu0 %v10818_v30 }
 0x63b   :  { %8863 = vmatprep.subr.bf16.mxu1 %v10818_v30 }
 0x63d   :  { %8937 = vmatpush3.bf16.msra.mxu0 %v8936_v42 }
 0x63e   :  { %8865 = vmatpush3.bf16.msra.mxu1 %v8864_v50  ;;  %8938 = vmatprep.subr.bf16.mxu0 %v10818_v30  ;;  %v6446_v50 = vand.u32 4294901760, %v10686_v51 }
 0x63f   :  { %8866 = vmatprep.subr.bf16.mxu1 %v10818_v30 }
 0x641   :  { %8940 = vmatpush3.bf16.msra.mxu0 %v8939_v28 }
 0x642   :  { %8868 = vmatpush3.bf16.msra.mxu1 %v10821_v43  ;;  %8941 = vmatprep.subr.bf16.mxu0 %v10818_v30 }
 0x643   :  { %8869 = vmatprep.subr.bf16.mxu1 %v10818_v30 }
 0x644   :  { %8204 = vmatmul.mubr.f32.vlgmr.msra.gmra.mrb[10].mxu0 %v10516_v41  ;;  %v6467_v41 = vand.u32 4294901760, %v10696_v58 }
 0x645   :  { %8090 = vmatmul.mubr.f32.vlgmr.msra.gmra.mrb[12].mxu1 %v10519_v31  ;;  %8943 = vmatpush3.bf16.msra.mxu0 %v10370_v23 }
 0x646   :  { %8871 = vmatpush3.bf16.msra.mxu1 %v10326_v0  ;;  %8944 = vmatprep.subr.bf16.mxu0 %v10818_v30 }
 0x647   :  { %8872 = vmatprep.subr.bf16.mxu1 %v10818_v30  ;;  %8222 = vmatprep.mubr.msk.f32.mxu0 %vm9277_vm3, %v9278_v3 }
 0x648   :  { %8108 = vmatprep.mubr.msk.f32.mxu1 %vm9277_vm3, %v9278_v3 }
 0x649   :  { %8946 = vmatpush3.bf16.msra.mxu0 %v10392_v40 }
 0x64a   :  { %8874 = vmatpush3.bf16.msra.mxu1 %v10348_v1  ;;  %8947 = vmatprep.subr.bf16.mxu0 %v10818_v30 }
 0x64b   :  { %8875 = vmatprep.subr.bf16.mxu1 %v10818_v30 }
 0x64d   :  { %8949 = vmatpush3.bf16.msra.mxu0 %v10414_v39 }
 0x64e   :  { %8877 = vmatpush3.bf16.msra.mxu1 %v10364_v52  ;;  %8950 = vmatprep.subr.bf16.mxu0 %v10818_v30 }
 0x64f   :  { %8878 = vmatprep.subr.bf16.mxu1 %v10818_v30 }
 0x651   :  { %8952 = vmatpush3.bf16.msra.mxu0 %v10436_v17 }
 0x652   :  { %8880 = vmatpush3.bf16.msra.mxu1 %v10385_v13  ;;  %8953 = vmatprep.subr.bf16.mxu0 %v10818_v30 }
 0x653   :  { %8881 = vmatprep.subr.bf16.mxu1 %v10818_v30 }
 0x654   :  { %8223 = vmatmul.mubr.f32.vlgmr.msra.gmra.mrb[10].mxu0 %v5853_v32  ;;  %v6462_v32 = vand.u32 4294901760, %v6461_v10 }
 0x655   :  { %8109 = vmatmul.mubr.f32.vlgmr.msra.gmra.mrb[12].mxu1 %v5022_v44  ;;  %8955 = vmatpush3.bf16.msra.mxu0 %v10480_v46  ;;  %v6468_v44 = vsub.f32 %v10696_v58, %v6467_v41 }
 0x656   :  { %8883 = vmatpush3.bf16.msra.mxu1 %v10356_v53  ;;  %8956 = vmatprep.subr.bf16.mxu0 %v10818_v30  ;;  %v6346_v53 = vand.u32 4294901760, %v6330_v24 }
 0x657   :  { %8884 = vmatprep.subr.bf16.mxu1 %v10818_v30  ;;  %8241 = vmatprep.mubr.msk.f32.mxu0 %vm9277_vm3, %v9278_v3  ;;  %v6469_v5 = vand.u32 4294901760, %v6468_v44 }
 0x658   :  { %8127 = vmatprep.mubr.msk.f32.mxu1 %vm9277_vm3, %v9278_v3  ;;  %v10684_v9 = vsub.f32 %v6330_v24, %v6346_v53  ;;  %v10691_v34 = vpack.c.bf16 %v6349_v35, %v6346_v53  ;;  %v6315_v53 = vsub.f32 0.0, %v9460_v14 }
 0x659   :  { %8958 = vmatpush3.bf16.msra.mxu0 %v10486_v21  ;;  %v6447_v21 = vsub.f32 %v10686_v51, %v6446_v50 }
 0x65a   :  { %8886 = vmatpush3.bf16.msra.mxu1 %v10492_v63  ;;  %8959 = vmatprep.subr.bf16.mxu0 %v10818_v30  ;;  %v6439_v11 = vand.u32 4294901760, %v10684_v9  ;;  %v9005_v43 = vpack.c.bf16 %v10686_v51, %v10684_v9  ;;  %v6316_v48 = vmul.f32 1.442695, %v6315_v53 }
 0x65b   :  { %8887 = vmatprep.subr.bf16.mxu1 %v10818_v30 }
 0x65c   :  { %v6440_v46 = vsub.f32 %v10684_v9, %v6439_v11  ;;  %9268 = vpow2.f32 %v6316_v48 }
 0x65d   :  { %8961 = vmatpush3.bf16.msra.mxu0 %v10494_v6 }
 0x65e   :  { %8889 = vmatpush3.bf16.msra.mxu1 %v10496_v25  ;;  %8962 = vmatprep.subr.bf16.mxu0 %v10818_v30  ;;  %v6441_v6 = vand.u32 4294901760, %v6440_v46  ;;  %v6448_v25 = vand.u32 4294901760, %v6447_v21 }
 0x65f   :  { %8890 = vmatprep.subr.bf16.mxu1 %v10818_v30 }
 0x660   :  { %v10722_v47 = vpack.c.bf16 %v6448_v25, %v6441_v6 }
 0x661   :  { %8964 = vmatpush3.bf16.msra.mxu0 %v10498_v8 }
 0x662   :  { %8892 = vmatpush3.bf16.msra.mxu1 %v10500_v2  ;;  %8965 = vmatprep.subr.bf16.mxu0 %v10818_v30 }
 0x663   :  { %8893 = vmatprep.subr.bf16.mxu1 %v10818_v30 }
 0x664   :  { %8242 = vmatmul.mubr.f32.vlgmr.msra.gmra.mrb[10].mxu0 %v10510_v22 }
 0x665   :  { %8128 = vmatmul.mubr.f32.vlgmr.msra.gmra.mrb[12].mxu1 %v10513_v60  ;;  %8967 = vmatpush3.bf16.msra.mxu0 %v10370_v23 }
 0x666   :  { %8895 = vmatpush3.bf16.msra.mxu1 %v10326_v0  ;;  %8968 = vmatprep.subr.bf16.mxu0 %v10818_v30  ;;  %v6328_v0 = vld [vmem:[%s10811_s0 + $0x1a8] sm:$0xff] }
 0x667   :  { %8896 = vmatprep.subr.bf16.mxu1 %v10818_v30  ;;  %8260 = vmatprep.mubr.msk.f32.mxu0 %vm9277_vm3, %v9278_v3 }
 0x668   :  { %8146 = vmatprep.mubr.msk.f32.mxu1 %vm9277_vm3, %v9278_v3 }
 0x669   :  { %8970 = vmatpush3.bf16.msra.mxu0 %v10392_v40  ;;  %v10682_v40 = vsub.f32 %v6329_v29, %v6343_v19 }
 0x66a   :  { %8898 = vmatpush3.bf16.msra.mxu1 %v10348_v1  ;;  %8971 = vmatprep.subr.bf16.mxu0 %v10818_v30  ;;  %v6340_v1 = vand.u32 4294901760, %v6328_v0 }
 0x66b   :  { %8899 = vmatprep.subr.bf16.mxu1 %v10818_v30  ;;  %v6432_v37 = vand.u32 4294901760, %v10682_v40 }
 0x66c   :  { %v10678_v45 = vpack.c.bf16 %v6343_v19, %v6340_v1  ;;  %v10680_v16 = vsub.f32 %v6328_v0, %v6340_v1  ;;  %v10740_v1 = vpack.c.bf16 %v6446_v50, %v6439_v11 }
 0x66d   :  { %8973 = vmatpush3.bf16.msra.mxu0 %v10414_v39  ;;  %v6433_v4 = vsub.f32 %v10682_v40, %v6432_v37 }
 0x66e   :  { %8901 = vmatpush3.bf16.msra.mxu1 %v10364_v52  ;;  %8974 = vmatprep.subr.bf16.mxu0 %v10818_v30  ;;  %v6332_v52 = vld [vmem:[%s10811_s0 + $0x1c8] sm:$0xff]  ;;  %v6425_v20 = vand.u32 4294901760, %v10680_v16  ;;  %v9002_v59 = vpack.c.bf16 %v10682_v40, %v10680_v16 }
 0x66f   :  { %8902 = vmatprep.subr.bf16.mxu1 %v10818_v30  ;;  %v6352_v23 = vand.u32 4294901760, %v6332_v52  ;;  %v6434_v8 = vand.u32 4294901760, %v6433_v4 }
 0x670   :  { %v6426_v42 = vsub.f32 %v10680_v16, %v6425_v20  ;;  %v10738_v24 = vpack.c.bf16 %v6432_v37, %v6425_v20  ;;  %v6888_v16 = vld [vmem:[%s10811_s0 + $0x188] ss:$0 sm:$0xff] }
 0x671   :  { %8976 = vmatpush3.bf16.msra.mxu0 %v10436_v17  ;;  %v10688_v39 = vsub.f32 %v6332_v52, %v6352_v23  ;;  %v10701_v26 = vpack.c.bf16 %v6355_v55, %v6352_v23  ;;  %v5484_v52 = vsub.f32 0.0, %v9468_v18  ;;  %v9269_v23 = vpop.eup %9268  ;;  %v5770_v51 = vmul.f32 %v6888_v16, %v9653_v54 }
 0x672   :  { %8904 = vmatpush3.bf16.msra.mxu1 %v10385_v13  ;;  %v6335_v13 = vld [vmem:[%s10811_s0 + $0x1e0] sm:$0xff]  ;;  %v6427_v28 = vand.u32 4294901760, %v6426_v42  ;;  %v6318_v49 = vadd.f32 1.0, %v9269_v23 }
 0x673   :  { %8977 = vmatprep.subr.bf16.mxu1 %v10818_v30  ;;  %v6361_v17 = vand.u32 4294901760, %v6335_v13  ;;  %v6453_v2 = vand.u32 4294901760, %v10688_v39  ;;  %v9008_v0 = vpack.c.bf16 %v10693_v56, %v10688_v39  ;;  %v5485_v35 = vmul.f32 1.442695, %v5484_v52 }
 0x674   :  { %8261 = vmatmul.mubr.f32.vlgmr.msra.gmra.mrb[10].mxu0 %v10510_v22  ;;  %v10718_v63 = vpack.c.bf16 %v6434_v8, %v6427_v28 }
 0x675   :  { %8147 = vmatmul.mubr.f32.vlgmr.msra.gmra.mrb[12].mxu1 %v10513_v60  ;;  %v10698_v7 = vsub.f32 %v6335_v13, %v6361_v17  ;;  %v10705_v61 = vpack.c.bf16 %v6361_v17, %v6358_v62  ;;  %v6454_v22 = vsub.f32 %v10688_v39, %v6453_v2  ;;  %v10742_v19 = vpack.c.bf16 %v6460_v36, %v6453_v2 }
 0x676   :  { %8279 = vmatprep.mubr.msk.f32.mxu1 %vm9277_vm3, %v9278_v3  ;;  %8979 = vmatpush3.bf16.msra.mxu1 %v10678_v45  ;;  %9270 = vpow2.f32 %v5485_v35  ;;  %v4939_v39 = vmul.f32 %v6888_v16, %v9655_v57  ;;  %v5774_v17 = vrot.slane %v5770_v51, 4 }
 0x677   :  { %8980 = vmatprep.subr.bf16.mxu1 %v10818_v30  ;;  %v6455_v60 = vand.u32 4294901760, %v6454_v22  ;;  %v6474_v31 = vand.u32 4294901760, %v10698_v7  ;;  %v9011_v29 = vpack.c.bf16 %v10698_v7, %v10696_v58  ;;  %9272 = vrcp.f32 %v6318_v49 }
 0x678   :  { %v4943_v37 = vrot.slane %v4939_v39, 4 }
 0x679   :  { %v6475_v27 = vsub.f32 %v10698_v7, %v6474_v31  ;;  %v8996_v33 = vpack.c.bf16 %v6462_v32, %v6455_v60  ;;  %v10744_v38 = vpack.c.bf16 %v6474_v31, %v6467_v41 }
 0x67a   :  { %8982 = vmatpush3.bf16.msra.mxu1 %v10691_v34 }
 0x67b   :  { %8983 = vmatprep.subr.bf16.mxu1 %v10818_v30  ;;  %v6476_v12 = vand.u32 4294901760, %v6475_v27 }
 0x67d   :  { %v8999_v15 = vpack.c.bf16 %v6476_v12, %v6469_v5 }
 0x67e   :  { %8985 = vmatpush3.bf16.msra.mxu1 %v10701_v26 }
 0x67f   :  { %8986 = vmatprep.subr.bf16.mxu1 %v10818_v30 }
 0x680   :  { %v9271_v55 = vpop.eup %9270 }
 0x681   :  { %v5487_v13 = vadd.f32 1.0, %v9271_v55  ;;  %v9273_v40 = vpop.eup %9272 }
 0x682   :  { %8988 = vmatpush3.bf16.msra.mxu1 %v10705_v61  ;;  %v6321_v56 = vmul.f32 %v9273_v40, %v9460_v14 }
 0x683   :  { %8989 = vmatprep.subr.bf16.mxu1 %v10818_v30  ;;  %9274 = vrcp.f32 %v5487_v13 }
 0x684   :  { %v6323_v42 = vrot.slane %v6321_v56, 4 }
 0x68d   :  { %v9275_v9 = vpop.eup %9274 }
 0x68e   :  { %v5490_v62 = vmul.f32 %v9275_v9, %v9468_v18 }
 0x690   :  { %v5492_v28 = vrot.slane %v5490_v62, 4 }
 0x747   :  { %v6311_v20 = vpop.f32.mrb[10].mxu0 }
 0x748   :  { %v9056_v4 = vadd.f32 %v6311_v20, %v5774_v17  ;;  %v5480_v11 = vpop.f32.mrb[12].mxu1  ;;  %v8262_v50 = vpop.f32.mrb[11].mxu0 }
 0x749   :  { %v9055_v8 = vadd.f32 %v5480_v11, %v4943_v37  ;;  %v8148_v46 = vpop.f32.mrb[13].mxu1 }
 0x74a   :  { %v6325_v21 = vmul.f32 %v9056_v4, %v6323_v42 }
 0x74b   :  { %v5494_v6 = vmul.f32 %v9055_v8, %v5492_v28 }
 0x74c   :  { %6326 = vst.msk [vmem:[#allocation3 + $0x4] sm:$0xf] %vm5495_vm4, %v6325_v21 }
 0x74d   :  { %5496 = vst.msk [vmem:[#allocation3] sm:$0xf] %vm5495_vm4, %v5494_v6 }
 0x754   :  { %v6327_v54 = vld [vmem:[#allocation3] sm:$0xff] }
 0x755   :  { %v6337_v14 = vsel %vm2360_vm2, %v6327_v54, 0 }
 0x756   :  { %v6412_v57 = vand.u32 4294901760, %v6337_v14 }
 0x758   :  { %v6413_v18 = vsub.f32 %v6337_v14, %v6412_v57 }
 0x75a   :  { %v6414_v25 = vand.u32 4294901760, %v6413_v18 }
 0x75c   :  { %v6415_v2 = vsub.f32 %v6413_v18, %v6414_v25 }
 0x75e   :  { %v6416_v36 = vand.u32 4294901760, %v6415_v2 }
 0x760   :  { %8280 = vmatmul.mubr.f32.vlgmr.msra.gmra.mrb[14].mxu1 %v6416_v36 }
 0x761   :  { %8991 = vmatpush3.bf16.msra.mxu1 %v10718_v63  ;;  %8298 = vmatprep.mubr.msk.f32.mxu1 %vm9277_vm3, %v9278_v3 }
 0x762   :  { %8992 = vmatprep.subr.bf16.mxu1 %v10818_v30 }
 0x765   :  { %8994 = vmatpush3.bf16.msra.mxu1 %v10722_v47 }
 0x766   :  { %8995 = vmatprep.subr.bf16.mxu1 %v10818_v30 }
 0x769   :  { %8997 = vmatpush3.bf16.msra.mxu1 %v8996_v33 }
 0x76a   :  { %8998 = vmatprep.subr.bf16.mxu1 %v10818_v30 }
 0x76d   :  { %9000 = vmatpush3.bf16.msra.mxu1 %v8999_v15 }
 0x76e   :  { %9001 = vmatprep.subr.bf16.mxu1 %v10818_v30 }
 0x770   :  { %8299 = vmatmul.mubr.f32.vlgmr.msra.gmra.mrb[14].mxu1 %v6412_v57 }
 0x771   :  { %9003 = vmatpush3.bf16.msra.mxu1 %v9002_v59  ;;  %8317 = vmatprep.mubr.msk.f32.mxu1 %vm9277_vm3, %v9278_v3 }
 0x772   :  { %9004 = vmatprep.subr.bf16.mxu1 %v10818_v30 }
 0x775   :  { %9006 = vmatpush3.bf16.msra.mxu1 %v9005_v43 }
 0x776   :  { %9007 = vmatprep.subr.bf16.mxu1 %v10818_v30 }
 0x779   :  { %9009 = vmatpush3.bf16.msra.mxu1 %v9008_v0 }
 0x77a   :  { %9010 = vmatprep.subr.bf16.mxu1 %v10818_v30 }
 0x77d   :  { %9012 = vmatpush3.bf16.msra.mxu1 %v9011_v29 }
 0x77e   :  { %9013 = vmatprep.subr.bf16.mxu1 %v10818_v30 }
 0x780   :  { %8318 = vmatmul.mubr.f32.vlgmr.msra.gmra.mrb[14].mxu1 %v6413_v18 }
 0x781   :  { %9015 = vmatpush3.bf16.msra.mxu1 %v10678_v45  ;;  %8336 = vmatprep.mubr.msk.f32.mxu1 %vm9277_vm3, %v9278_v3 }
 0x782   :  { %9016 = vmatprep.subr.bf16.mxu1 %v10818_v30 }
 0x785   :  { %9018 = vmatpush3.bf16.msra.mxu1 %v10691_v34 }
 0x786   :  { %9019 = vmatprep.subr.bf16.mxu1 %v10818_v30 }
 0x789   :  { %9021 = vmatpush3.bf16.msra.mxu1 %v10701_v26 }
 0x78a   :  { %9022 = vmatprep.subr.bf16.mxu1 %v10818_v30 }
 0x78d   :  { %9024 = vmatpush3.bf16.msra.mxu1 %v10705_v61 }
 0x78e   :  { %9025 = vmatprep.subr.bf16.mxu1 %v10818_v30 }
 0x790   :  { %8337 = vmatmul.mubr.f32.vlgmr.msra.gmra.mrb[14].mxu1 %v6414_v25 }
 0x791   :  { %9027 = vmatpush3.bf16.msra.mxu1 %v10738_v24  ;;  %8355 = vmatprep.mubr.msk.f32.mxu1 %vm9277_vm3, %v9278_v3 }
 0x792   :  { %9028 = vmatprep.subr.bf16.mxu1 %v10818_v30 }
 0x795   :  { %9030 = vmatpush3.bf16.msra.mxu1 %v10740_v1 }
 0x796   :  { %9031 = vmatprep.subr.bf16.mxu1 %v10818_v30 }
 0x799   :  { %9033 = vmatpush3.bf16.msra.mxu1 %v10742_v19 }
 0x79a   :  { %9034 = vmatprep.subr.bf16.mxu1 %v10818_v30 }
 0x79d   :  { %9036 = vmatpush3.bf16.msra.mxu1 %v10744_v38 }
 0x79e   :  { %9037 = vmatprep.subr.bf16.mxu1 %v10818_v30 }
 0x7a0   :  { %8356 = vmatmul.mubr.f32.vlgmr.msra.gmra.mrb[14].mxu1 %v6412_v57 }
 0x7a1   :  { %9039 = vmatpush3.bf16.msra.mxu1 %v10678_v45  ;;  %8374 = vmatprep.mubr.msk.f32.mxu1 %vm9277_vm3, %v9278_v3  ;;  %v6876_v45 = vld [vmem:[%s10812_s1 + $0x10] sm:$0xff]  ;;  %v6878_v3 = vld [vmem:[%s10812_s1 + $0x18] sm:$0xff] }
 0x7a2   :  { %9040 = vmatprep.subr.bf16.mxu1 %v10818_v30 }
 0x7a5   :  { %9042 = vmatpush3.bf16.msra.mxu1 %v10691_v34 }
 0x7a6   :  { %9043 = vmatprep.subr.bf16.mxu1 %v10818_v30 }
 0x7a9   :  { %9045 = vmatpush3.bf16.msra.mxu1 %v10701_v26 }
 0x7aa   :  { %9046 = vmatprep.subr.bf16.mxu1 %v10818_v30 }
 0x7ad   :  { %9048 = vmatpush3.bf16.msra.mxu1 %v10705_v61 }
 0x7b0   :  { %8375 = vmatmul.mubr.f32.vlgmr.msra.gmra.mrb[14].mxu1 %v6412_v57 }
 0x883   :  { %v6872_v58 = vpop.f32.mrb[14].mxu1 }
 0x884   :  { %v6877_v7 = vmul.f32 %v6876_v45, %v6872_v58  ;;  %v8376_v34 = vpop.f32.mrb[15].mxu1 }
 0x886   :  { %v6879_v63 = vadd.f32 %v6878_v3, %v6877_v7 }
 0x888   :  { %6881 = vst.msk [vmem:[%s10813_s2] sm:$0xff] %vm6880_vm5, %v6879_v63 }

</bundles_post_ra>
